<compile_context>
chip_gen: v7x
topology: tpu7x:2x2x1
jax: 0.10.0
libtpu: 0.0.40
codegen_flags: <defaults>
</compile_context>

<pallas_src>
import jax
import jax.numpy as jnp
from jax.experimental import pallas as pl
from jax.experimental.pallas import tpu as pltpu

EPS = 1e-5


def fused_kernel(x93_ref, x87_ref, scale_ref, w_ref, gamma_ref, beta_ref, o_ref):
    # x93_ref, x87_ref : (C, M)   channels on sublanes, pixels on lanes
    # scale_ref        : (C, 1)   per-channel multiplier (x98)
    # w_ref            : (Cout, Cin) 1x1-conv weight
    # gamma_ref, beta  : (C, 1)   batchnorm affine params
    x = x93_ref[...] * scale_ref[...]                                   # x99  (C, M)
    y = jnp.dot(w_ref[...], x, preferred_element_type=jnp.float32)     # x100 (C, M)

    m = y.shape[1]
    inv_m = 1.0 / m
    # single sweep for both batch statistics
    s1 = jnp.sum(y, axis=1, keepdims=True)                              # (C, 1)
    s2 = jnp.sum(y * y, axis=1, keepdims=True)                          # (C, 1)
    mean = s1 * inv_m
    var = s2 * inv_m - mean * mean                                      # biased var
    inv = jax.lax.rsqrt(var + EPS)

    a = inv * gamma_ref[...]                                            # (C, 1)
    b = beta_ref[...] - mean * a                                        # (C, 1)
    # fused normalize + affine + residual in one pass over y
    o_ref[...] = x87_ref[...] + y * a + b                               # x102


def fused_forward(x98, x93, x87, conv_w, gamma, beta):
    """x98:(N,C,1,1)  x93,x87:(N,C,H,W)  conv_w:(Cout,Cin,1,1)  gamma,beta:(C,)"""
    N, C, H, W = x93.shape
    assert N == 1, "kernel assumes N=1 (as in the reference module)"
    M = H * W

    # NCHW with N=1 -> (C, M): pure reshape, no transpose / extra HBM pass
    x93_f = x93.reshape(C, M)
    x87_f = x87.reshape(C, M)
    scale = x98.reshape(C, 1)
    w2 = conv_w.reshape(C, C)
    gamma2 = gamma.reshape(C, 1)
    beta2 = beta.reshape(C, 1)

    full = lambda shp: pl.BlockSpec(shp, lambda: (0,) * len(shp))

    out_f = pl.pallas_call(
        fused_kernel,
        out_shape=jax.ShapeDtypeStruct((C, M), jnp.float32),
        in_specs=[
            full((C, M)),      # x93
            full((C, M)),      # x87
            full((C, 1)),      # scale (x98)
            full((C, C)),      # conv weight
            full((C, 1)),      # gamma
            full((C, 1)),      # beta
        ],
        out_specs=full((C, M)),
        compiler_params=pltpu.CompilerParams(vmem_limit_bytes=16 << 20),
    )(x93_f, x87_f, scale, w2, gamma2, beta2)

    # (C, M) -> NCHW, again a free reshape
    return out_f.reshape(N, C, H, W)


def reference_forward(x98, x93, x87, conv_w, gamma, beta):
    """Pure-JAX reference for sanity checking."""
    x99 = x98 * x93                                                     # (N,C,H,W)
    w = conv_w.reshape(conv_w.shape[0], conv_w.shape[1])                # (Cout,Cin)
    x100 = jnp.einsum('nchw,oc->nohw', x99, w)
    mean = jnp.mean(x100, axis=(0, 2, 3), keepdims=True)
    var = jnp.mean((x100 - mean) ** 2, axis=(0, 2, 3), keepdims=True)
    x101 = (x100 - mean) * jax.lax.rsqrt(var + EPS)
    x101 = x101 * gamma.reshape(1, -1, 1, 1) + beta.reshape(1, -1, 1, 1)
    return x87 + x101


if __name__ == "__main__":
    # shapes exactly as implied by the module
    N, C, H, W = 1, 216, 28, 28

    key = jax.random.PRNGKey(0)
    k87, k93, k98, kw, kg, kb = jax.random.split(key, 6)

    x87 = jax.random.normal(k87, (N, C, H, W), jnp.float32)
    x93 = jax.random.normal(k93, (N, C, H, W), jnp.float32)
    x98 = jax.random.normal(k98, (N, C, 1, 1), jnp.float32)

    # deterministic parameter init (synthetic, not a checkpoint)
    conv_w = jax.random.normal(kw, (C, C, 1, 1), jnp.float32) * (1.0 / jnp.sqrt(C))
    gamma = jax.random.normal(kg, (C,), jnp.float32) * 0.1 + 1.0
    beta = jax.random.normal(kb, (C,), jnp.float32) * 0.1

    out = jax.jit(fused_forward)(x98, x93, x87, conv_w, gamma, beta)
    out = jax.block_until_ready(out)

    ref = reference_forward(x98, x93, x87, conv_w, gamma, beta)
    ref = jax.block_until_ready(ref)

    assert out.shape == (N, C, H, W), out.shape
    max_err = float(jnp.max(jnp.abs(out - ref)))
    assert max_err < 1e-3, f"max abs error too large: {max_err}"

    print("KERNEL_OK")
</pallas_src>

<mosaic_0001>
module attributes {stable_mosaic.version = 11 : i64} {
  func.func @fused_kernel(%arg0: memref<216x784xf32, #tpu.memory_space<vmem>>, %arg1: memref<216x784xf32, #tpu.memory_space<vmem>>, %arg2: memref<216x1xf32, #tpu.memory_space<vmem>>, %arg3: memref<216x216xf32, #tpu.memory_space<vmem>>, %arg4: memref<216x1xf32, #tpu.memory_space<vmem>>, %arg5: memref<216x1xf32, #tpu.memory_space<vmem>>, %arg6: memref<216x784xf32, #tpu.memory_space<vmem>>) attributes {dimension_semantics = [], scalar_prefetch = 0 : i64, scratch_operands = 0 : i64, tpu.core_type = #tpu.core_type<tc>} {
    %c0 = arith.constant 0 : index
    %c0_0 = arith.constant 0 : index
    %0 = vector.load %arg0[%c0, %c0_0] : memref<216x784xf32, #tpu.memory_space<vmem>>, vector<216x784xf32>
    %c0_1 = arith.constant 0 : index
    %c0_2 = arith.constant 0 : index
    %1 = vector.load %arg2[%c0_1, %c0_2] : memref<216x1xf32, #tpu.memory_space<vmem>>, vector<216x1xf32>
    %2 = vector.broadcast %1 : vector<216x1xf32> to vector<216x784xf32>
    %3 = arith.mulf %0, %2 : vector<216x784xf32>
    %c0_3 = arith.constant 0 : index
    %c0_4 = arith.constant 0 : index
    %4 = vector.load %arg3[%c0_3, %c0_4] : memref<216x216xf32, #tpu.memory_space<vmem>>, vector<216x216xf32>
    %cst = arith.constant dense<0.000000e+00> : vector<216x784xf32>
    %5 = tpu.matmul %4, %3, %cst {dimension_numbers = #tpu.dot_dimension_numbers<[1], [0], [0], [1], [0, 0, 1, 1], [], []>} : vector<216x216xf32>, vector<216x784xf32>, vector<216x784xf32> -> vector<216x784xf32>
    %cst_5 = arith.constant dense<0.000000e+00> : vector<216xf32>
    %6 = vector.multi_reduction <add>, %5, %cst_5 [1] : vector<216x784xf32> to vector<216xf32>
    %7 = vector.shape_cast %6 : vector<216xf32> to vector<216x1xf32>
    %8 = arith.mulf %5, %5 : vector<216x784xf32>
    %cst_6 = arith.constant dense<0.000000e+00> : vector<216xf32>
    %9 = vector.multi_reduction <add>, %8, %cst_6 [1] : vector<216x784xf32> to vector<216xf32>
    %10 = vector.shape_cast %9 : vector<216xf32> to vector<216x1xf32>
    %cst_7 = arith.constant 0.00127551018 : f32
    %11 = vector.broadcast %cst_7 : f32 to vector<216x1xf32>
    %12 = arith.mulf %7, %11 : vector<216x1xf32>
    %cst_8 = arith.constant 0.00127551018 : f32
    %13 = vector.broadcast %cst_8 : f32 to vector<216x1xf32>
    %14 = arith.mulf %10, %13 : vector<216x1xf32>
    %15 = arith.mulf %12, %12 : vector<216x1xf32>
    %16 = arith.subf %14, %15 : vector<216x1xf32>
    %cst_9 = arith.constant 9.99999974E-6 : f32
    %17 = vector.broadcast %cst_9 : f32 to vector<216x1xf32>
    %18 = arith.addf %16, %17 : vector<216x1xf32>
    %19 = math.rsqrt %18 : vector<216x1xf32>
    %c0_10 = arith.constant 0 : index
    %c0_11 = arith.constant 0 : index
    %20 = vector.load %arg4[%c0_10, %c0_11] : memref<216x1xf32, #tpu.memory_space<vmem>>, vector<216x1xf32>
    %21 = arith.mulf %19, %20 : vector<216x1xf32>
    %c0_12 = arith.constant 0 : index
    %c0_13 = arith.constant 0 : index
    %22 = vector.load %arg5[%c0_12, %c0_13] : memref<216x1xf32, #tpu.memory_space<vmem>>, vector<216x1xf32>
    %23 = arith.mulf %12, %21 : vector<216x1xf32>
    %24 = arith.subf %22, %23 : vector<216x1xf32>
    %c0_14 = arith.constant 0 : index
    %c0_15 = arith.constant 0 : index
    %25 = vector.load %arg1[%c0_14, %c0_15] : memref<216x784xf32, #tpu.memory_space<vmem>>, vector<216x784xf32>
    %26 = vector.broadcast %21 : vector<216x1xf32> to vector<216x784xf32>
    %27 = arith.mulf %5, %26 : vector<216x784xf32>
    %28 = arith.addf %25, %27 : vector<216x784xf32>
    %29 = vector.broadcast %24 : vector<216x1xf32> to vector<216x784xf32>
    %30 = arith.addf %28, %29 : vector<216x784xf32>
    %c0_16 = arith.constant 0 : index
    %c0_17 = arith.constant 0 : index
    %31 = vector.load %arg6[%c0_16, %c0_17] : memref<216x784xf32, #tpu.memory_space<vmem>>, vector<216x784xf32>
    tpu.vector_store %arg6[%c0_16, %c0_17], %30 {strides = array<i32>} : memref<216x784xf32, #tpu.memory_space<vmem>>, vector<216x784xf32>,
    return
  }
}

</mosaic_0001>

<bundles_post_ra>
// kernel: fused_forward.1
= control target key start
LH: loop header
LB: loop body
LE: loop exit
PB: predicated region body
PF: predicated region fallthrough
CT: control target
= control target key end

     0   :  { %v4135_v0 = vmov 0   ;;  %vm617_vm0 = vcmask 719872   ;;  %vm1585_vm1 = vcmask 130048   ;;  %s8940_s2 = inlined_call_operand.vmem [shape: f32[216,1], index: 2, kind: input, shape index: {}]   ;;  %s8941_s3 = inlined_call_operand.vmem [shape: f32[216,216], index: 3, kind: input, shape index: {}]   ;;  %s8942_s0 = inlined_call_operand.vmem [shape: f32[216,784], index: 0, kind: input, shape index: {}]   ;;  %s8943_s4 = inlined_call_operand.vmem [shape: f32[216,1], index: 4, kind: input, shape index: {}]   ;;  %s8944_s5 = inlined_call_operand.vmem [shape: f32[216,1], index: 5, kind: input, shape index: {}]   ;;  %s8945_s1 = inlined_call_operand.vmem [shape: f32[216,784], index: 1, kind: input, shape index: {}]   ;;  %s8946_s6 = inlined_call_operand.vmem [shape: f32[216,784], index: 6, kind: output, shape index: {}]  }
   0x1   :  { %4079 = vset.pattern.permute.xlu1 %v4135_v0  ;;  %4078 = vset.pattern.permute.xlu0 %v4135_v0  ;;  %v214_v1 = vld [vmem:[%s8940_s2 + $0x10] sm:$0xff]  ;;  %v212_v2 = vld [vmem:[%s8940_s2] sm:$0xff]  ;;  %v215_v3 = vld [vmem:[%s8940_s2 + $0x18] sm:$0xff] }
   0x2   :  { %251 = vperm.xlu1 %4079, %v214_v1   ;;  %241 = vperm.xlu0 %4078, %v212_v2   ;;  %v213_v4 = vld [vmem:[%s8940_s2 + $0x8] sm:$0xff]  ;;  %v216_v6 = vld [vmem:[%s8940_s2 + $0x20] sm:$0xff]  ;;  %v219_v7 = vld [vmem:[%s8940_s2 + $0x38] sm:$0xff] }
   0x3   :  { %v217_v5 = vld [vmem:[%s8940_s2 + $0x28] sm:$0xff]  ;;  %v218_v8 = vld [vmem:[%s8940_s2 + $0x30] sm:$0xff]  ;;  %v220_v10 = vld [vmem:[%s8940_s2 + $0x40] sm:$0xff] }
   0x4   :  { %v221_v9 = vld [vmem:[%s8940_s2 + $0x48] sm:$0xff]  ;;  %v223_v11 = vld [vmem:[%s8940_s2 + $0x58] sm:$0xff]  ;;  %v222_v12 = vld [vmem:[%s8940_s2 + $0x50] sm:$0xff] }
   0x5   :  { %v225_v13 = vld [vmem:[%s8940_s2 + $0x68] sm:$0xff]  ;;  %v224_v14 = vld [vmem:[%s8940_s2 + $0x60] sm:$0xff]  ;;  %v227_v15 = vld [vmem:[%s8940_s2 + $0x78] sm:$0xff] }
   0x6   :  { %256 = vperm.xlu1 %4079, %v215_v3   ;;  %246 = vperm.xlu0 %4078, %v213_v4   ;;  %v226_v16 = vld [vmem:[%s8940_s2 + $0x70] sm:$0xff]  ;;  %v229_v17 = vld [vmem:[%s8940_s2 + $0x88] sm:$0xff]  ;;  %v228_v18 = vld [vmem:[%s8940_s2 + $0x80] sm:$0xff] }
   0x7   :  { %v231_v19 = vld [vmem:[%s8940_s2 + $0x98] sm:$0xff]  ;;  %v230_v20 = vld [vmem:[%s8940_s2 + $0x90] sm:$0xff]  ;;  %v233_v21 = vld [vmem:[%s8940_s2 + $0xa8] sm:$0xff] }
   0x8   :  { %v232_v22 = vld [vmem:[%s8940_s2 + $0xa0] sm:$0xff]  ;;  %v235_v23 = vld [vmem:[%s8940_s2 + $0xb8] sm:$0xff]  ;;  %v234_v24 = vld [vmem:[%s8940_s2 + $0xb0] sm:$0xff] }
   0x9   :  { %v237_v25 = vld [vmem:[%s8940_s2 + $0xc8] sm:$0xff]  ;;  %v236_v26 = vld [vmem:[%s8940_s2 + $0xc0] sm:$0xff]  ;;  %v238_v27 = vld [vmem:[%s8940_s2 + $0xd0] sm:$0xff] }
   0xa   :  { %266 = vperm.xlu1 %4079, %v217_v5   ;;  %261 = vperm.xlu0 %4078, %v216_v6   ;;  %v564_v28 = vld [vmem:[%s8941_s3 + $0x8] sm:$0xff]  ;;  %v26_v30 = vld [vmem:[%s8942_s0 + $0x18] sm:$0xff]  ;;  %v31_v33 = vld [vmem:[%s8942_s0 + $0x40] sm:$0xff] }
   0xb   :  { %3772 = vmatprep.mubr.msk.f32.mxu0 %vm617_vm0, %v564_v28  ;;  %3799 = vmatprep.mubr.msk.f32.mxu1 %vm617_vm0, %v564_v28  ;;  %v24_v29 = vld [vmem:[%s8942_s0 + $0x8] sm:$0xff]  ;;  %v33_v34 = vld [vmem:[%s8942_s0 + $0x50] sm:$0xff]  ;;  %v23_v35 = vld [vmem:[%s8942_s0] sm:$0xff] }
   0xc   :  { %v25_v36 = vld [vmem:[%s8942_s0 + $0x10] sm:$0xff]  ;;  %v38_v37 = vld [vmem:[%s8942_s0 + $0x78] sm:$0xff]  ;;  %v40_v38 = vld [vmem:[%s8942_s0 + $0x88] sm:$0xff] }
   0xd   :  { %v37_v39 = vld [vmem:[%s8942_s0 + $0x70] sm:$0xff]  ;;  %v39_v40 = vld [vmem:[%s8942_s0 + $0x80] sm:$0xff]  ;;  %v30_v41 = vld [vmem:[%s8942_s0 + $0x38] sm:$0xff] }
   0xe   :  { %276 = vperm.xlu1 %4079, %v219_v7   ;;  %271 = vperm.xlu0 %4078, %v218_v8   ;;  %v32_v42 = vld [vmem:[%s8942_s0 + $0x48] sm:$0xff]  ;;  %v45_v43 = vld [vmem:[%s8942_s0 + $0xb0] sm:$0xff]  ;;  %v47_v48 = vld [vmem:[%s8942_s0 + $0xc0] sm:$0xff] }
   0xf   :  { %v44_v49 = vld [vmem:[%s8942_s0 + $0xa8] sm:$0xff]  ;;  %v46_v50 = vld [vmem:[%s8942_s0 + $0xb8] sm:$0xff]  ;;  %v59_v2 = vld [vmem:[%s8942_s0 + $0x120] sm:$0xff] }
  0x10   :  { %v52_v1 = vld [vmem:[%s8942_s0 + $0xe8] sm:$0xff]  ;;  %v54_v3 = vld [vmem:[%s8942_s0 + $0xf8] sm:$0xff]  ;;  %v61_v8 = vld [vmem:[%s8942_s0 + $0x130] sm:$0xff] }
  0x11   :  { %v65_v28 = vld [vmem:[%s8942_s0 + $0x150] sm:$0xff] }
  0x12   :  { %286 = vperm.xlu1 %4079, %v221_v9   ;;  %281 = vperm.xlu0 %4078, %v220_v10  }
  0x16   :  { %296 = vperm.xlu1 %4079, %v223_v11   ;;  %291 = vperm.xlu0 %4078, %v222_v12  }
  0x1a   :  { %306 = vperm.xlu1 %4079, %v225_v13   ;;  %301 = vperm.xlu0 %4078, %v224_v14   ;;  %v51_v13 = vld [vmem:[%s8942_s0 + $0xe0] sm:$0xff] }
  0x1e   :  { %316 = vperm.xlu1 %4079, %v227_v15   ;;  %311 = vperm.xlu0 %4078, %v226_v16  }
  0x22   :  { %326 = vperm.xlu1 %4079, %v229_v17   ;;  %321 = vperm.xlu0 %4078, %v228_v18   ;;  %v58_v17 = vld [vmem:[%s8942_s0 + $0x118] sm:$0xff]  ;;  %v53_v18 = vld [vmem:[%s8942_s0 + $0xf0] sm:$0xff] }
  0x26   :  { %336 = vperm.xlu1 %4079, %v231_v19   ;;  %331 = vperm.xlu0 %4078, %v230_v20   ;;  %v60_v19 = vld [vmem:[%s8942_s0 + $0x128] sm:$0xff] }
  0x2a   :  { %346 = vperm.xlu1 %4079, %v233_v21   ;;  %341 = vperm.xlu0 %4078, %v232_v22   ;;  %v66_v21 = vld [vmem:[%s8942_s0 + $0x158] sm:$0xff]  ;;  %v73_v22 = vld [vmem:[%s8942_s0 + $0x190] sm:$0xff] }
  0x2e   :  { %356 = vperm.xlu1 %4079, %v235_v23   ;;  %351 = vperm.xlu0 %4078, %v234_v24   ;;  %v68_v23 = vld [vmem:[%s8942_s0 + $0x168] sm:$0xff] }
  0x32   :  { %366 = vperm.xlu1 %4079, %v237_v25   ;;  %361 = vperm.xlu0 %4078, %v236_v26  }
  0x36   :  { %371 = vperm.xlu0 %4078, %v238_v27   ;;  %v75_v27 = vld [vmem:[%s8942_s0 + $0x1a0] sm:$0xff] }
  0x81   :  { %v4265_v31 = vpop.permute.xlu1 %251  ;;  %v4267_v32 = vpop.permute.xlu0 %241 }
  0x82   :  { %v375_v44 = vmul.f32 %v4267_v32, %v24_v29  ;;  %v377_v45 = vmul.f32 %v4267_v32, %v26_v30  ;;  %v374_v46 = vmul.f32 %v4267_v32, %v23_v35  ;;  %v376_v47 = vmul.f32 %v4267_v32, %v25_v36 }
  0x83   :  { %v389_v53 = vmul.f32 %v4265_v31, %v38_v37  ;;  %v391_v54 = vmul.f32 %v4265_v31, %v40_v38  ;;  %v388_v55 = vmul.f32 %v4265_v31, %v37_v39  ;;  %v390_v56 = vmul.f32 %v4265_v31, %v39_v40  ;;  %v72_v37 = vld [vmem:[%s8942_s0 + $0x188] sm:$0xff]  ;;  %v67_v38 = vld [vmem:[%s8942_s0 + $0x160] sm:$0xff]  ;;  %v74_v39 = vld [vmem:[%s8942_s0 + $0x198] sm:$0xff] }
  0x85   :  { %v4315_v51 = vpop.permute.xlu1 %256  ;;  %v4317_v52 = vpop.permute.xlu0 %246 }
  0x86   :  { %v382_v57 = vmul.f32 %v4317_v52, %v31_v33  ;;  %v384_v58 = vmul.f32 %v4317_v52, %v33_v34  ;;  %v381_v59 = vmul.f32 %v4317_v52, %v30_v41  ;;  %v383_v60 = vmul.f32 %v4317_v52, %v32_v42 }
  0x87   :  { %v396_v61 = vmul.f32 %v4315_v51, %v45_v43  ;;  %v398_v62 = vmul.f32 %v4315_v51, %v47_v48  ;;  %v395_v63 = vmul.f32 %v4315_v51, %v44_v49  ;;  %v397_v0 = vmul.f32 %v4315_v51, %v46_v50  ;;  %v82_v48 = vld [vmem:[%s8942_s0 + $0x1d8] sm:$0xff] }
  0x88   :  { %v3880_v4 = vpack.c.bf16 %v382_v57, %v375_v44  ;;  %v3932_v5 = vpack.c.bf16 %v384_v58, %v377_v45  ;;  %v3882_v6 = vpack.c.bf16 %v381_v59, %v374_v46  ;;  %v3934_v7 = vpack.c.bf16 %v383_v60, %v376_v47  ;;  %v80_v46 = vld [vmem:[%s8942_s0 + $0x1c8] sm:$0xff]  ;;  %v87_v47 = vld [vmem:[%s8942_s0 + $0x200] sm:$0xff] }
  0x89   :  { %v4343_v9 = vpop.permute.xlu1 %266  ;;  %v4345_v10 = vpop.permute.xlu0 %261  ;;  %v3884_v11 = vpack.c.bf16 %v396_v61, %v389_v53  ;;  %v3936_v12 = vpack.c.bf16 %v398_v62, %v391_v54  ;;  %v3886_v24 = vpack.c.bf16 %v395_v63, %v388_v55  ;;  %v3938_v25 = vpack.c.bf16 %v397_v0, %v390_v56  ;;  %v89_v54 = vld [vmem:[%s8942_s0 + $0x210] sm:$0xff]  ;;  %v79_v60 = vld [vmem:[%s8942_s0 + $0x1c0] sm:$0xff] }
  0x8a   :  { %3881 = vmatprep.subr.bf16.mxu0 %v3880_v4  ;;  %3933 = vmatprep.subr.bf16.mxu1 %v3932_v5  ;;  %v403_v14 = vmul.f32 %v4345_v10, %v52_v1  ;;  %v410_v15 = vmul.f32 %v4343_v9, %v59_v2  ;;  %v405_v16 = vmul.f32 %v4345_v10, %v54_v3  ;;  %v86_v1 = vld [vmem:[%s8942_s0 + $0x1f8] sm:$0xff]  ;;  %v81_v2 = vld [vmem:[%s8942_s0 + $0x1d0] sm:$0xff]  ;;  %v88_v3 = vld [vmem:[%s8942_s0 + $0x208] sm:$0xff] }
  0x8b   :  { %3883 = vmatpush1.bf16.msra.mxu0 %v3882_v6  ;;  %3935 = vmatpush1.bf16.msra.mxu1 %v3934_v7  ;;  %v412_v20 = vmul.f32 %v4343_v9, %v61_v8  ;;  %v402_v26 = vmul.f32 %v4345_v10, %v51_v13  ;;  %v409_v34 = vmul.f32 %v4343_v9, %v58_v17  ;;  %v94_v5 = vld [vmem:[%s8942_s0 + $0x238] sm:$0xff]  ;;  %v101_v6 = vld [vmem:[%s8942_s0 + $0x270] sm:$0xff]  ;;  %v96_v7 = vld [vmem:[%s8942_s0 + $0x248] sm:$0xff] }
  0x8c   :  { %3885 = vmatprep.subr.bf16.mxu0 %v3884_v11  ;;  %3937 = vmatprep.subr.bf16.mxu1 %v3936_v12  ;;  %v3888_v33 = vpack.c.bf16 %v410_v15, %v403_v14  ;;  %v404_v35 = vmul.f32 %v4345_v10, %v53_v18  ;;  %v411_v36 = vmul.f32 %v4343_v9, %v60_v19  ;;  %v103_v13 = vld [vmem:[%s8942_s0 + $0x280] sm:$0xff]  ;;  %v93_v14 = vld [vmem:[%s8942_s0 + $0x230] sm:$0xff] }
  0x8d   :  { %v4379_v29 = vpop.permute.xlu1 %276  ;;  %v4381_v30 = vpop.permute.xlu0 %271  ;;  %v3940_v40 = vpack.c.bf16 %v412_v20, %v405_v16  ;;  %v3890_v57 = vpack.c.bf16 %v409_v34, %v402_v26  ;;  %v108_v34 = vld [vmem:[%s8942_s0 + $0x2a8] sm:$0xff] }
  0x8e   :  { %v417_v41 = vmul.f32 %v4381_v30, %v66_v21  ;;  %v424_v42 = vmul.f32 %v4379_v29, %v73_v22  ;;  %v419_v43 = vmul.f32 %v4381_v30, %v68_v23  ;;  %v426_v44 = vmul.f32 %v4379_v29, %v75_v27  ;;  %v100_v21 = vld [vmem:[%s8942_s0 + $0x268] sm:$0xff]  ;;  %v95_v22 = vld [vmem:[%s8942_s0 + $0x240] sm:$0xff]  ;;  %v102_v23 = vld [vmem:[%s8942_s0 + $0x278] sm:$0xff] }
  0x8f   :  { %3887 = vmatpush1.bf16.msra.mxu0 %v3886_v24  ;;  %3939 = vmatpush1.bf16.msra.mxu1 %v3938_v25  ;;  %v416_v45 = vmul.f32 %v4381_v30, %v65_v28  ;;  %v423_v49 = vmul.f32 %v4379_v29, %v72_v37  ;;  %v418_v50 = vmul.f32 %v4381_v30, %v67_v38 }
  0x90   :  { %3889 = vmatprep.subr.bf16.mxu0 %v3888_v33  ;;  %3941 = vmatprep.subr.bf16.mxu1 %v3940_v40  ;;  %v425_v53 = vmul.f32 %v4379_v29, %v74_v39  ;;  %v3942_v58 = vpack.c.bf16 %v411_v36, %v404_v35  ;;  %v3892_v59 = vpack.c.bf16 %v424_v42, %v417_v41  ;;  %v115_v35 = vld [vmem:[%s8942_s0 + $0x2e0] sm:$0xff]  ;;  %v110_v36 = vld [vmem:[%s8942_s0 + $0x2b8] sm:$0xff]  ;;  %v117_v40 = vld [vmem:[%s8942_s0 + $0x2f0] sm:$0xff] }
  0x91   :  { %v4415_v55 = vpop.permute.xlu1 %286  ;;  %v4417_v56 = vpop.permute.xlu0 %281  ;;  %v3944_v61 = vpack.c.bf16 %v426_v44, %v419_v43  ;;  %v3894_v8 = vpack.c.bf16 %v423_v49, %v416_v45 }
  0x92   :  { %v431_v62 = vmul.f32 %v4417_v56, %v80_v46  ;;  %v438_v63 = vmul.f32 %v4415_v55, %v87_v47  ;;  %v433_v0 = vmul.f32 %v4417_v56, %v82_v48  ;;  %v440_v4 = vmul.f32 %v4415_v55, %v89_v54  ;;  %v107_v46 = vld [vmem:[%s8942_s0 + $0x2a0] sm:$0xff]  ;;  %v109_v54 = vld [vmem:[%s8942_s0 + $0x2b0] sm:$0xff] }
  0x93   :  { %3891 = vmatpush1.bf16.msra.mxu0 %v3890_v57  ;;  %3943 = vmatpush1.bf16.msra.mxu1 %v3942_v58  ;;  %v3946_v11 = vpack.c.bf16 %v425_v53, %v418_v50  ;;  %v430_v12 = vmul.f32 %v4417_v56, %v79_v60  ;;  %v437_v18 = vmul.f32 %v4415_v55, %v86_v1  ;;  %v114_v53 = vld [vmem:[%s8942_s0 + $0x2d8] sm:$0xff]  ;;  %v116_v57 = vld [vmem:[%s8942_s0 + $0x2e8] sm:$0xff]  ;;  %v129_v60 = vld [vmem:[%s8942_s0 + $0x350] sm:$0xff] }
  0x94   :  { %3893 = vmatprep.subr.bf16.mxu0 %v3892_v59  ;;  %3945 = vmatprep.subr.bf16.mxu1 %v3944_v61  ;;  %v3896_v17 = vpack.c.bf16 %v438_v63, %v431_v62  ;;  %v432_v19 = vmul.f32 %v4417_v56, %v81_v2  ;;  %v439_v20 = vmul.f32 %v4415_v55, %v88_v3  ;;  %v122_v59 = vld [vmem:[%s8942_s0 + $0x318] sm:$0xff]  ;;  %v124_v61 = vld [vmem:[%s8942_s0 + $0x328] sm:$0xff]  ;;  %v131_v1 = vld [vmem:[%s8942_s0 + $0x360] sm:$0xff] }
  0x95   :  { %v4451_v15 = vpop.permute.xlu1 %296  ;;  %v4453_v16 = vpop.permute.xlu0 %291  ;;  %v3948_v24 = vpack.c.bf16 %v440_v4, %v433_v0  ;;  %v3898_v43 = vpack.c.bf16 %v437_v18, %v430_v12  ;;  %v121_v2 = vld [vmem:[%s8942_s0 + $0x310] sm:$0xff]  ;;  %v123_v12 = vld [vmem:[%s8942_s0 + $0x320] sm:$0xff] }
  0x96   :  { %v445_v25 = vmul.f32 %v4453_v16, %v94_v5  ;;  %v452_v26 = vmul.f32 %v4451_v15, %v101_v6  ;;  %v447_v27 = vmul.f32 %v4453_v16, %v96_v7  ;;  %v454_v28 = vmul.f32 %v4451_v15, %v103_v13  ;;  %v130_v13 = vld [vmem:[%s8942_s0 + $0x358] sm:$0xff] }
  0x97   :  { %3895 = vmatpush1.bf16.msra.mxu0 %v3894_v8  ;;  %3947 = vmatpush1.bf16.msra.mxu1 %v3946_v11  ;;  %v444_v33 = vmul.f32 %v4453_v16, %v93_v14  ;;  %v451_v37 = vmul.f32 %v4451_v15, %v100_v21  ;;  %v446_v38 = vmul.f32 %v4453_v16, %v95_v22  ;;  %v128_v11 = vld [vmem:[%s8942_s0 + $0x348] sm:$0xff] }
  0x98   :  { %3897 = vmatprep.subr.bf16.mxu0 %v3896_v17  ;;  %3949 = vmatprep.subr.bf16.mxu1 %v3948_v24  ;;  %v453_v39 = vmul.f32 %v4451_v15, %v102_v23  ;;  %v3950_v44 = vpack.c.bf16 %v439_v20, %v432_v19  ;;  %v3900_v45 = vpack.c.bf16 %v452_v26, %v445_v25  ;;  %v136_v22 = vld [vmem:[%s8942_s0 + $0x388] sm:$0xff]  ;;  %v143_v23 = vld [vmem:[%s8942_s0 + $0x3c0] sm:$0xff]  ;;  %v138_v24 = vld [vmem:[%s8942_s0 + $0x398] sm:$0xff] }
  0x99   :  { %v4487_v41 = vpop.permute.xlu1 %306  ;;  %v4489_v42 = vpop.permute.xlu0 %301  ;;  %v3952_v47 = vpack.c.bf16 %v454_v28, %v447_v27  ;;  %v3902_v62 = vpack.c.bf16 %v451_v37, %v444_v33  ;;  %v145_v28 = vld [vmem:[%s8942_s0 + $0x3d0] sm:$0xff] }
  0x9a   :  { %v459_v48 = vmul.f32 %v4489_v42, %v108_v34  ;;  %v466_v49 = vmul.f32 %v4487_v41, %v115_v35  ;;  %v461_v50 = vmul.f32 %v4489_v42, %v110_v36  ;;  %v468_v58 = vmul.f32 %v4487_v41, %v117_v40 }
  0x9b   :  { %3899 = vmatpush1.bf16.msra.mxu0 %v3898_v43  ;;  %3951 = vmatpush1.bf16.msra.mxu1 %v3950_v44  ;;  %v3954_v63 = vpack.c.bf16 %v453_v39, %v446_v38  ;;  %v458_v0 = vmul.f32 %v4489_v42, %v107_v46  ;;  %v465_v6 = vmul.f32 %v4487_v41, %v114_v53  ;;  %v135_v38 = vld [vmem:[%s8942_s0 + $0x380] sm:$0xff]  ;;  %v137_v46 = vld [vmem:[%s8942_s0 + $0x390] sm:$0xff]  ;;  %v152_v53 = vld [vmem:[%s8942_s0 + $0x408] sm:$0xff] }
  0x9c   :  { %3901 = vmatprep.subr.bf16.mxu0 %v3900_v45  ;;  %3953 = vmatprep.subr.bf16.mxu1 %v3952_v47  ;;  %v3904_v5 = vpack.c.bf16 %v466_v49, %v459_v48  ;;  %v460_v7 = vmul.f32 %v4489_v42, %v109_v54  ;;  %v467_v8 = vmul.f32 %v4487_v41, %v116_v57  ;;  %v142_v45 = vld [vmem:[%s8942_s0 + $0x3b8] sm:$0xff]  ;;  %v144_v47 = vld [vmem:[%s8942_s0 + $0x3c8] sm:$0xff] }
  0x9d   :  { %v4523_v3 = vpop.permute.xlu1 %316  ;;  %v4525_v4 = vpop.permute.xlu0 %311  ;;  %v3956_v14 = vpack.c.bf16 %v468_v58, %v461_v50  ;;  %v3906_v35 = vpack.c.bf16 %v465_v6, %v458_v0  ;;  %v150_v49 = vld [vmem:[%s8942_s0 + $0x3f8] sm:$0xff]  ;;  %v157_v50 = vld [vmem:[%s8942_s0 + $0x430] sm:$0xff]  ;;  %v151_v6 = vld [vmem:[%s8942_s0 + $0x400] sm:$0xff] }
  0x9e   :  { %v473_v17 = vmul.f32 %v4525_v4, %v122_v59  ;;  %v480_v18 = vmul.f32 %v4523_v3, %v129_v60  ;;  %v475_v19 = vmul.f32 %v4525_v4, %v124_v61  ;;  %v482_v20 = vmul.f32 %v4523_v3, %v131_v1  ;;  %v159_v59 = vld [vmem:[%s8942_s0 + $0x440] sm:$0xff]  ;;  %v149_v60 = vld [vmem:[%s8942_s0 + $0x3f0] sm:$0xff] }
  0x9f   :  { %3903 = vmatpush1.bf16.msra.mxu0 %v3902_v62  ;;  %3955 = vmatpush1.bf16.msra.mxu1 %v3954_v63  ;;  %v472_v21 = vmul.f32 %v4525_v4, %v121_v2  ;;  %v479_v25 = vmul.f32 %v4523_v3, %v128_v11  ;;  %v474_v26 = vmul.f32 %v4525_v4, %v123_v12 }
  0xa0   :  { %3905 = vmatprep.subr.bf16.mxu0 %v3904_v5  ;;  %3957 = vmatprep.subr.bf16.mxu1 %v3956_v14  ;;  %v481_v27 = vmul.f32 %v4523_v3, %v130_v13  ;;  %v3958_v36 = vpack.c.bf16 %v467_v8, %v460_v7  ;;  %v3908_v37 = vpack.c.bf16 %v480_v18, %v473_v17  ;;  %v156_v5 = vld [vmem:[%s8942_s0 + $0x428] sm:$0xff]  ;;  %v158_v7 = vld [vmem:[%s8942_s0 + $0x438] sm:$0xff] }
  0xa1   :  { %v4559_v33 = vpop.permute.xlu1 %326  ;;  %v4561_v34 = vpop.permute.xlu0 %321  ;;  %v3960_v39 = vpack.c.bf16 %v482_v20, %v475_v19  ;;  %v3910_v54 = vpack.c.bf16 %v479_v25, %v472_v21  ;;  %v164_v18 = vld [vmem:[%s8942_s0 + $0x468] sm:$0xff]  ;;  %v171_v19 = vld [vmem:[%s8942_s0 + $0x4a0] sm:$0xff]  ;;  %v166_v20 = vld [vmem:[%s8942_s0 + $0x478] sm:$0xff] }
  0xa2   :  { %v487_v40 = vmul.f32 %v4561_v34, %v136_v22  ;;  %v494_v43 = vmul.f32 %v4559_v33, %v143_v23  ;;  %v489_v44 = vmul.f32 %v4561_v34, %v138_v24  ;;  %v496_v48 = vmul.f32 %v4559_v33, %v145_v28  ;;  %v173_v24 = vld [vmem:[%s8942_s0 + $0x4b0] sm:$0xff] }
  0xa3   :  { %3907 = vmatpush1.bf16.msra.mxu0 %v3906_v35  ;;  %3959 = vmatpush1.bf16.msra.mxu1 %v3958_v36  ;;  %v3962_v57 = vpack.c.bf16 %v481_v27, %v474_v26  ;;  %v486_v58 = vmul.f32 %v4561_v34, %v135_v38  ;;  %v493_v0 = vmul.f32 %v4559_v33, %v142_v45  ;;  %v163_v36 = vld [vmem:[%s8942_s0 + $0x460] sm:$0xff]  ;;  %v172_v45 = vld [vmem:[%s8942_s0 + $0x4a8] sm:$0xff] }
  0xa4   :  { %3909 = vmatprep.subr.bf16.mxu0 %v3908_v37  ;;  %3961 = vmatprep.subr.bf16.mxu1 %v3960_v39  ;;  %v3912_v63 = vpack.c.bf16 %v494_v43, %v487_v40  ;;  %v488_v1 = vmul.f32 %v4561_v34, %v137_v46  ;;  %v495_v2 = vmul.f32 %v4559_v33, %v144_v47  ;;  %v170_v43 = vld [vmem:[%s8942_s0 + $0x498] sm:$0xff] }
  0xa5   :  { %v4595_v61 = vpop.permute.xlu1 %336  ;;  %v4597_v62 = vpop.permute.xlu0 %331  ;;  %v3964_v8 = vpack.c.bf16 %v496_v48, %v489_v44  ;;  %v3914_v27 = vpack.c.bf16 %v493_v0, %v486_v58  ;;  %v165_v44 = vld [vmem:[%s8942_s0 + $0x470] sm:$0xff]  ;;  %v178_v47 = vld [vmem:[%s8942_s0 + $0x4d8] sm:$0xff] }
  0xa6   :  { %v501_v11 = vmul.f32 %v4597_v62, %v150_v49  ;;  %v508_v12 = vmul.f32 %v4595_v61, %v157_v50  ;;  %v503_v13 = vmul.f32 %v4597_v62, %v152_v53  ;;  %v510_v14 = vmul.f32 %v4595_v61, %v159_v59  ;;  %v185_v48 = vld [vmem:[%s8942_s0 + $0x510] sm:$0xff]  ;;  %v180_v49 = vld [vmem:[%s8942_s0 + $0x4e8] sm:$0xff] }
  0xa7   :  { %3911 = vmatpush1.bf16.msra.mxu0 %v3910_v54  ;;  %3963 = vmatpush1.bf16.msra.mxu1 %v3962_v57  ;;  %v500_v17 = vmul.f32 %v4597_v62, %v149_v60  ;;  %v507_v21 = vmul.f32 %v4595_v61, %v156_v5  ;;  %v502_v22 = vmul.f32 %v4597_v62, %v151_v6  ;;  %v187_v57 = vld [vmem:[%s8942_s0 + $0x520] sm:$0xff]  ;;  %v177_v58 = vld [vmem:[%s8942_s0 + $0x4d0] sm:$0xff]  ;;  %v184_v5 = vld [vmem:[%s8942_s0 + $0x508] sm:$0xff] }
  0xa8   :  { %3913 = vmatprep.subr.bf16.mxu0 %v3912_v63  ;;  %3965 = vmatprep.subr.bf16.mxu1 %v3964_v8  ;;  %v509_v23 = vmul.f32 %v4595_v61, %v158_v7  ;;  %v3966_v28 = vpack.c.bf16 %v495_v2, %v488_v1  ;;  %v3916_v35 = vpack.c.bf16 %v508_v12, %v501_v11  ;;  %v179_v6 = vld [vmem:[%s8942_s0 + $0x4e0] sm:$0xff]  ;;  %v186_v7 = vld [vmem:[%s8942_s0 + $0x518] sm:$0xff] }
  0xa9   :  { %v4631_v25 = vpop.permute.xlu1 %346  ;;  %v4633_v26 = vpop.permute.xlu0 %341  ;;  %v3968_v37 = vpack.c.bf16 %v510_v14, %v503_v13  ;;  %v3918_v50 = vpack.c.bf16 %v507_v21, %v500_v17 }
  0xaa   :  { %v515_v38 = vmul.f32 %v4633_v26, %v164_v18  ;;  %v522_v39 = vmul.f32 %v4631_v25, %v171_v19  ;;  %v517_v40 = vmul.f32 %v4633_v26, %v166_v20  ;;  %v524_v46 = vmul.f32 %v4631_v25, %v173_v24  ;;  %v192_v18 = vld [vmem:[%s8942_s0 + $0x548] sm:$0xff]  ;;  %v199_v19 = vld [vmem:[%s8942_s0 + $0x580] sm:$0xff]  ;;  %v194_v20 = vld [vmem:[%s8942_s0 + $0x558] sm:$0xff] }
  0xab   :  { %3915 = vmatpush1.bf16.msra.mxu0 %v3914_v27  ;;  %3967 = vmatpush1.bf16.msra.mxu1 %v3966_v28  ;;  %v3970_v53 = vpack.c.bf16 %v509_v23, %v502_v22  ;;  %v514_v54 = vmul.f32 %v4633_v26, %v163_v36  ;;  %v521_v0 = vmul.f32 %v4631_v25, %v170_v43  ;;  %v201_v24 = vld [vmem:[%s8942_s0 + $0x590] sm:$0xff] }
  0xac   :  { %3917 = vmatprep.subr.bf16.mxu0 %v3916_v35  ;;  %3969 = vmatprep.subr.bf16.mxu1 %v3968_v37  ;;  %v3920_v63 = vpack.c.bf16 %v522_v39, %v515_v38  ;;  %v516_v1 = vmul.f32 %v4633_v26, %v165_v44  ;;  %v523_v2 = vmul.f32 %v4631_v25, %v172_v45  ;;  %v191_v38 = vld [vmem:[%s8942_s0 + $0x540] sm:$0xff]  ;;  %v198_v45 = vld [vmem:[%s8942_s0 + $0x578] sm:$0xff] }
  0xad   :  { %v4667_v59 = vpop.permute.xlu1 %356  ;;  %v4669_v60 = vpop.permute.xlu0 %351  ;;  %v3972_v8 = vpack.c.bf16 %v524_v46, %v517_v40  ;;  %v3922_v35 = vpack.c.bf16 %v521_v0, %v514_v54  ;;  %v193_v46 = vld [vmem:[%s8942_s0 + $0x550] sm:$0xff] }
  0xae   :  { %v529_v11 = vmul.f32 %v4669_v60, %v178_v47  ;;  %v536_v12 = vmul.f32 %v4667_v59, %v185_v48  ;;  %v531_v13 = vmul.f32 %v4669_v60, %v180_v49  ;;  %v538_v14 = vmul.f32 %v4667_v59, %v187_v57  ;;  %v200_v47 = vld [vmem:[%s8942_s0 + $0x588] sm:$0xff] }
  0xaf   :  { %3919 = vmatpush1.bf16.msra.mxu0 %v3918_v50  ;;  %3971 = vmatpush1.bf16.msra.mxu1 %v3970_v53  ;;  %v528_v17 = vmul.f32 %v4669_v60, %v177_v58  ;;  %v535_v21 = vmul.f32 %v4667_v59, %v184_v5  ;;  %v530_v22 = vmul.f32 %v4669_v60, %v179_v6  ;;  %v208_v5 = vld [vmem:[%s8942_s0 + $0x5c8] sm:$0xff]  ;;  %v35_v6 = vld [vmem:[%s8942_s0 + $0x60] sm:$0xff] }
  0xb0   :  { %3921 = vmatprep.subr.bf16.mxu0 %v3920_v63  ;;  %3973 = vmatprep.subr.bf16.mxu1 %v3972_v8  ;;  %v537_v23 = vmul.f32 %v4667_v59, %v186_v7  ;;  %v3974_v36 = vpack.c.bf16 %v523_v2, %v516_v1  ;;  %v3924_v37 = vpack.c.bf16 %v536_v12, %v529_v11  ;;  %v206_v2 = vld [vmem:[%s8942_s0 + $0x5b8] sm:$0xff]  ;;  %v28_v7 = vld [vmem:[%s8942_s0 + $0x28] sm:$0xff] }
  0xb1   :  { %v4703_v27 = vpop.permute.xlu1 %366  ;;  %v4705_v28 = vpop.permute.xlu0 %361  ;;  %v3976_v39 = vpack.c.bf16 %v538_v14, %v531_v13  ;;  %v3926_v49 = vpack.c.bf16 %v535_v21, %v528_v17  ;;  %v34_v12 = vld [vmem:[%s8942_s0 + $0x58] sm:$0xff]  ;;  %v36_v13 = vld [vmem:[%s8942_s0 + $0x68] sm:$0xff]  ;;  %v386_v21 = vmul.f32 %v4317_v52, %v35_v6  ;;  %v55_v6 = vld [vmem:[%s8942_s0 + $0x100] sm:$0xff] }
  0xb2   :  { %v543_v40 = vmul.f32 %v4705_v28, %v192_v18  ;;  %v550_v43 = vmul.f32 %v4703_v27, %v199_v19  ;;  %v545_v44 = vmul.f32 %v4705_v28, %v194_v20  ;;  %v552_v48 = vmul.f32 %v4703_v27, %v201_v24  ;;  %v42_v14 = vld [vmem:[%s8942_s0 + $0x98] sm:$0xff]  ;;  %v205_v19 = vld [vmem:[%s8942_s0 + $0x5b0] sm:$0xff]  ;;  %v207_v20 = vld [vmem:[%s8942_s0 + $0x5c0] sm:$0xff] }
  0xb3   :  { %3923 = vmatpush1.bf16.msra.mxu0 %v3922_v35  ;;  %3975 = vmatpush1.bf16.msra.mxu1 %v3974_v36  ;;  %v3978_v50 = vpack.c.bf16 %v537_v23, %v530_v22  ;;  %v542_v53 = vmul.f32 %v4705_v28, %v191_v38  ;;  %v549_v54 = vmul.f32 %v4703_v27, %v198_v45  ;;  %v49_v22 = vld [vmem:[%s8942_s0 + $0xd0] sm:$0xff]  ;;  %v27_v23 = vld [vmem:[%s8942_s0 + $0x20] sm:$0xff] }
  0xb4   :  { %3925 = vmatprep.subr.bf16.mxu0 %v3924_v37  ;;  %3977 = vmatprep.subr.bf16.mxu1 %v3976_v39  ;;  %v544_v57 = vmul.f32 %v4705_v28, %v193_v46  ;;  %v551_v58 = vmul.f32 %v4703_v27, %v200_v47  ;;  %v3928_v63 = vpack.c.bf16 %v550_v43, %v543_v40  ;;  %v29_v24 = vld [vmem:[%s8942_s0 + $0x30] sm:$0xff]  ;;  %v48_v39 = vld [vmem:[%s8942_s0 + $0xc8] sm:$0xff]  ;;  %v43_v40 = vld [vmem:[%s8942_s0 + $0xa0] sm:$0xff] }
  0xb5   :  { %v3980_v0 = vpack.c.bf16 %v552_v48, %v545_v44  ;;  %v4727_v1 = vpop.permute.xlu0 %371  ;;  %v3930_v8 = vpack.c.bf16 %v549_v54, %v542_v53  ;;  %v41_v35 = vld [vmem:[%s8942_s0 + $0x90] sm:$0xff]  ;;  %v379_v36 = vmul.f32 %v4267_v32, %v28_v7  ;;  %v385_v37 = vmul.f32 %v4317_v52, %v34_v12  ;;  %v50_v43 = vld [vmem:[%s8942_s0 + $0xd8] sm:$0xff]  ;;  %v56_v54 = vld [vmem:[%s8942_s0 + $0x108] sm:$0xff] }
  0xb6   :  { %v3982_v11 = vpack.c.bf16 %v551_v58, %v544_v57  ;;  %v557_v17 = vmul.f32 %v4727_v1, %v206_v2  ;;  %v559_v18 = vmul.f32 %v4727_v1, %v208_v5  ;;  %v387_v38 = vmul.f32 %v4317_v52, %v36_v13  ;;  %v4788_v52 = vld [vmem:[%s8941_s3] sm:$0xff]  ;;  %v4808_v5 = vld [vmem:[%s8941_s3 + $0x18] sm:$0xff]  ;;  %v57_v13 = vld [vmem:[%s8942_s0 + $0x110] sm:$0xff] }
  0xb7   :  { %3927 = vmatpush1.bf16.msra.mxu0 %v3926_v49  ;;  %3979 = vmatpush1.bf16.msra.mxu1 %v3978_v50  ;;  %v556_v44 = vmul.f32 %v4727_v1, %v205_v19  ;;  %v558_v45 = vmul.f32 %v4727_v1, %v207_v20  ;;  %v393_v46 = vmul.f32 %v4265_v31, %v42_v14  ;;  %v63_v57 = vld [vmem:[%s8942_s0 + $0x140] sm:$0xff]  ;;  %v4136_v7 = vmov 0.0|0.0   ;;  %v64_v14 = vld [vmem:[%s8942_s0 + $0x148] sm:$0xff]  ;;  %v77_v19 = vld [vmem:[%s8942_s0 + $0x1b0] sm:$0xff] }
  0xb8   :  { %3929 = vmatprep.subr.bf16.mxu0 %v3928_v63  ;;  %3981 = vmatprep.subr.bf16.mxu1 %v3980_v0  ;;  %v400_v47 = vmul.f32 %v4315_v51, %v49_v22  ;;  %v3984_v48 = vpack.c.bf16 %v386_v21, %v379_v36  ;;  %v378_v49 = vmul.f32 %v4267_v32, %v27_v23  ;;  %v69_v23 = vld [vmem:[%s8942_s0 + $0x170] sm:$0xff] }
  0xb9   :  { %v380_v50 = vmul.f32 %v4267_v32, %v29_v24  ;;  %v392_v53 = vmul.f32 %v4265_v31, %v41_v35  ;;  %v399_v58 = vmul.f32 %v4315_v51, %v48_v39  ;;  %v394_v63 = vmul.f32 %v4265_v31, %v43_v40  ;;  %v62_v31 = vld [vmem:[%s8942_s0 + $0x138] sm:$0xff] }
  0xba   :  { %v401_v0 = vmul.f32 %v4315_v51, %v50_v43  ;;  %v3986_v32 = vpack.c.bf16 %v385_v37, %v378_v49  ;;  %v3988_v51 = vpack.c.bf16 %v400_v47, %v393_v46  ;;  %v414_v12 = vmul.f32 %v4343_v9, %v63_v57  ;;  %v76_v37 = vld [vmem:[%s8942_s0 + $0x1a8] sm:$0xff]  ;;  %v78_v39 = vld [vmem:[%s8942_s0 + $0x1b8] sm:$0xff]  ;;  %v91_v47 = vld [vmem:[%s8942_s0 + $0x220] sm:$0xff] }
  0xbb   :  { %3931 = vmatpush1.bf16.msra.mxu0 %v3930_v8  ;;  %3983 = vmatpush1.bf16.msra.mxu1 %v3982_v11  ;;  %v4037_v2 = vpack.c.bf16 %v387_v38, %v380_v50  ;;  %v4821_v8 = vld [vmem:[%s8941_s3 + $0x10] sm:$0xff]  ;;  %v407_v11 = vmul.f32 %v4345_v10, %v56_v54  ;;  %v3990_v20 = vpack.c.bf16 %v399_v58, %v392_v53  ;;  %v71_v38 = vld [vmem:[%s8942_s0 + $0x180] sm:$0xff]  ;;  %v84_v46 = vld [vmem:[%s8942_s0 + $0x1e8] sm:$0xff] }
  0xbc   :  { %751 = vmatprep.subr.mxu0 %v557_v17  ;;  %978 = vmatprep.subr.mxu1 %v559_v18  ;;  %v4834_v17 = vld [vmem:[%s8941_s3 + $0x28] sm:$0xff]  ;;  %v70_v18 = vld [vmem:[%s8942_s0 + $0x178] sm:$0xff]  ;;  %v4040_v21 = vpack.c.bf16 %v401_v0, %v394_v63  ;;  %v406_v22 = vmul.f32 %v4345_v10, %v55_v6  ;;  %v413_v24 = vmul.f32 %v4343_v9, %v62_v31  ;;  %v83_v57 = vld [vmem:[%s8942_s0 + $0x1e0] sm:$0xff] }
  0xbd   :  { %v408_v35 = vmul.f32 %v4345_v10, %v57_v13  ;;  %v415_v36 = vmul.f32 %v4343_v9, %v64_v14  ;;  %v3992_v40 = vpack.c.bf16 %v414_v12, %v407_v11  ;;  %v4869_v9 = vld [vmem:[%s8941_s3 + $0x20] sm:$0xff]  ;;  %v421_v10 = vmul.f32 %v4381_v30, %v70_v18  ;;  %v90_v58 = vld [vmem:[%s8942_s0 + $0x218] sm:$0xff]  ;;  %v4917_v6 = vld [vmem:[%s8941_s3 + $0x48] sm:$0xff] }
  0xbe   :  { %v428_v43 = vmul.f32 %v4379_v29, %v77_v19  ;;  %v422_v49 = vmul.f32 %v4381_v30, %v71_v38  ;;  %v429_v50 = vmul.f32 %v4379_v29, %v78_v39  ;;  %v3994_v53 = vpack.c.bf16 %v413_v24, %v406_v22  ;;  %v98_v31 = vld [vmem:[%s8942_s0 + $0x258] sm:$0xff]  ;;  %v97_v14 = vld [vmem:[%s8942_s0 + $0x250] sm:$0xff]  ;;  %v99_v22 = vld [vmem:[%s8942_s0 + $0x260] sm:$0xff] }
  0xbf   :  { %752 = vmatpush1.msra.mxu0 %v556_v44  ;;  %979 = vmatpush1.msra.mxu1 %v558_v45  ;;  %v4876_v44 = vld [vmem:[%s8941_s3 + $0x38] sm:$0xff]  ;;  %v420_v45 = vmul.f32 %v4381_v30, %v69_v23  ;;  %v4043_v54 = vpack.c.bf16 %v415_v36, %v408_v35  ;;  %v435_v63 = vmul.f32 %v4417_v56, %v84_v46  ;;  %v112_v38 = vld [vmem:[%s8942_s0 + $0x2c8] sm:$0xff]  ;;  %v119_v39 = vld [vmem:[%s8942_s0 + $0x300] sm:$0xff] }
  0xc0   :  { %764 = vmatmul.mubr.f32.vlgmr.msra.gmra.mrb[0].mxu0 %v4788_v52  ;;  %3985 = vmatprep.subr.bf16.mxu0 %v3984_v48  ;;  %v427_v48 = vmul.f32 %v4379_v29, %v76_v37  ;;  %v3996_v30 = vpack.c.bf16 %v428_v43, %v421_v10  ;;  %v4904_v29 = vld [vmem:[%s8941_s3 + $0x30] sm:$0xff]  ;;  %v442_v0 = vmul.f32 %v4415_v55, %v91_v47  ;;  %v106_v23 = vld [vmem:[%s8942_s0 + $0x298] sm:$0xff]  ;;  %v111_v47 = vld [vmem:[%s8942_s0 + $0x2c0] sm:$0xff] }
  0xc1   :  { %4036 = vmatprep.subr.bf16.mxu1 %v4136_v7  ;;  %991 = vmatmul.mubr.f32.vlgmr.msra.gmra.mrb[0].mxu1 %v4788_v52  ;;  %v4046_v12 = vpack.c.bf16 %v429_v50, %v422_v49  ;;  %v434_v13 = vmul.f32 %v4417_v56, %v83_v57  ;;  %v441_v18 = vmul.f32 %v4415_v55, %v90_v58  ;;  %v4958_v36 = vld [vmem:[%s8941_s3 + $0x58] sm:$0xff]  ;;  %v4999_v57 = vld [vmem:[%s8941_s3 + $0x68] sm:$0xff] }
  0xc2   :  { %3987 = vmatpush1.bf16.msra.mxu0 %v3986_v32  ;;  %4038 = vmatpush1.bf16.msra.mxu1 %v4037_v2  ;;  %v85_v32 = vld [vmem:[%s8942_s0 + $0x1f0] sm:$0xff]  ;;  %v92_v2 = vld [vmem:[%s8942_s0 + $0x228] sm:$0xff]  ;;  %v3998_v11 = vpack.c.bf16 %v427_v48, %v420_v45  ;;  %v4000_v24 = vpack.c.bf16 %v442_v0, %v435_v63  ;;  %v448_v37 = vmul.f32 %v4453_v16, %v97_v14  ;;  %v118_v48 = vld [vmem:[%s8942_s0 + $0x2f8] sm:$0xff] }
  0xc3   :  { %3989 = vmatprep.subr.bf16.mxu0 %v3988_v51  ;;  %3773 = vmatprep.mubr.msk.f32.mxu0 %vm617_vm0, %v4808_v5  ;;  %v105_v51 = vld [vmem:[%s8942_s0 + $0x290] sm:$0xff]  ;;  %v436_v19 = vmul.f32 %v4417_v56, %v85_v32  ;;  %v449_v56 = vmul.f32 %v4453_v16, %v98_v31  ;;  %v450_v10 = vmul.f32 %v4453_v16, %v99_v22  ;;  %v126_v58 = vld [vmem:[%s8942_s0 + $0x338] sm:$0xff]  ;;  %v140_v22 = vld [vmem:[%s8942_s0 + $0x3a8] sm:$0xff] }
  0xc4   :  { %770 = vmatmul.mubr.f32.gmra.mrb[2].mxu0 %v4821_v8  ;;  %4039 = vmatprep.subr.bf16.mxu1 %v4136_v7  ;;  %v456_v35 = vmul.f32 %v4451_v15, %v105_v51  ;;  %v457_v43 = vmul.f32 %v4451_v15, %v106_v23  ;;  %v4002_v45 = vpack.c.bf16 %v441_v18, %v434_v13  ;;  %v127_v13 = vld [vmem:[%s8942_s0 + $0x340] sm:$0xff]  ;;  %v134_v14 = vld [vmem:[%s8942_s0 + $0x378] sm:$0xff] }
  0xc5   :  { %3800 = vmatprep.mubr.msk.f32.mxu1 %vm617_vm0, %v4808_v5  ;;  %3774 = vmatprep.mubr.msk.f32.mxu0 %vm617_vm0, %v4834_v17  ;;  %v463_v49 = vmul.f32 %v4489_v42, %v112_v38  ;;  %v470_v50 = vmul.f32 %v4487_v41, %v119_v39  ;;  %v462_v32 = vmul.f32 %v4489_v42, %v111_v47  ;;  %v147_v23 = vld [vmem:[%s8942_s0 + $0x3e0] sm:$0xff]  ;;  %v5081_v47 = vld [vmem:[%s8941_s3 + $0x88] sm:$0xff] }
  0xc6   :  { %3991 = vmatpush1.bf16.msra.mxu0 %v3990_v20  ;;  %4041 = vmatpush1.bf16.msra.mxu1 %v4040_v21  ;;  %v443_v20 = vmul.f32 %v4415_v55, %v92_v2  ;;  %v104_v21 = vld [vmem:[%s8942_s0 + $0x288] sm:$0xff]  ;;  %v4951_v55 = vld [vmem:[%s8941_s3 + $0x40] sm:$0xff]  ;;  %v4004_v16 = vpack.c.bf16 %v456_v35, %v449_v56  ;;  %v4052_v0 = vpack.c.bf16 %v457_v43, %v450_v10  ;;  %v125_v2 = vld [vmem:[%s8942_s0 + $0x330] sm:$0xff] }
  0xc7   :  { %3993 = vmatprep.subr.bf16.mxu0 %v3992_v40  ;;  %997 = vmatmul.mubr.f32.gmra.mrb[2].mxu1 %v4821_v8  ;;  %v455_v40 = vmul.f32 %v4451_v15, %v104_v21  ;;  %v4986_v15 = vld [vmem:[%s8941_s3 + $0x50] sm:$0xff]  ;;  %v469_v31 = vmul.f32 %v4487_v41, %v118_v48  ;;  %v4008_v18 = vpack.c.bf16 %v470_v50, %v463_v49  ;;  %v139_v39 = vld [vmem:[%s8942_s0 + $0x3a0] sm:$0xff]  ;;  %v154_v48 = vld [vmem:[%s8942_s0 + $0x418] sm:$0xff] }
  0xc8   :  { %776 = vmatmul.mubr.f32.gmra.mrb[4].mxu0 %v4869_v9  ;;  %4042 = vmatprep.subr.bf16.mxu1 %v4136_v7  ;;  %v4049_v46 = vpack.c.bf16 %v443_v20, %v436_v19  ;;  %v5040_v20 = vld [vmem:[%s8941_s3 + $0x78] sm:$0xff]  ;;  %v476_v21 = vmul.f32 %v4525_v4, %v125_v2  ;;  %v478_v56 = vmul.f32 %v4525_v4, %v127_v13  ;;  %v168_v13 = vld [vmem:[%s8942_s0 + $0x488] sm:$0xff] }
  0xc9   :  { %3801 = vmatprep.mubr.msk.f32.mxu1 %vm617_vm0, %v4834_v17  ;;  %3775 = vmatprep.mubr.msk.f32.mxu0 %vm617_vm0, %v4876_v44  ;;  %v4006_v63 = vpack.c.bf16 %v455_v40, %v448_v37  ;;  %v485_v35 = vmul.f32 %v4523_v3, %v134_v14  ;;  %v4010_v37 = vpack.c.bf16 %v469_v31, %v462_v32  ;;  %v146_v40 = vld [vmem:[%s8942_s0 + $0x3d8] sm:$0xff]  ;;  %v155_v32 = vld [vmem:[%s8942_s0 + $0x420] sm:$0xff] }
  0xca   :  { %3995 = vmatpush1.bf16.msra.mxu0 %v3994_v53  ;;  %4044 = vmatpush1.bf16.msra.mxu1 %v4043_v54  ;;  %v113_v53 = vld [vmem:[%s8942_s0 + $0x2d0] sm:$0xff]  ;;  %v120_v54 = vld [vmem:[%s8942_s0 + $0x308] sm:$0xff]  ;;  %v491_v10 = vmul.f32 %v4561_v34, %v140_v22  ;;  %v498_v43 = vmul.f32 %v4559_v33, %v147_v23  ;;  %v162_v2 = vld [vmem:[%s8942_s0 + $0x458] sm:$0xff] }
  0xcb   :  { %3997 = vmatprep.subr.bf16.mxu0 %v3996_v30  ;;  %1003 = vmatmul.mubr.f32.gmra.mrb[4].mxu1 %v4869_v9  ;;  %v133_v30 = vld [vmem:[%s8942_s0 + $0x370] sm:$0xff]  ;;  %v464_v51 = vmul.f32 %v4489_v42, %v113_v53  ;;  %v477_v42 = vmul.f32 %v4525_v4, %v126_v58  ;;  %v4058_v50 = vpack.c.bf16 %v485_v35, %v478_v56  ;;  %v175_v14 = vld [vmem:[%s8942_s0 + $0x4c0] sm:$0xff] }
  0xcc   :  { %782 = vmatmul.mubr.f32.gmra.mrb[6].mxu0 %v4904_v29  ;;  %4045 = vmatprep.subr.bf16.mxu1 %v4136_v7  ;;  %v484_v19 = vmul.f32 %v4523_v3, %v133_v30  ;;  %v490_v53 = vmul.f32 %v4561_v34, %v139_v39  ;;  %v497_v58 = vmul.f32 %v4559_v33, %v146_v40  ;;  %v167_v23 = vld [vmem:[%s8942_s0 + $0x480] sm:$0xff]  ;;  %v5163_v39 = vld [vmem:[%s8941_s3 + $0xa8] sm:$0xff]  ;;  %v182_v40 = vld [vmem:[%s8942_s0 + $0x4f8] sm:$0xff] }
  0xcd   :  { %3802 = vmatprep.mubr.msk.f32.mxu1 %vm617_vm0, %v4876_v44  ;;  %3776 = vmatprep.mubr.msk.f32.mxu0 %vm617_vm0, %v4917_v6  ;;  %v4016_v31 = vpack.c.bf16 %v498_v43, %v491_v10  ;;  %v519_v56 = vmul.f32 %v4633_v26, %v168_v13  ;;  %v526_v35 = vmul.f32 %v4631_v25, %v175_v14  ;;  %v195_v14 = vld [vmem:[%s8942_s0 + $0x560] sm:$0xff] }
  0xce   :  { %3999 = vmatpush1.bf16.msra.mxu0 %v3998_v11  ;;  %4047 = vmatpush1.bf16.msra.mxu1 %v4046_v12  ;;  %v471_v11 = vmul.f32 %v4487_v41, %v120_v54  ;;  %v132_v12 = vld [vmem:[%s8942_s0 + $0x368] sm:$0xff]  ;;  %v5033_v41 = vld [vmem:[%s8941_s3 + $0x60] sm:$0xff]  ;;  %v4012_v4 = vpack.c.bf16 %v484_v19, %v477_v42  ;;  %v153_v54 = vld [vmem:[%s8942_s0 + $0x410] sm:$0xff]  ;;  %v506_v42 = vmul.f32 %v4597_v62, %v155_v32 }
  0xcf   :  { %4001 = vmatprep.subr.bf16.mxu0 %v4000_v24  ;;  %1009 = vmatmul.mubr.f32.gmra.mrb[6].mxu1 %v4904_v29  ;;  %v483_v24 = vmul.f32 %v4523_v3, %v132_v12  ;;  %v5068_v3 = vld [vmem:[%s8941_s3 + $0x70] sm:$0xff]  ;;  %v504_v12 = vmul.f32 %v4597_v62, %v153_v54  ;;  %v513_v19 = vmul.f32 %v4595_v61, %v162_v2  ;;  %v190_v54 = vld [vmem:[%s8942_s0 + $0x538] sm:$0xff]  ;;  %v196_v32 = vld [vmem:[%s8942_s0 + $0x568] sm:$0xff] }
  0xd0   :  { %788 = vmatmul.mubr.f32.gmra.mrb[8].mxu0 %v4951_v55  ;;  %4048 = vmatprep.subr.bf16.mxu1 %v4136_v7  ;;  %v4055_v38 = vpack.c.bf16 %v471_v11, %v464_v51  ;;  %v5122_v11 = vld [vmem:[%s8941_s3 + $0x98] sm:$0xff]  ;;  %v203_v2 = vld [vmem:[%s8942_s0 + $0x5a0] sm:$0xff] }
  0xd1   :  { %3803 = vmatprep.mubr.msk.f32.mxu1 %vm617_vm0, %v4917_v6  ;;  %3777 = vmatprep.mubr.msk.f32.mxu0 %vm617_vm0, %v4958_v36  ;;  %v4014_v49 = vpack.c.bf16 %v483_v24, %v476_v21  ;;  %v4018_v21 = vpack.c.bf16 %v497_v58, %v490_v53  ;;  %v174_v24 = vld [vmem:[%s8942_s0 + $0x4b8] sm:$0xff]  ;;  %v4064_v43 = vpack.c.bf16 %v513_v19, %v506_v42  ;;  %v183_v53 = vld [vmem:[%s8942_s0 + $0x500] sm:$0xff] }
  0xd2   :  { %4003 = vmatpush1.bf16.msra.mxu0 %v4002_v45  ;;  %4050 = vmatpush1.bf16.msra.mxu1 %v4049_v46  ;;  %v141_v45 = vld [vmem:[%s8942_s0 + $0x3b0] sm:$0xff]  ;;  %v148_v46 = vld [vmem:[%s8942_s0 + $0x3e8] sm:$0xff]  ;;  %v4024_v58 = vpack.c.bf16 %v526_v35, %v519_v56  ;;  %v547_v42 = vmul.f32 %v4705_v28, %v196_v32  ;;  %v554_v19 = vmul.f32 %v4703_v27, %v203_v2 }
  0xd3   :  { %4005 = vmatprep.subr.bf16.mxu0 %v4004_v16  ;;  %1015 = vmatmul.mubr.f32.gmra.mrb[8].mxu1 %v4951_v55  ;;  %v161_v16 = vld [vmem:[%s8942_s0 + $0x450] sm:$0xff]  ;;  %v492_v30 = vmul.f32 %v4561_v34, %v141_v45  ;;  %v505_v34 = vmul.f32 %v4597_v62, %v154_v48  ;;  %v518_v45 = vmul.f32 %v4633_v26, %v167_v23  ;;  %v5245_v23 = vld [vmem:[%s8941_s3 + $0xc8] sm:$0xff] }
  0xd4   :  { %794 = vmatmul.mubr.f32.gmra.mrb[10].mxu0 %v4986_v15  ;;  %4051 = vmatprep.subr.bf16.mxu1 %v4136_v7  ;;  %v512_v51 = vmul.f32 %v4595_v61, %v161_v16  ;;  %v525_v48 = vmul.f32 %v4631_v25, %v174_v24  ;;  %v546_v56 = vmul.f32 %v4705_v28, %v195_v14  ;;  %v5354_v32 = vld [vmem:[%s8941_s3 + $0x110] sm:$0xff]  ;;  %v5359_v2 = vld [vmem:[%s8941_s3 + $0x128] sm:$0xff]  ;;  %v5407_v14 = vld [vmem:[%s8941_s3 + $0x158] sm:$0xff] }
  0xd5   :  { %3804 = vmatprep.mubr.msk.f32.mxu1 %vm617_vm0, %v4958_v36  ;;  %3778 = vmatprep.mubr.msk.f32.mxu0 %vm617_vm0, %v4999_v57 }
  0xd6   :  { %4007 = vmatpush1.bf16.msra.mxu0 %v4006_v63  ;;  %4053 = vmatpush1.bf16.msra.mxu1 %v4052_v0  ;;  %v499_v63 = vmul.f32 %v4559_v33, %v148_v46  ;;  %v160_v0 = vld [vmem:[%s8942_s0 + $0x448] sm:$0xff]  ;;  %v5115_v33 = vld [vmem:[%s8941_s3 + $0x80] sm:$0xff]  ;;  %v4020_v62 = vpack.c.bf16 %v512_v51, %v505_v34  ;;  %v181_v46 = vld [vmem:[%s8942_s0 + $0x4f0] sm:$0xff]  ;;  %v534_v34 = vmul.f32 %v4669_v60, %v183_v53 }
  0xd7   :  { %4009 = vmatprep.subr.bf16.mxu0 %v4008_v18  ;;  %1021 = vmatmul.mubr.f32.gmra.mrb[10].mxu1 %v4986_v15  ;;  %v511_v18 = vmul.f32 %v4595_v61, %v160_v0  ;;  %v5150_v61 = vld [vmem:[%s8941_s3 + $0x90] sm:$0xff]  ;;  %v532_v0 = vmul.f32 %v4669_v60, %v181_v46  ;;  %v541_v51 = vmul.f32 %v4667_v59, %v190_v54  ;;  %v5306_v54 = vld [vmem:[%s8941_s3 + $0xe0] sm:$0xff] }
  0xd8   :  { %800 = vmatmul.mubr.f32.gmra.mrb[12].mxu0 %v5033_v41  ;;  %4054 = vmatprep.subr.bf16.mxu1 %v4136_v7  ;;  %v4061_v22 = vpack.c.bf16 %v499_v63, %v492_v30  ;;  %v5204_v63 = vld [vmem:[%s8941_s3 + $0xb8] sm:$0xff]  ;;  %v5282_v46 = vld [vmem:[%s8941_s3 + $0xd0] sm:$0xff] }
  0xd9   :  { %3805 = vmatprep.mubr.msk.f32.mxu1 %vm617_vm0, %v4999_v57  ;;  %3779 = vmatprep.mubr.msk.f32.mxu0 %vm617_vm0, %v5040_v20  ;;  %v4022_v10 = vpack.c.bf16 %v511_v18, %v504_v12  ;;  %v4026_v12 = vpack.c.bf16 %v525_v48, %v518_v45  ;;  %v202_v18 = vld [vmem:[%s8942_s0 + $0x598] sm:$0xff]  ;;  %v209_v48 = vld [vmem:[%s8942_s0 + $0x5d0] sm:$0xff] }
  0xda   :  { %4011 = vmatpush1.bf16.msra.mxu0 %v4010_v37  ;;  %4056 = vmatpush1.bf16.msra.mxu1 %v4055_v38  ;;  %v169_v37 = vld [vmem:[%s8942_s0 + $0x490] sm:$0xff]  ;;  %v176_v38 = vld [vmem:[%s8942_s0 + $0x4c8] sm:$0xff]  ;;  %v553_v35 = vmul.f32 %v4703_v27, %v202_v18 }
  0xdb   :  { %4013 = vmatprep.subr.bf16.mxu0 %v4012_v4  ;;  %1027 = vmatmul.mubr.f32.gmra.mrb[12].mxu1 %v5033_v41  ;;  %v189_v4 = vld [vmem:[%s8942_s0 + $0x530] sm:$0xff]  ;;  %v520_v16 = vmul.f32 %v4633_v26, %v169_v37  ;;  %v533_v26 = vmul.f32 %v4669_v60, %v182_v40  ;;  %v4032_v40 = vpack.c.bf16 %v554_v19, %v547_v42  ;;  %v5434_v42 = vld [vmem:[%s8941_s3 + $0x160] sm:$0xff]  ;;  %v5439_v19 = vld [vmem:[%s8941_s3 + $0x178] sm:$0xff] }
  0xdc   :  { %806 = vmatmul.mubr.f32.gmra.mrb[14].mxu0 %v5068_v3  ;;  %4057 = vmatprep.subr.bf16.mxu1 %v4136_v7  ;;  %v540_v30 = vmul.f32 %v4667_v59, %v189_v4  ;;  %v5261_v4 = vld [vmem:[%s8941_s3 + $0xc0] sm:$0xff]  ;;  %v5418_v18 = vld [vmem:[%s8941_s3 + $0x150] sm:$0xff] }
  0xdd   :  { %3806 = vmatprep.mubr.msk.f32.mxu1 %vm617_vm0, %v5040_v20  ;;  %3780 = vmatprep.mubr.msk.f32.mxu0 %vm617_vm0, %v5081_v47 }
  0xde   :  { %4015 = vmatpush1.bf16.msra.mxu0 %v4014_v49  ;;  %4059 = vmatpush1.bf16.msra.mxu1 %v4058_v50  ;;  %v527_v49 = vmul.f32 %v4631_v25, %v176_v38  ;;  %v188_v50 = vld [vmem:[%s8942_s0 + $0x528] sm:$0xff]  ;;  %v5197_v25 = vld [vmem:[%s8941_s3 + $0xa0] sm:$0xff]  ;;  %v4028_v60 = vpack.c.bf16 %v540_v30, %v533_v26 }
  0xdf   :  { %4017 = vmatprep.subr.bf16.mxu0 %v4016_v31  ;;  %1033 = vmatmul.mubr.f32.gmra.mrb[14].mxu1 %v5068_v3  ;;  %v539_v31 = vmul.f32 %v4667_v59, %v188_v50  ;;  %v5232_v59 = vld [vmem:[%s8941_s3 + $0xb0] sm:$0xff]  ;;  %v560_v50 = vmul.f32 %v4727_v1, %v209_v48  ;;  %v5327_v26 = vld [vmem:[%s8941_s3 + $0x108] sm:$0xff]  ;;  %v5338_v30 = vld [vmem:[%s8941_s3 + $0x100] sm:$0xff] }
  0xe0   :  { %812 = vmatmul.mubr.f32.gmra.mrb[16].mxu0 %v5115_v33  ;;  %4060 = vmatprep.subr.bf16.mxu1 %v4136_v7  ;;  %v4067_v13 = vpack.c.bf16 %v527_v49, %v520_v16  ;;  %v5293_v16 = vld [vmem:[%s8941_s3 + $0xe8] sm:$0xff]  ;;  %v4137_v49 = vmov 0.0  }
  0xe1   :  { %3807 = vmatprep.mubr.msk.f32.mxu1 %vm617_vm0, %v5081_v47  ;;  %3781 = vmatprep.mubr.msk.f32.mxu0 %vm617_vm0, %v5122_v11  ;;  %v4030_v24 = vpack.c.bf16 %v539_v31, %v532_v0  ;;  %v5343_v0 = vld [vmem:[%s8941_s3 + $0x118] sm:$0xff]  ;;  %v5370_v31 = vld [vmem:[%s8941_s3 + $0x120] sm:$0xff] }
  0xe2   :  { %4019 = vmatpush1.bf16.msra.mxu0 %v4018_v21  ;;  %4062 = vmatpush1.bf16.msra.mxu1 %v4061_v22  ;;  %v197_v21 = vld [vmem:[%s8942_s0 + $0x570] sm:$0xff]  ;;  %v204_v22 = vld [vmem:[%s8942_s0 + $0x5a8] sm:$0xff] }
  0xe3   :  { %4021 = vmatprep.subr.bf16.mxu0 %v4020_v62  ;;  %1039 = vmatmul.mubr.f32.gmra.mrb[16].mxu1 %v5115_v33  ;;  %v4070_v62 = vpack.c.bf16 %v541_v51, %v534_v34  ;;  %v548_v37 = vmul.f32 %v4705_v28, %v197_v21  ;;  %v555_v38 = vmul.f32 %v4703_v27, %v204_v22  ;;  %v210_v28 = vld [vmem:[%s8942_s0 + $0x5d8] sm:$0xff]  ;;  %v5386_v51 = vld [vmem:[%s8941_s3 + $0x130] sm:$0xff]  ;;  %v5455_v22 = vld [vmem:[%s8941_s3 + $0x188] sm:$0xff] }
  0xe4   :  { %818 = vmatmul.mubr.f32.gmra.mrb[18].mxu0 %v5150_v61  ;;  %4063 = vmatprep.subr.bf16.mxu1 %v4136_v7  ;;  %v5269_v27 = vld [vmem:[%s8941_s3 + $0xd8] sm:$0xff]  ;;  %v561_v45 = vmul.f32 %v4727_v1, %v210_v28  ;;  %v5450_v21 = vld [vmem:[%s8941_s3 + $0x170] sm:$0xff] }
  0xe5   :  { %3808 = vmatprep.mubr.msk.f32.mxu1 %vm617_vm0, %v5122_v11  ;;  %3782 = vmatprep.mubr.msk.f32.mxu0 %vm617_vm0, %v5163_v39  ;;  %v5375_v34 = vld [vmem:[%s8941_s3 + $0x138] sm:$0xff] }
  0xe6   :  { %4023 = vmatpush1.bf16.msra.mxu0 %v4022_v10  ;;  %4065 = vmatpush1.bf16.msra.mxu1 %v4064_v43  ;;  %v4034_v10 = vpack.c.bf16 %v553_v35, %v546_v56  ;;  %v4073_v43 = vpack.c.bf16 %v555_v38, %v548_v37  ;;  %v5482_v56 = vld [vmem:[%s8941_s3 + $0x190] sm:$0xff]  ;;  %v5487_v35 = vld [vmem:[%s8941_s3 + $0x1a8] sm:$0xff]  ;;  %v5498_v37 = vld [vmem:[%s8941_s3 + $0x1a0] sm:$0xff] }
  0xe7   :  { %4025 = vmatprep.subr.bf16.mxu0 %v4024_v58  ;;  %1045 = vmatmul.mubr.f32.gmra.mrb[18].mxu1 %v5150_v61  ;;  %v5311_v58 = vld [vmem:[%s8941_s3 + $0xf8] sm:$0xff]  ;;  %v4134_v38 = vld [vmem:[%s8941_s3 + $0x8] sm:$0xff] }
  0xe8   :  { %824 = vmatmul.mubr.f32.gmra.mrb[20].mxu0 %v5197_v25  ;;  %4066 = vmatprep.subr.bf16.mxu1 %v4136_v7 }
  0xe9   :  { %3809 = vmatprep.mubr.msk.f32.mxu1 %vm617_vm0, %v5163_v39  ;;  %3783 = vmatprep.mubr.msk.f32.mxu0 %vm617_vm0, %v5204_v63 }
  0xea   :  { %4027 = vmatpush1.bf16.msra.mxu0 %v4026_v12  ;;  %4068 = vmatpush1.bf16.msra.mxu1 %v4067_v13  ;;  %v5391_v12 = vld [vmem:[%s8941_s3 + $0x148] sm:$0xff]  ;;  %v5402_v13 = vld [vmem:[%s8941_s3 + $0x140] sm:$0xff] }
  0xeb   :  { %4029 = vmatprep.subr.bf16.mxu0 %v4028_v60  ;;  %1051 = vmatmul.mubr.f32.gmra.mrb[20].mxu1 %v5197_v25  ;;  %v5423_v60 = vld [vmem:[%s8941_s3 + $0x168] sm:$0xff] }
  0xec   :  { %830 = vmatmul.mubr.f32.gmra.mrb[22].mxu0 %v5232_v59  ;;  %4069 = vmatprep.subr.bf16.mxu1 %v4136_v7 }
  0xed   :  { %3810 = vmatprep.mubr.msk.f32.mxu1 %vm617_vm0, %v5204_v63  ;;  %3784 = vmatprep.mubr.msk.f32.mxu0 %vm617_vm0, %v5245_v23 }
  0xee   :  { %4031 = vmatpush1.bf16.msra.mxu0 %v4030_v24  ;;  %4071 = vmatpush1.bf16.msra.mxu1 %v4070_v62  ;;  %v5466_v24 = vld [vmem:[%s8941_s3 + $0x180] sm:$0xff]  ;;  %v5471_v62 = vld [vmem:[%s8941_s3 + $0x198] sm:$0xff] }
  0xef   :  { %4033 = vmatprep.subr.bf16.mxu0 %v4032_v40  ;;  %1057 = vmatmul.mubr.f32.gmra.mrb[22].mxu1 %v5232_v59 }
  0xf0   :  { %836 = vmatmul.mubr.f32.gmra.mrb[24].mxu0 %v5261_v4  ;;  %4072 = vmatprep.subr.bf16.mxu1 %v4136_v7  ;;  %v211_v7 = vld [vmem:[%s8942_s0 + $0x5e0] sm:$0xff] }
  0xf1   :  { %3811 = vmatprep.mubr.msk.f32.mxu1 %vm617_vm0, %v5245_v23  ;;  %3785 = vmatprep.mubr.msk.f32.mxu0 %vm617_vm0, %v5269_v27  ;;  %v562_v53 = vmul.f32 %v4727_v1, %v211_v7  ;;  %v5322_v1 = vld [vmem:[%s8941_s3 + $0xf0] sm:$0xff] }
  0xf2   :  { %4035 = vmatpush1.bf16.msra.mxu0 %v4034_v10  ;;  %4074 = vmatpush1.bf16.msra.mxu1 %v4073_v43 }
  0xf3   :  { %1205 = vmatprep.subr.mxu0 %v561_v45  ;;  %1063 = vmatmul.mubr.f32.gmra.mrb[24].mxu1 %v5261_v4 }
  0xf4   :  { %842 = vmatmul.mubr.f32.gmra.mrb[26].mxu0 %v5282_v46  ;;  %1432 = vmatprep.subr.mxu1 %v4137_v49 }
  0xf5   :  { %3812 = vmatprep.mubr.msk.f32.mxu1 %vm617_vm0, %v5269_v27  ;;  %3786 = vmatprep.mubr.msk.f32.mxu0 %vm617_vm0, %v5293_v16 }
  0xf6   :  { %1206 = vmatpush1.msra.mxu0 %v560_v50  ;;  %1433 = vmatpush1.msra.mxu1 %v562_v53 }
  0xf7   :  { %1069 = vmatmul.mubr.f32.gmra.mrb[26].mxu1 %v5282_v46 }
  0xf8   :  { %848 = vmatmul.mubr.f32.gmra.mrb[28].mxu0 %v5306_v54  ;;  %3813 = vmatprep.mubr.msk.f32.mxu1 %vm617_vm0, %v5293_v16 }
  0xf9   :  { %3787 = vmatprep.mubr.msk.f32.mxu0 %vm617_vm0, %v5311_v58 }
  0xfb   :  { %1075 = vmatmul.mubr.f32.gmra.mrb[28].mxu1 %v5306_v54 }
  0xfc   :  { %854 = vmatmul.mubr.f32.gmra.mrb[30].mxu0 %v5322_v1  ;;  %3814 = vmatprep.mubr.msk.f32.mxu1 %vm617_vm0, %v5311_v58 }
  0xfd   :  { %3788 = vmatprep.mubr.msk.f32.mxu0 %vm617_vm0, %v5327_v26 }
  0xff   :  { %1081 = vmatmul.mubr.f32.gmra.mrb[30].mxu1 %v5322_v1 }
 0x100   :  { %860 = vmatmul.mubr.f32.gmra.mrb[32].mxu0 %v5338_v30  ;;  %3815 = vmatprep.mubr.msk.f32.mxu1 %vm617_vm0, %v5327_v26 }
 0x101   :  { %3789 = vmatprep.mubr.msk.f32.mxu0 %vm617_vm0, %v5343_v0 }
 0x103   :  { %1087 = vmatmul.mubr.f32.gmra.mrb[32].mxu1 %v5338_v30 }
 0x104   :  { %866 = vmatmul.mubr.f32.gmra.mrb[34].mxu0 %v5354_v32  ;;  %3816 = vmatprep.mubr.msk.f32.mxu1 %vm617_vm0, %v5343_v0 }
 0x105   :  { %3790 = vmatprep.mubr.msk.f32.mxu0 %vm617_vm0, %v5359_v2 }
 0x107   :  { %1093 = vmatmul.mubr.f32.gmra.mrb[34].mxu1 %v5354_v32 }
 0x108   :  { %872 = vmatmul.mubr.f32.gmra.mrb[36].mxu0 %v5370_v31  ;;  %3817 = vmatprep.mubr.msk.f32.mxu1 %vm617_vm0, %v5359_v2 }
 0x109   :  { %3791 = vmatprep.mubr.msk.f32.mxu0 %vm617_vm0, %v5375_v34 }
 0x10b   :  { %1099 = vmatmul.mubr.f32.gmra.mrb[36].mxu1 %v5370_v31 }
 0x10c   :  { %878 = vmatmul.mubr.f32.gmra.mrb[38].mxu0 %v5386_v51  ;;  %3818 = vmatprep.mubr.msk.f32.mxu1 %vm617_vm0, %v5375_v34 }
 0x10d   :  { %3792 = vmatprep.mubr.msk.f32.mxu0 %vm617_vm0, %v5391_v12 }
 0x10f   :  { %1105 = vmatmul.mubr.f32.gmra.mrb[38].mxu1 %v5386_v51 }
 0x110   :  { %884 = vmatmul.mubr.f32.gmra.mrb[40].mxu0 %v5402_v13  ;;  %3819 = vmatprep.mubr.msk.f32.mxu1 %vm617_vm0, %v5391_v12 }
 0x111   :  { %3793 = vmatprep.mubr.msk.f32.mxu0 %vm617_vm0, %v5407_v14 }
 0x113   :  { %1111 = vmatmul.mubr.f32.gmra.mrb[40].mxu1 %v5402_v13 }
 0x114   :  { %890 = vmatmul.mubr.f32.gmra.mrb[42].mxu0 %v5418_v18  ;;  %3820 = vmatprep.mubr.msk.f32.mxu1 %vm617_vm0, %v5407_v14 }
 0x115   :  { %3794 = vmatprep.mubr.msk.f32.mxu0 %vm617_vm0, %v5423_v60 }
 0x117   :  { %1117 = vmatmul.mubr.f32.gmra.mrb[42].mxu1 %v5418_v18 }
 0x118   :  { %896 = vmatmul.mubr.f32.gmra.mrb[44].mxu0 %v5434_v42  ;;  %3821 = vmatprep.mubr.msk.f32.mxu1 %vm617_vm0, %v5423_v60 }
 0x119   :  { %3795 = vmatprep.mubr.msk.f32.mxu0 %vm617_vm0, %v5439_v19 }
 0x11b   :  { %1123 = vmatmul.mubr.f32.gmra.mrb[44].mxu1 %v5434_v42 }
 0x11c   :  { %902 = vmatmul.mubr.f32.gmra.mrb[46].mxu0 %v5450_v21  ;;  %3822 = vmatprep.mubr.msk.f32.mxu1 %vm617_vm0, %v5439_v19 }
 0x11d   :  { %3796 = vmatprep.mubr.msk.f32.mxu0 %vm617_vm0, %v5455_v22 }
 0x11f   :  { %1129 = vmatmul.mubr.f32.gmra.mrb[46].mxu1 %v5450_v21 }
 0x120   :  { %908 = vmatmul.mubr.f32.gmra.mrb[48].mxu0 %v5466_v24  ;;  %3823 = vmatprep.mubr.msk.f32.mxu1 %vm617_vm0, %v5455_v22 }
 0x121   :  { %3797 = vmatprep.mubr.msk.f32.mxu0 %vm617_vm0, %v5471_v62 }
 0x123   :  { %1135 = vmatmul.mubr.f32.gmra.mrb[48].mxu1 %v5466_v24 }
 0x124   :  { %914 = vmatmul.mubr.f32.gmra.mrb[50].mxu0 %v5482_v56  ;;  %3824 = vmatprep.mubr.msk.f32.mxu1 %vm617_vm0, %v5471_v62 }
 0x125   :  { %3798 = vmatprep.mubr.msk.f32.mxu0 %vm617_vm0, %v5487_v35 }
 0x127   :  { %1141 = vmatmul.mubr.f32.gmra.mrb[50].mxu1 %v5482_v56 }
 0x128   :  { %920 = vmatmul.mubr.f32.gmra.mrb[52].mxu0 %v5498_v37  ;;  %3825 = vmatprep.mubr.msk.f32.mxu1 %vm617_vm0, %v5487_v35 }
 0x129   :  { %3826 = vmatprep.mubr.msk.f32.mxu0 %vm617_vm0, %v4134_v38 }
 0x12b   :  { %1147 = vmatmul.mubr.f32.gmra.mrb[52].mxu1 %v5498_v37 }
 0x12c   :  { %1218 = vmatmul.mubr.f32.vlgmr.msra.gmra.mrb[54].mxu0 %v4788_v52  ;;  %3853 = vmatprep.mubr.msk.f32.mxu1 %vm617_vm0, %v4134_v38 }
 0x12d   :  { %3827 = vmatprep.mubr.msk.f32.mxu0 %vm617_vm0, %v4808_v5 }
 0x12f   :  { %1445 = vmatmul.mubr.f32.vlgmr.msra.gmra.mrb[54].mxu1 %v4788_v52 }
 0x130   :  { %1224 = vmatmul.mubr.f32.gmra.mrb[56].mxu0 %v4821_v8  ;;  %3854 = vmatprep.mubr.msk.f32.mxu1 %vm617_vm0, %v4808_v5 }
 0x131   :  { %3828 = vmatprep.mubr.msk.f32.mxu0 %vm617_vm0, %v4834_v17 }
 0x133   :  { %1450 = vmatmul.mubr.f32.gmra.mrb[56].mxu1 %v4821_v8 }
 0x134   :  { %1230 = vmatmul.mubr.f32.gmra.mrb[58].mxu0 %v4869_v9  ;;  %3855 = vmatprep.mubr.msk.f32.mxu1 %vm617_vm0, %v4834_v17 }
 0x135   :  { %3829 = vmatprep.mubr.msk.f32.mxu0 %vm617_vm0, %v4876_v44 }
 0x137   :  { %1455 = vmatmul.mubr.f32.gmra.mrb[58].mxu1 %v4869_v9 }
 0x138   :  { %1236 = vmatmul.mubr.f32.gmra.mrb[60].mxu0 %v4904_v29  ;;  %3856 = vmatprep.mubr.msk.f32.mxu1 %vm617_vm0, %v4876_v44 }
 0x139   :  { %3830 = vmatprep.mubr.msk.f32.mxu0 %vm617_vm0, %v4917_v6 }
 0x13b   :  { %1460 = vmatmul.mubr.f32.gmra.mrb[60].mxu1 %v4904_v29 }
 0x13c   :  { %1242 = vmatmul.mubr.f32.gmra.mrb[62].mxu0 %v4951_v55  ;;  %3857 = vmatprep.mubr.msk.f32.mxu1 %vm617_vm0, %v4917_v6 }
 0x13d   :  { %3831 = vmatprep.mubr.msk.f32.mxu0 %vm617_vm0, %v4958_v36 }
 0x13f   :  { %1465 = vmatmul.mubr.f32.gmra.mrb[62].mxu1 %v4951_v55 }
 0x140   :  { %1248 = vmatmul.mubr.f32.gmra.mrb[64].mxu0 %v4986_v15  ;;  %3858 = vmatprep.mubr.msk.f32.mxu1 %vm617_vm0, %v4958_v36 }
 0x141   :  { %3832 = vmatprep.mubr.msk.f32.mxu0 %vm617_vm0, %v4999_v57 }
 0x143   :  { %1470 = vmatmul.mubr.f32.gmra.mrb[64].mxu1 %v4986_v15 }
 0x144   :  { %1254 = vmatmul.mubr.f32.gmra.mrb[66].mxu0 %v5033_v41  ;;  %3859 = vmatprep.mubr.msk.f32.mxu1 %vm617_vm0, %v4999_v57 }
 0x145   :  { %3833 = vmatprep.mubr.msk.f32.mxu0 %vm617_vm0, %v5040_v20 }
 0x147   :  { %1475 = vmatmul.mubr.f32.gmra.mrb[66].mxu1 %v5033_v41 }
 0x148   :  { %1260 = vmatmul.mubr.f32.gmra.mrb[68].mxu0 %v5068_v3  ;;  %3860 = vmatprep.mubr.msk.f32.mxu1 %vm617_vm0, %v5040_v20 }
 0x149   :  { %3834 = vmatprep.mubr.msk.f32.mxu0 %vm617_vm0, %v5081_v47 }
 0x14b   :  { %1480 = vmatmul.mubr.f32.gmra.mrb[68].mxu1 %v5068_v3 }
 0x14c   :  { %1266 = vmatmul.mubr.f32.gmra.mrb[70].mxu0 %v5115_v33  ;;  %3861 = vmatprep.mubr.msk.f32.mxu1 %vm617_vm0, %v5081_v47 }
 0x14d   :  { %3835 = vmatprep.mubr.msk.f32.mxu0 %vm617_vm0, %v5122_v11 }
 0x14f   :  { %1485 = vmatmul.mubr.f32.gmra.mrb[70].mxu1 %v5115_v33 }
 0x150   :  { %1272 = vmatmul.mubr.f32.gmra.mrb[72].mxu0 %v5150_v61  ;;  %3862 = vmatprep.mubr.msk.f32.mxu1 %vm617_vm0, %v5122_v11 }
 0x151   :  { %3836 = vmatprep.mubr.msk.f32.mxu0 %vm617_vm0, %v5163_v39 }
 0x153   :  { %1490 = vmatmul.mubr.f32.gmra.mrb[72].mxu1 %v5150_v61 }
 0x154   :  { %1278 = vmatmul.mubr.f32.gmra.mrb[74].mxu0 %v5197_v25  ;;  %3863 = vmatprep.mubr.msk.f32.mxu1 %vm617_vm0, %v5163_v39 }
 0x155   :  { %3837 = vmatprep.mubr.msk.f32.mxu0 %vm617_vm0, %v5204_v63 }
 0x157   :  { %1495 = vmatmul.mubr.f32.gmra.mrb[74].mxu1 %v5197_v25 }
 0x158   :  { %1284 = vmatmul.mubr.f32.gmra.mrb[76].mxu0 %v5232_v59  ;;  %3864 = vmatprep.mubr.msk.f32.mxu1 %vm617_vm0, %v5204_v63 }
 0x159   :  { %3838 = vmatprep.mubr.msk.f32.mxu0 %vm617_vm0, %v5245_v23 }
 0x15b   :  { %1500 = vmatmul.mubr.f32.gmra.mrb[76].mxu1 %v5232_v59 }
 0x15c   :  { %1290 = vmatmul.mubr.f32.gmra.mrb[78].mxu0 %v5261_v4  ;;  %3865 = vmatprep.mubr.msk.f32.mxu1 %vm617_vm0, %v5245_v23 }
 0x15d   :  { %3839 = vmatprep.mubr.msk.f32.mxu0 %vm617_vm0, %v5269_v27 }
 0x15f   :  { %1505 = vmatmul.mubr.f32.gmra.mrb[78].mxu1 %v5261_v4 }
 0x160   :  { %1296 = vmatmul.mubr.f32.gmra.mrb[80].mxu0 %v5282_v46  ;;  %3866 = vmatprep.mubr.msk.f32.mxu1 %vm617_vm0, %v5269_v27 }
 0x161   :  { %3840 = vmatprep.mubr.msk.f32.mxu0 %vm617_vm0, %v5293_v16 }
 0x163   :  { %1510 = vmatmul.mubr.f32.gmra.mrb[80].mxu1 %v5282_v46 }
 0x164   :  { %1302 = vmatmul.mubr.f32.gmra.mrb[82].mxu0 %v5306_v54  ;;  %3867 = vmatprep.mubr.msk.f32.mxu1 %vm617_vm0, %v5293_v16 }
 0x165   :  { %3841 = vmatprep.mubr.msk.f32.mxu0 %vm617_vm0, %v5311_v58 }
 0x167   :  { %1515 = vmatmul.mubr.f32.gmra.mrb[82].mxu1 %v5306_v54 }
 0x168   :  { %1308 = vmatmul.mubr.f32.gmra.mrb[84].mxu0 %v5322_v1  ;;  %3868 = vmatprep.mubr.msk.f32.mxu1 %vm617_vm0, %v5311_v58 }
 0x169   :  { %3842 = vmatprep.mubr.msk.f32.mxu0 %vm617_vm0, %v5327_v26 }
 0x16b   :  { %1520 = vmatmul.mubr.f32.gmra.mrb[84].mxu1 %v5322_v1 }
 0x16c   :  { %1314 = vmatmul.mubr.f32.gmra.mrb[86].mxu0 %v5338_v30  ;;  %3869 = vmatprep.mubr.msk.f32.mxu1 %vm617_vm0, %v5327_v26 }
 0x16d   :  { %3843 = vmatprep.mubr.msk.f32.mxu0 %vm617_vm0, %v5343_v0 }
 0x16f   :  { %1525 = vmatmul.mubr.f32.gmra.mrb[86].mxu1 %v5338_v30 }
 0x170   :  { %1320 = vmatmul.mubr.f32.gmra.mrb[88].mxu0 %v5354_v32  ;;  %3870 = vmatprep.mubr.msk.f32.mxu1 %vm617_vm0, %v5343_v0 }
 0x171   :  { %3844 = vmatprep.mubr.msk.f32.mxu0 %vm617_vm0, %v5359_v2 }
 0x173   :  { %1530 = vmatmul.mubr.f32.gmra.mrb[88].mxu1 %v5354_v32 }
 0x174   :  { %1326 = vmatmul.mubr.f32.gmra.mrb[90].mxu0 %v5370_v31  ;;  %3871 = vmatprep.mubr.msk.f32.mxu1 %vm617_vm0, %v5359_v2 }
 0x175   :  { %3845 = vmatprep.mubr.msk.f32.mxu0 %vm617_vm0, %v5375_v34 }
 0x177   :  { %1535 = vmatmul.mubr.f32.gmra.mrb[90].mxu1 %v5370_v31 }
 0x178   :  { %1332 = vmatmul.mubr.f32.gmra.mrb[92].mxu0 %v5386_v51  ;;  %3872 = vmatprep.mubr.msk.f32.mxu1 %vm617_vm0, %v5375_v34 }
 0x179   :  { %3846 = vmatprep.mubr.msk.f32.mxu0 %vm617_vm0, %v5391_v12 }
 0x17b   :  { %1540 = vmatmul.mubr.f32.gmra.mrb[92].mxu1 %v5386_v51 }
 0x17c   :  { %1338 = vmatmul.mubr.f32.gmra.mrb[94].mxu0 %v5402_v13  ;;  %3873 = vmatprep.mubr.msk.f32.mxu1 %vm617_vm0, %v5391_v12 }
 0x17d   :  { %3847 = vmatprep.mubr.msk.f32.mxu0 %vm617_vm0, %v5407_v14 }
 0x17f   :  { %1545 = vmatmul.mubr.f32.gmra.mrb[94].mxu1 %v5402_v13 }
 0x180   :  { %1344 = vmatmul.mubr.f32.gmra.mrb[96].mxu0 %v5418_v18  ;;  %3874 = vmatprep.mubr.msk.f32.mxu1 %vm617_vm0, %v5407_v14 }
 0x181   :  { %3848 = vmatprep.mubr.msk.f32.mxu0 %vm617_vm0, %v5423_v60 }
 0x183   :  { %1550 = vmatmul.mubr.f32.gmra.mrb[96].mxu1 %v5418_v18 }
 0x184   :  { %1350 = vmatmul.mubr.f32.gmra.mrb[98].mxu0 %v5434_v42  ;;  %3875 = vmatprep.mubr.msk.f32.mxu1 %vm617_vm0, %v5423_v60 }
 0x185   :  { %3849 = vmatprep.mubr.msk.f32.mxu0 %vm617_vm0, %v5439_v19 }
 0x187   :  { %1555 = vmatmul.mubr.f32.gmra.mrb[98].mxu1 %v5434_v42 }
 0x188   :  { %1356 = vmatmul.mubr.f32.gmra.mrb[100].mxu0 %v5450_v21  ;;  %3876 = vmatprep.mubr.msk.f32.mxu1 %vm617_vm0, %v5439_v19 }
 0x189   :  { %3850 = vmatprep.mubr.msk.f32.mxu0 %vm617_vm0, %v5455_v22 }
 0x18b   :  { %1560 = vmatmul.mubr.f32.gmra.mrb[100].mxu1 %v5450_v21 }
 0x18c   :  { %1362 = vmatmul.mubr.f32.gmra.mrb[102].mxu0 %v5466_v24  ;;  %3877 = vmatprep.mubr.msk.f32.mxu1 %vm617_vm0, %v5455_v22 }
 0x18d   :  { %3851 = vmatprep.mubr.msk.f32.mxu0 %vm617_vm0, %v5471_v62 }
 0x18f   :  { %1565 = vmatmul.mubr.f32.gmra.mrb[102].mxu1 %v5466_v24 }
 0x190   :  { %1368 = vmatmul.mubr.f32.gmra.mrb[104].mxu0 %v5482_v56  ;;  %3878 = vmatprep.mubr.msk.f32.mxu1 %vm617_vm0, %v5471_v62 }
 0x191   :  { %3852 = vmatprep.mubr.msk.f32.mxu0 %vm617_vm0, %v5487_v35 }
 0x193   :  { %v5663_v52 = vpop.f32.mrb[0].mxu0  ;;  %1570 = vmatmul.mubr.f32.gmra.mrb[104].mxu1 %v5482_v56 }
 0x194   :  { %9107 = vst [vmem:[#allocation2_spill] sm:$0xff] %v5663_v52  ;;  %v1824_v5 = vmul.f32 %v5663_v52, %v5663_v52  ;;  %v5668_v8 = vpop.f32.mrb[1].mxu0  ;;  %1374 = vmatmul.mubr.f32.gmra.mrb[106].mxu0 %v5498_v37  ;;  %v5671_v17 = vpop.f32.mrb[0].mxu1  ;;  %3879 = vmatprep.mubr.msk.f32.mxu1 %vm617_vm0, %v5487_v35 }
 0x195   :  { %9108 = vst [vmem:[#allocation3_spill] sm:$0xff] %v5668_v8  ;;  %9109 = vst [vmem:[#allocation4_spill] sm:$0xff] %v5671_v17  ;;  %v1580_v9 = vadd.f32 %v5668_v8, %v5663_v52  ;;  %v1825_v44 = vmul.f32 %v5668_v8, %v5668_v8  ;;  %v1826_v29 = vmul.f32 %v5671_v17, %v5671_v17  ;;  %v5681_v6 = vpop.f32.mrb[1].mxu1 }
 0x196   :  { %9110 = vst [vmem:[#allocation5_spill] sm:$0xff] %v5681_v6  ;;  %v1827_v41 = vmul.f32 %v5681_v6, %v5681_v6 }
 0x197   :  { %v2013_v55 = vadd.f32 %v1825_v44, %v1824_v5  ;;  %v1581_v36 = vadd.f32 %v1580_v9, %v5671_v17  ;;  %v5684_v15 = vpop.f32.mrb[2].mxu0  ;;  %1575 = vmatmul.mubr.f32.gmra.mrb[106].mxu1 %v5498_v37 }
 0x198   :  { %9111 = vst [vmem:[#allocation6_spill] sm:$0xff] %v5684_v15  ;;  %v1831_v57 = vmul.f32 %v5684_v15, %v5684_v15  ;;  %v5691_v20 = vpop.f32.mrb[3].mxu0 }
 0x199   :  { %9112 = vst [vmem:[#allocation7_spill] sm:$0xff] %v5691_v20  ;;  %v2014_v3 = vadd.f32 %v2013_v55, %v1826_v29  ;;  %v5694_v47 = vadd.f32 %v1581_v36, %v5681_v6  ;;  %v1590_v33 = vadd.f32 %v5691_v20, %v5684_v15  ;;  %v1832_v11 = vmul.f32 %v5691_v20, %v5691_v20 }
 0x19a   :  { %v5700_v61 = vpop.f32.mrb[2].mxu1 }
 0x19b   :  { %9113 = vst [vmem:[#allocation8_spill] sm:$0xff] %v5700_v61  ;;  %v5702_v39 = vadd.f32 %v2014_v3, %v1827_v41  ;;  %v2022_v25 = vadd.f32 %v1832_v11, %v1831_v57  ;;  %v1591_v63 = vadd.f32 %v1590_v33, %v5700_v61  ;;  %v1833_v59 = vmul.f32 %v5700_v61, %v5700_v61  ;;  %v5707_v23 = vpop.f32.mrb[4].mxu0  ;;  %v5709_v40 = vpop.f32.mrb[3].mxu1 }
 0x19c   :  { %9114 = vst [vmem:[#allocation9_spill] sm:$0xff] %v5707_v23  ;;  %9115 = vst [vmem:[#allocation10_spill] sm:$0xff] %v5709_v40  ;;  %v1838_v4 = vmul.f32 %v5707_v23, %v5707_v23  ;;  %v1834_v28 = vmul.f32 %v5709_v40, %v5709_v40  ;;  %v5715_v27 = vpop.f32.mrb[5].mxu0 }
 0x19d   :  { %9116 = vst [vmem:[#allocation11_spill] sm:$0xff] %v5715_v27  ;;  %v2023_v10 = vadd.f32 %v2022_v25, %v1833_v59  ;;  %v5718_v43 = vadd.f32 %v1591_v63, %v5709_v40  ;;  %v1599_v45 = vadd.f32 %v5715_v27, %v5707_v23  ;;  %v1839_v46 = vmul.f32 %v5715_v27, %v5715_v27 }
 0x19e   :  { %v5724_v48 = vpop.f32.mrb[4].mxu1 }
 0x19f   :  { %9117 = vst [vmem:[#allocation12_spill] sm:$0xff] %v5724_v48  ;;  %v5726_v7 = vadd.f32 %v2023_v10, %v1834_v28  ;;  %v2031_v16 = vadd.f32 %v1839_v46, %v1838_v4  ;;  %v1600_v49 = vadd.f32 %v1599_v45, %v5724_v48  ;;  %v1840_v50 = vmul.f32 %v5724_v48, %v5724_v48  ;;  %v5731_v53 = vpop.f32.mrb[6].mxu0  ;;  %v5733_v54 = vpop.f32.mrb[5].mxu1 }
 0x1a0   :  { %9118 = vst [vmem:[#allocation13_spill] sm:$0xff] %v5731_v53  ;;  %9119 = vst [vmem:[#allocation14_spill] sm:$0xff] %v5733_v54  ;;  %v1845_v58 = vmul.f32 %v5731_v53, %v5731_v53  ;;  %v1841_v1 = vmul.f32 %v5733_v54, %v5733_v54  ;;  %v5739_v26 = vpop.f32.mrb[7].mxu0 }
 0x1a1   :  { %9120 = vst [vmem:[#allocation15_spill] sm:$0xff] %v5739_v26  ;;  %v2032_v30 = vadd.f32 %v2031_v16, %v1840_v50  ;;  %v5742_v0 = vadd.f32 %v1600_v49, %v5733_v54  ;;  %v1608_v32 = vadd.f32 %v5739_v26, %v5731_v53  ;;  %v1846_v2 = vmul.f32 %v5739_v26, %v5739_v26 }
 0x1a2   :  { %v5748_v31 = vpop.f32.mrb[6].mxu1 }
 0x1a3   :  { %9121 = vst [vmem:[#allocation16_spill] sm:$0xff] %v5748_v31  ;;  %v5750_v34 = vadd.f32 %v2032_v30, %v1841_v1  ;;  %v2040_v51 = vadd.f32 %v1846_v2, %v1845_v58  ;;  %v1609_v12 = vadd.f32 %v1608_v32, %v5748_v31  ;;  %v1847_v13 = vmul.f32 %v5748_v31, %v5748_v31  ;;  %v5755_v14 = vpop.f32.mrb[8].mxu0  ;;  %v5757_v18 = vpop.f32.mrb[7].mxu1 }
 0x1a4   :  { %9122 = vst [vmem:[#allocation17_spill] sm:$0xff] %v5755_v14  ;;  %9123 = vst [vmem:[#allocation18_spill] sm:$0xff] %v5757_v18  ;;  %v1852_v60 = vmul.f32 %v5755_v14, %v5755_v14  ;;  %v1848_v42 = vmul.f32 %v5757_v18, %v5757_v18  ;;  %v5763_v19 = vpop.f32.mrb[9].mxu0 }
 0x1a5   :  { %9124 = vst [vmem:[#allocation19_spill] sm:$0xff] %v5763_v19  ;;  %v2041_v21 = vadd.f32 %v2040_v51, %v1847_v13  ;;  %v5766_v22 = vadd.f32 %v1609_v12, %v5757_v18  ;;  %v1617_v24 = vadd.f32 %v5763_v19, %v5755_v14  ;;  %v1853_v62 = vmul.f32 %v5763_v19, %v5763_v19 }
 0x1a6   :  { %v5772_v56 = vpop.f32.mrb[8].mxu1 }
 0x1a7   :  { %9125 = vst [vmem:[#allocation20_spill] sm:$0xff] %v5772_v56  ;;  %v5774_v35 = vadd.f32 %v2041_v21, %v1848_v42  ;;  %v2049_v37 = vadd.f32 %v1853_v62, %v1852_v60  ;;  %v1618_v38 = vadd.f32 %v1617_v24, %v5772_v56  ;;  %v1854_v5 = vmul.f32 %v5772_v56, %v5772_v56  ;;  %v5779_v9 = vpop.f32.mrb[10].mxu0  ;;  %v5781_v44 = vpop.f32.mrb[9].mxu1 }
 0x1a8   :  { %9126 = vst [vmem:[#allocation21_spill] sm:$0xff] %v5779_v9  ;;  %9127 = vst [vmem:[#allocation22_spill] sm:$0xff] %v5781_v44  ;;  %v1859_v29 = vmul.f32 %v5779_v9, %v5779_v9  ;;  %v1855_v55 = vmul.f32 %v5781_v44, %v5781_v44  ;;  %v5787_v36 = vpop.f32.mrb[11].mxu0 }
 0x1a9   :  { %9128 = vst [vmem:[#allocation23_spill] sm:$0xff] %v5787_v36  ;;  %v2050_v57 = vadd.f32 %v2049_v37, %v1854_v5  ;;  %v5790_v41 = vadd.f32 %v1618_v38, %v5781_v44  ;;  %v1626_v3 = vadd.f32 %v5787_v36, %v5779_v9  ;;  %v1860_v33 = vmul.f32 %v5787_v36, %v5787_v36 }
 0x1aa   :  { %v5796_v11 = vpop.f32.mrb[10].mxu1 }
 0x1ab   :  { %9129 = vst [vmem:[#allocation24_spill] sm:$0xff] %v5796_v11  ;;  %v5798_v25 = vadd.f32 %v2050_v57, %v1855_v55  ;;  %v2058_v63 = vadd.f32 %v1860_v33, %v1859_v29  ;;  %v1627_v59 = vadd.f32 %v1626_v3, %v5796_v11  ;;  %v1861_v4 = vmul.f32 %v5796_v11, %v5796_v11  ;;  %v5803_v28 = vpop.f32.mrb[12].mxu0  ;;  %v5805_v10 = vpop.f32.mrb[11].mxu1 }
 0x1ac   :  { %9130 = vst [vmem:[#allocation25_spill] sm:$0xff] %v5803_v28  ;;  %9131 = vst [vmem:[#allocation26_spill] sm:$0xff] %v5805_v10  ;;  %v1866_v45 = vmul.f32 %v5803_v28, %v5803_v28  ;;  %v1862_v46 = vmul.f32 %v5805_v10, %v5805_v10  ;;  %v5811_v16 = vpop.f32.mrb[13].mxu0 }
 0x1ad   :  { %9132 = vst [vmem:[#allocation27_spill] sm:$0xff] %v5811_v16  ;;  %v2059_v49 = vadd.f32 %v2058_v63, %v1861_v4  ;;  %v5814_v50 = vadd.f32 %v1627_v59, %v5805_v10  ;;  %v1635_v58 = vadd.f32 %v5811_v16, %v5803_v28  ;;  %v1867_v1 = vmul.f32 %v5811_v16, %v5811_v16 }
 0x1ae   :  { %v5820_v30 = vpop.f32.mrb[12].mxu1 }
 0x1af   :  { %9133 = vst [vmem:[#allocation28_spill] sm:$0xff] %v5820_v30  ;;  %v5822_v32 = vadd.f32 %v2059_v49, %v1862_v46  ;;  %v2067_v2 = vadd.f32 %v1867_v1, %v1866_v45  ;;  %v1636_v51 = vadd.f32 %v1635_v58, %v5820_v30  ;;  %v1868_v12 = vmul.f32 %v5820_v30, %v5820_v30  ;;  %v5827_v13 = vpop.f32.mrb[14].mxu0  ;;  %v5829_v60 = vpop.f32.mrb[13].mxu1 }
 0x1b0   :  { %9134 = vst [vmem:[#allocation29_spill] sm:$0xff] %v5827_v13  ;;  %9135 = vst [vmem:[#allocation30_spill] sm:$0xff] %v5829_v60  ;;  %v1873_v42 = vmul.f32 %v5827_v13, %v5827_v13  ;;  %v1869_v21 = vmul.f32 %v5829_v60, %v5829_v60  ;;  %v5835_v24 = vpop.f32.mrb[15].mxu0 }
 0x1b1   :  { %9136 = vst [vmem:[#allocation31_spill] sm:$0xff] %v5835_v24  ;;  %v2068_v62 = vadd.f32 %v2067_v2, %v1868_v12  ;;  %v5838_v37 = vadd.f32 %v1636_v51, %v5829_v60  ;;  %v1644_v38 = vadd.f32 %v5835_v24, %v5827_v13  ;;  %v1874_v5 = vmul.f32 %v5835_v24, %v5835_v24 }
 0x1b2   :  { %v5844_v29 = vpop.f32.mrb[14].mxu1 }
 0x1b3   :  { %9137 = vst [vmem:[#allocation32_spill] sm:$0xff] %v5844_v29  ;;  %v5846_v55 = vadd.f32 %v2068_v62, %v1869_v21  ;;  %v2076_v57 = vadd.f32 %v1874_v5, %v1873_v42  ;;  %v1645_v3 = vadd.f32 %v1644_v38, %v5844_v29  ;;  %v1875_v33 = vmul.f32 %v5844_v29, %v5844_v29  ;;  %v5851_v63 = vpop.f32.mrb[16].mxu0  ;;  %v5853_v59 = vpop.f32.mrb[15].mxu1 }
 0x1b4   :  { %9138 = vst [vmem:[#allocation33_spill] sm:$0xff] %v5851_v63  ;;  %9139 = vst [vmem:[#allocation34_spill] sm:$0xff] %v5853_v59  ;;  %v1880_v4 = vmul.f32 %v5851_v63, %v5851_v63  ;;  %v1876_v45 = vmul.f32 %v5853_v59, %v5853_v59  ;;  %v5859_v46 = vpop.f32.mrb[17].mxu0 }
 0x1b5   :  { %9140 = vst [vmem:[#allocation35_spill] sm:$0xff] %v5859_v46  ;;  %v2077_v49 = vadd.f32 %v2076_v57, %v1875_v33  ;;  %v5862_v58 = vadd.f32 %v1645_v3, %v5853_v59  ;;  %v1653_v1 = vadd.f32 %v5859_v46, %v5851_v63  ;;  %v1881_v2 = vmul.f32 %v5859_v46, %v5859_v46 }
 0x1b6   :  { %v5868_v51 = vpop.f32.mrb[16].mxu1 }
 0x1b7   :  { %9141 = vst [vmem:[#allocation36_spill] sm:$0xff] %v5868_v51  ;;  %v5870_v12 = vadd.f32 %v2077_v49, %v1876_v45  ;;  %v2085_v42 = vadd.f32 %v1881_v2, %v1880_v4  ;;  %v1654_v21 = vadd.f32 %v1653_v1, %v5868_v51  ;;  %v1882_v62 = vmul.f32 %v5868_v51, %v5868_v51  ;;  %v5875_v38 = vpop.f32.mrb[18].mxu0  ;;  %v5877_v5 = vpop.f32.mrb[17].mxu1 }
 0x1b8   :  { %9142 = vst [vmem:[#allocation37_spill] sm:$0xff] %v5875_v38  ;;  %9143 = vst [vmem:[#allocation38_spill] sm:$0xff] %v5877_v5  ;;  %v1887_v57 = vmul.f32 %v5875_v38, %v5875_v38  ;;  %v1883_v3 = vmul.f32 %v5877_v5, %v5877_v5  ;;  %v5883_v33 = vpop.f32.mrb[19].mxu0 }
 0x1b9   :  { %9144 = vst [vmem:[#allocation39_spill] sm:$0xff] %v5883_v33  ;;  %v2086_v45 = vadd.f32 %v2085_v42, %v1882_v62  ;;  %v5886_v4 = vadd.f32 %v1654_v21, %v5877_v5  ;;  %v1662_v49 = vadd.f32 %v5883_v33, %v5875_v38  ;;  %v1888_v1 = vmul.f32 %v5883_v33, %v5883_v33 }
 0x1ba   :  { %v5892_v2 = vpop.f32.mrb[18].mxu1 }
 0x1bb   :  { %9145 = vst [vmem:[#allocation40_spill] sm:$0xff] %v5892_v2  ;;  %v5894_v51 = vadd.f32 %v2086_v45, %v1883_v3  ;;  %v2094_v46 = vadd.f32 %v1888_v1, %v1887_v57  ;;  %v1663_v63 = vadd.f32 %v1662_v49, %v5892_v2  ;;  %v1889_v59 = vmul.f32 %v5892_v2, %v5892_v2  ;;  %v5899_v42 = vpop.f32.mrb[20].mxu0  ;;  %v5901_v21 = vpop.f32.mrb[19].mxu1 }
 0x1bc   :  { %9146 = vst [vmem:[#allocation41_spill] sm:$0xff] %v5899_v42  ;;  %9147 = vst [vmem:[#allocation42_spill] sm:$0xff] %v5901_v21  ;;  %v1894_v62 = vmul.f32 %v5899_v42, %v5899_v42  ;;  %v1890_v33 = vmul.f32 %v5901_v21, %v5901_v21  ;;  %v5907_v38 = vpop.f32.mrb[21].mxu0 }
 0x1bd   :  { %9148 = vst [vmem:[#allocation43_spill] sm:$0xff] %v5907_v38  ;;  %v2095_v3 = vadd.f32 %v2094_v46, %v1889_v59  ;;  %v5910_v57 = vadd.f32 %v1663_v63, %v5901_v21  ;;  %v1671_v45 = vadd.f32 %v5907_v38, %v5899_v42  ;;  %v1895_v49 = vmul.f32 %v5907_v38, %v5907_v38 }
 0x1be   :  { %v5916_v1 = vpop.f32.mrb[20].mxu1 }
 0x1bf   :  { %9149 = vst [vmem:[#allocation44_spill] sm:$0xff] %v5916_v1  ;;  %v5918_v2 = vadd.f32 %v2095_v3, %v1890_v33  ;;  %v2103_v5 = vadd.f32 %v1895_v49, %v1894_v62  ;;  %v1672_v29 = vadd.f32 %v1671_v45, %v5916_v1  ;;  %v1896_v24 = vmul.f32 %v5916_v1, %v5916_v1  ;;  %v5923_v59 = vpop.f32.mrb[22].mxu0  ;;  %v5925_v63 = vpop.f32.mrb[21].mxu1 }
 0x1c0   :  { %9150 = vst [vmem:[#allocation45_spill] sm:$0xff] %v5923_v59  ;;  %9151 = vst [vmem:[#allocation46_spill] sm:$0xff] %v5925_v63  ;;  %v1901_v46 = vmul.f32 %v5923_v59, %v5923_v59  ;;  %v1897_v38 = vmul.f32 %v5925_v63, %v5925_v63  ;;  %v5931_v42 = vpop.f32.mrb[23].mxu0 }
 0x1c1   :  { %9152 = vst [vmem:[#allocation47_spill] sm:$0xff] %v5931_v42  ;;  %v2104_v33 = vadd.f32 %v2103_v5, %v1896_v24  ;;  %v5934_v62 = vadd.f32 %v1672_v29, %v5925_v63  ;;  %v1680_v3 = vadd.f32 %v5931_v42, %v5923_v59  ;;  %v1902_v45 = vmul.f32 %v5931_v42, %v5931_v42 }
 0x1c2   :  { %v5940_v49 = vpop.f32.mrb[22].mxu1 }
 0x1c3   :  { %9153 = vst [vmem:[#allocation48_spill] sm:$0xff] %v5940_v49  ;;  %v5942_v1 = vadd.f32 %v2104_v33, %v1897_v38  ;;  %v2112_v21 = vadd.f32 %v1902_v45, %v1901_v46  ;;  %v1681_v13 = vadd.f32 %v1680_v3, %v5940_v49  ;;  %v1903_v60 = vmul.f32 %v5940_v49, %v5940_v49  ;;  %v5947_v24 = vpop.f32.mrb[24].mxu0  ;;  %v5949_v29 = vpop.f32.mrb[23].mxu1 }
 0x1c4   :  { %9154 = vst [vmem:[#allocation49_spill] sm:$0xff] %v5947_v24  ;;  %9155 = vst [vmem:[#allocation50_spill] sm:$0xff] %v5949_v29  ;;  %v1908_v5 = vmul.f32 %v5947_v24, %v5947_v24  ;;  %v1904_v42 = vmul.f32 %v5949_v29, %v5949_v29  ;;  %v5955_v59 = vpop.f32.mrb[25].mxu0 }
 0x1c5   :  { %9156 = vst [vmem:[#allocation51_spill] sm:$0xff] %v5955_v59  ;;  %v2113_v38 = vadd.f32 %v2112_v21, %v1903_v60  ;;  %v5958_v46 = vadd.f32 %v1681_v13, %v5949_v29  ;;  %v1689_v33 = vadd.f32 %v5955_v59, %v5947_v24  ;;  %v1909_v3 = vmul.f32 %v5955_v59, %v5955_v59 }
 0x1c6   :  { %v5964_v45 = vpop.f32.mrb[24].mxu1 }
 0x1c7   :  { %9157 = vst [vmem:[#allocation52_spill] sm:$0xff] %v5964_v45  ;;  %v5966_v49 = vadd.f32 %v2113_v38, %v1904_v42  ;;  %v2121_v63 = vadd.f32 %v1909_v3, %v1908_v5  ;;  %v1690_v30 = vadd.f32 %v1689_v33, %v5964_v45  ;;  %v1910_v16 = vmul.f32 %v5964_v45, %v5964_v45  ;;  %v5971_v60 = vpop.f32.mrb[26].mxu0  ;;  %v5973_v13 = vpop.f32.mrb[25].mxu1 }
 0x1c8   :  { %9158 = vst [vmem:[#allocation53_spill] sm:$0xff] %v5971_v60  ;;  %9159 = vst [vmem:[#allocation54_spill] sm:$0xff] %v5973_v13  ;;  %v1915_v21 = vmul.f32 %v5971_v60, %v5971_v60  ;;  %v1911_v59 = vmul.f32 %v5973_v13, %v5973_v13  ;;  %v5979_v24 = vpop.f32.mrb[27].mxu0 }
 0x1c9   :  { %9160 = vst [vmem:[#allocation55_spill] sm:$0xff] %v5979_v24  ;;  %v2122_v42 = vadd.f32 %v2121_v63, %v1910_v16  ;;  %v5982_v5 = vadd.f32 %v1690_v30, %v5973_v13  ;;  %v1698_v38 = vadd.f32 %v5979_v24, %v5971_v60  ;;  %v1916_v33 = vmul.f32 %v5979_v24, %v5979_v24 }
 0x1ca   :  { %v5988_v3 = vpop.f32.mrb[26].mxu1 }
 0x1cb   :  { %9161 = vst [vmem:[#allocation56_spill] sm:$0xff] %v5988_v3  ;;  %v5990_v45 = vadd.f32 %v2122_v42, %v1911_v59  ;;  %v2130_v29 = vadd.f32 %v1916_v33, %v1915_v21  ;;  %v1699_v28 = vadd.f32 %v1698_v38, %v5988_v3  ;;  %v1917_v10 = vmul.f32 %v5988_v3, %v5988_v3  ;;  %v5995_v16 = vpop.f32.mrb[28].mxu0  ;;  %v5997_v30 = vpop.f32.mrb[27].mxu1 }
 0x1cc   :  { %9162 = vst [vmem:[#allocation57_spill] sm:$0xff] %v5995_v16  ;;  %9163 = vst [vmem:[#allocation58_spill] sm:$0xff] %v5997_v30  ;;  %v1922_v63 = vmul.f32 %v5995_v16, %v5995_v16  ;;  %v1918_v24 = vmul.f32 %v5997_v30, %v5997_v30  ;;  %v6003_v60 = vpop.f32.mrb[29].mxu0 }
 0x1cd   :  { %9164 = vst [vmem:[#allocation59_spill] sm:$0xff] %v6003_v60  ;;  %v2131_v59 = vadd.f32 %v2130_v29, %v1917_v10  ;;  %v6006_v21 = vadd.f32 %v1699_v28, %v5997_v30  ;;  %v1707_v42 = vadd.f32 %v6003_v60, %v5995_v16  ;;  %v1923_v38 = vmul.f32 %v6003_v60, %v6003_v60 }
 0x1ce   :  { %v6012_v33 = vpop.f32.mrb[28].mxu1 }
 0x1cf   :  { %9165 = vst [vmem:[#allocation60_spill] sm:$0xff] %v6012_v33  ;;  %v6014_v3 = vadd.f32 %v2131_v59, %v1918_v24  ;;  %v2139_v13 = vadd.f32 %v1923_v38, %v1922_v63  ;;  %v1708_v11 = vadd.f32 %v1707_v42, %v6012_v33  ;;  %v1924_v36 = vmul.f32 %v6012_v33, %v6012_v33  ;;  %v6019_v10 = vpop.f32.mrb[30].mxu0  ;;  %v6021_v28 = vpop.f32.mrb[29].mxu1 }
 0x1d0   :  { %9166 = vst [vmem:[#allocation61_spill] sm:$0xff] %v6019_v10  ;;  %9167 = vst [vmem:[#allocation62_spill] sm:$0xff] %v6021_v28  ;;  %v1929_v29 = vmul.f32 %v6019_v10, %v6019_v10  ;;  %v1925_v60 = vmul.f32 %v6021_v28, %v6021_v28  ;;  %v6027_v16 = vpop.f32.mrb[31].mxu0 }
 0x1d1   :  { %9168 = vst [vmem:[#allocation63_spill] sm:$0xff] %v6027_v16  ;;  %v2140_v24 = vadd.f32 %v2139_v13, %v1924_v36  ;;  %v6030_v63 = vadd.f32 %v1708_v11, %v6021_v28  ;;  %v1716_v59 = vadd.f32 %v6027_v16, %v6019_v10  ;;  %v1930_v42 = vmul.f32 %v6027_v16, %v6027_v16 }
 0x1d2   :  { %v6036_v38 = vpop.f32.mrb[30].mxu1 }
 0x1d3   :  { %9169 = vst [vmem:[#allocation64_spill] sm:$0xff] %v6036_v38  ;;  %v6038_v33 = vadd.f32 %v2140_v24, %v1925_v60  ;;  %v2148_v30 = vadd.f32 %v1930_v42, %v1929_v29  ;;  %v1717_v9 = vadd.f32 %v1716_v59, %v6036_v38  ;;  %v1931_v44 = vmul.f32 %v6036_v38, %v6036_v38  ;;  %v6043_v36 = vpop.f32.mrb[32].mxu0  ;;  %v6045_v11 = vpop.f32.mrb[31].mxu1 }
 0x1d4   :  { %9170 = vst [vmem:[#allocation65_spill] sm:$0xff] %v6043_v36  ;;  %9171 = vst [vmem:[#allocation66_spill] sm:$0xff] %v6045_v11  ;;  %v1936_v13 = vmul.f32 %v6043_v36, %v6043_v36  ;;  %v1932_v16 = vmul.f32 %v6045_v11, %v6045_v11  ;;  %v6051_v10 = vpop.f32.mrb[33].mxu0 }
 0x1d5   :  { %9172 = vst [vmem:[#allocation67_spill] sm:$0xff] %v6051_v10  ;;  %v2149_v60 = vadd.f32 %v2148_v30, %v1931_v44  ;;  %v6054_v29 = vadd.f32 %v1717_v9, %v6045_v11  ;;  %v1725_v24 = vadd.f32 %v6051_v10, %v6043_v36  ;;  %v1937_v59 = vmul.f32 %v6051_v10, %v6051_v10 }
 0x1d6   :  { %v6060_v42 = vpop.f32.mrb[32].mxu1 }
 0x1d7   :  { %9173 = vst [vmem:[#allocation68_spill] sm:$0xff] %v6060_v42  ;;  %v6062_v38 = vadd.f32 %v2149_v60, %v1932_v16  ;;  %v2157_v28 = vadd.f32 %v1937_v59, %v1936_v13  ;;  %v1726_v56 = vadd.f32 %v1725_v24, %v6060_v42  ;;  %v1938_v19 = vmul.f32 %v6060_v42, %v6060_v42  ;;  %v6067_v44 = vpop.f32.mrb[34].mxu0  ;;  %v6069_v9 = vpop.f32.mrb[33].mxu1 }
 0x1d8   :  { %9174 = vst [vmem:[#allocation69_spill] sm:$0xff] %v6067_v44  ;;  %9175 = vst [vmem:[#allocation70_spill] sm:$0xff] %v6069_v9  ;;  %v1943_v30 = vmul.f32 %v6067_v44, %v6067_v44  ;;  %v1939_v10 = vmul.f32 %v6069_v9, %v6069_v9  ;;  %v6075_v36 = vpop.f32.mrb[35].mxu0 }
 0x1d9   :  { %9176 = vst [vmem:[#allocation71_spill] sm:$0xff] %v6075_v36  ;;  %v2158_v16 = vadd.f32 %v2157_v28, %v1938_v19  ;;  %v6078_v13 = vadd.f32 %v1726_v56, %v6069_v9  ;;  %v1734_v60 = vadd.f32 %v6075_v36, %v6067_v44  ;;  %v1944_v24 = vmul.f32 %v6075_v36, %v6075_v36 }
 0x1da   :  { %v6084_v59 = vpop.f32.mrb[34].mxu1 }
 0x1db   :  { %9177 = vst [vmem:[#allocation72_spill] sm:$0xff] %v6084_v59  ;;  %v6086_v42 = vadd.f32 %v2158_v16, %v1939_v10  ;;  %v2166_v11 = vadd.f32 %v1944_v24, %v1943_v30  ;;  %v1735_v14 = vadd.f32 %v1734_v60, %v6084_v59  ;;  %v1945_v18 = vmul.f32 %v6084_v59, %v6084_v59  ;;  %v6091_v19 = vpop.f32.mrb[36].mxu0  ;;  %v6093_v56 = vpop.f32.mrb[35].mxu1 }
 0x1dc   :  { %9178 = vst [vmem:[#allocation73_spill] sm:$0xff] %v6091_v19  ;;  %9179 = vst [vmem:[#allocation74_spill] sm:$0xff] %v6093_v56  ;;  %v1950_v28 = vmul.f32 %v6091_v19, %v6091_v19  ;;  %v1946_v36 = vmul.f32 %v6093_v56, %v6093_v56  ;;  %v6099_v44 = vpop.f32.mrb[37].mxu0 }
 0x1dd   :  { %9180 = vst [vmem:[#allocation75_spill] sm:$0xff] %v6099_v44  ;;  %v2167_v10 = vadd.f32 %v2166_v11, %v1945_v18  ;;  %v6102_v30 = vadd.f32 %v1735_v14, %v6093_v56  ;;  %v1743_v16 = vadd.f32 %v6099_v44, %v6091_v19  ;;  %v1951_v60 = vmul.f32 %v6099_v44, %v6099_v44 }
 0x1de   :  { %v6108_v24 = vpop.f32.mrb[36].mxu1 }
 0x1df   :  { %9181 = vst [vmem:[#allocation76_spill] sm:$0xff] %v6108_v24  ;;  %v6110_v59 = vadd.f32 %v2167_v10, %v1946_v36  ;;  %v2175_v9 = vadd.f32 %v1951_v60, %v1950_v28  ;;  %v1744_v31 = vadd.f32 %v1743_v16, %v6108_v24  ;;  %v1952_v26 = vmul.f32 %v6108_v24, %v6108_v24  ;;  %v6115_v18 = vpop.f32.mrb[38].mxu0  ;;  %v6117_v14 = vpop.f32.mrb[37].mxu1 }
 0x1e0   :  { %9182 = vst [vmem:[#allocation77_spill] sm:$0xff] %v6115_v18  ;;  %9183 = vst [vmem:[#allocation78_spill] sm:$0xff] %v6117_v14  ;;  %v1957_v11 = vmul.f32 %v6115_v18, %v6115_v18  ;;  %v1953_v44 = vmul.f32 %v6117_v14, %v6117_v14  ;;  %v6123_v19 = vpop.f32.mrb[39].mxu0 }
 0x1e1   :  { %9184 = vst [vmem:[#allocation79_spill] sm:$0xff] %v6123_v19  ;;  %v2176_v36 = vadd.f32 %v2175_v9, %v1952_v26  ;;  %v6126_v28 = vadd.f32 %v1744_v31, %v6117_v14  ;;  %v1752_v10 = vadd.f32 %v6123_v19, %v6115_v18  ;;  %v1958_v16 = vmul.f32 %v6123_v19, %v6123_v19 }
 0x1e2   :  { %v6132_v60 = vpop.f32.mrb[38].mxu1 }
 0x1e3   :  { %9185 = vst [vmem:[#allocation80_spill] sm:$0xff] %v6132_v60  ;;  %v6134_v24 = vadd.f32 %v2176_v36, %v1953_v44  ;;  %v2184_v56 = vadd.f32 %v1958_v16, %v1957_v11  ;;  %v1753_v53 = vadd.f32 %v1752_v10, %v6132_v60  ;;  %v1959_v54 = vmul.f32 %v6132_v60, %v6132_v60  ;;  %v6139_v26 = vpop.f32.mrb[40].mxu0  ;;  %v6141_v31 = vpop.f32.mrb[39].mxu1 }
 0x1e4   :  { %9186 = vst [vmem:[#allocation81_spill] sm:$0xff] %v6139_v26  ;;  %9187 = vst [vmem:[#allocation82_spill] sm:$0xff] %v6141_v31  ;;  %v1964_v9 = vmul.f32 %v6139_v26, %v6139_v26  ;;  %v1960_v19 = vmul.f32 %v6141_v31, %v6141_v31  ;;  %v6147_v18 = vpop.f32.mrb[41].mxu0 }
 0x1e5   :  { %9188 = vst [vmem:[#allocation83_spill] sm:$0xff] %v6147_v18  ;;  %v2185_v44 = vadd.f32 %v2184_v56, %v1959_v54  ;;  %v6150_v11 = vadd.f32 %v1753_v53, %v6141_v31  ;;  %v1761_v36 = vadd.f32 %v6147_v18, %v6139_v26  ;;  %v1965_v10 = vmul.f32 %v6147_v18, %v6147_v18 }
 0x1e6   :  { %v6156_v16 = vpop.f32.mrb[40].mxu1 }
 0x1e7   :  { %9189 = vst [vmem:[#allocation84_spill] sm:$0xff] %v6156_v16  ;;  %v6158_v60 = vadd.f32 %v2185_v44, %v1960_v19  ;;  %v2193_v14 = vadd.f32 %v1965_v10, %v1964_v9  ;;  %v1762_v48 = vadd.f32 %v1761_v36, %v6156_v16  ;;  %v1966_v27 = vmul.f32 %v6156_v16, %v6156_v16  ;;  %v6163_v54 = vpop.f32.mrb[42].mxu0  ;;  %v6165_v53 = vpop.f32.mrb[41].mxu1 }
 0x1e8   :  { %9190 = vst [vmem:[#allocation85_spill] sm:$0xff] %v6163_v54  ;;  %9191 = vst [vmem:[#allocation86_spill] sm:$0xff] %v6165_v53  ;;  %v1971_v56 = vmul.f32 %v6163_v54, %v6163_v54  ;;  %v1967_v18 = vmul.f32 %v6165_v53, %v6165_v53  ;;  %v6171_v26 = vpop.f32.mrb[43].mxu0 }
 0x1e9   :  { %9192 = vst [vmem:[#allocation87_spill] sm:$0xff] %v6171_v26  ;;  %v2194_v19 = vadd.f32 %v2193_v14, %v1966_v27  ;;  %v6174_v9 = vadd.f32 %v1762_v48, %v6165_v53  ;;  %v1770_v44 = vadd.f32 %v6171_v26, %v6163_v54  ;;  %v1972_v36 = vmul.f32 %v6171_v26, %v6171_v26 }
 0x1ea   :  { %v6180_v10 = vpop.f32.mrb[42].mxu1 }
 0x1eb   :  { %9193 = vst [vmem:[#allocation88_spill] sm:$0xff] %v6180_v10  ;;  %v6182_v16 = vadd.f32 %v2194_v19, %v1967_v18  ;;  %v2202_v31 = vadd.f32 %v1972_v36, %v1971_v56  ;;  %v1771_v23 = vadd.f32 %v1770_v44, %v6180_v10  ;;  %v1973_v40 = vmul.f32 %v6180_v10, %v6180_v10  ;;  %v6187_v27 = vpop.f32.mrb[44].mxu0  ;;  %v6189_v48 = vpop.f32.mrb[43].mxu1 }
 0x1ec   :  { %9194 = vst [vmem:[#allocation89_spill] sm:$0xff] %v6187_v27  ;;  %9195 = vst [vmem:[#allocation90_spill] sm:$0xff] %v6189_v48  ;;  %v1978_v14 = vmul.f32 %v6187_v27, %v6187_v27  ;;  %v1974_v26 = vmul.f32 %v6189_v48, %v6189_v48  ;;  %v6195_v54 = vpop.f32.mrb[45].mxu0 }
 0x1ed   :  { %9196 = vst [vmem:[#allocation91_spill] sm:$0xff] %v6195_v54  ;;  %v2203_v18 = vadd.f32 %v2202_v31, %v1973_v40  ;;  %v6198_v56 = vadd.f32 %v1771_v23, %v6189_v48  ;;  %v1779_v19 = vadd.f32 %v6195_v54, %v6187_v27  ;;  %v1979_v44 = vmul.f32 %v6195_v54, %v6195_v54 }
 0x1ee   :  { %v6204_v36 = vpop.f32.mrb[44].mxu1 }
 0x1ef   :  { %9197 = vst [vmem:[#allocation92_spill] sm:$0xff] %v6204_v36  ;;  %v6206_v10 = vadd.f32 %v2203_v18, %v1974_v26  ;;  %v2211_v53 = vadd.f32 %v1979_v44, %v1978_v14  ;;  %v1780_v61 = vadd.f32 %v1779_v19, %v6204_v36  ;;  %v1980_v20 = vmul.f32 %v6204_v36, %v6204_v36  ;;  %v6211_v40 = vpop.f32.mrb[46].mxu0  ;;  %v6213_v23 = vpop.f32.mrb[45].mxu1 }
 0x1f0   :  { %9198 = vst [vmem:[#allocation93_spill] sm:$0xff] %v6211_v40  ;;  %9199 = vst [vmem:[#allocation94_spill] sm:$0xff] %v6213_v23  ;;  %v1985_v31 = vmul.f32 %v6211_v40, %v6211_v40  ;;  %v1981_v54 = vmul.f32 %v6213_v23, %v6213_v23  ;;  %v6219_v27 = vpop.f32.mrb[47].mxu0 }
 0x1f1   :  { %9200 = vst [vmem:[#allocation95_spill] sm:$0xff] %v6219_v27  ;;  %v2212_v26 = vadd.f32 %v2211_v53, %v1980_v20  ;;  %v6222_v14 = vadd.f32 %v1780_v61, %v6213_v23  ;;  %v1788_v18 = vadd.f32 %v6219_v27, %v6211_v40  ;;  %v1986_v19 = vmul.f32 %v6219_v27, %v6219_v27 }
 0x1f2   :  { %v6228_v44 = vpop.f32.mrb[46].mxu1 }
 0x1f3   :  { %9201 = vst [vmem:[#allocation96_spill] sm:$0xff] %v6228_v44  ;;  %v6230_v36 = vadd.f32 %v2212_v26, %v1981_v54  ;;  %v2220_v48 = vadd.f32 %v1986_v19, %v1985_v31  ;;  %v1789_v15 = vadd.f32 %v1788_v18, %v6228_v44  ;;  %v1987_v6 = vmul.f32 %v6228_v44, %v6228_v44  ;;  %v6235_v20 = vpop.f32.mrb[48].mxu0  ;;  %v6237_v61 = vpop.f32.mrb[47].mxu1 }
 0x1f4   :  { %9202 = vst [vmem:[#allocation97_spill] sm:$0xff] %v6235_v20  ;;  %9203 = vst [vmem:[#allocation98_spill] sm:$0xff] %v6237_v61  ;;  %v1992_v53 = vmul.f32 %v6235_v20, %v6235_v20  ;;  %v1988_v27 = vmul.f32 %v6237_v61, %v6237_v61  ;;  %v6243_v40 = vpop.f32.mrb[49].mxu0 }
 0x1f5   :  { %9204 = vst [vmem:[#allocation99_spill] sm:$0xff] %v6243_v40  ;;  %v2221_v54 = vadd.f32 %v2220_v48, %v1987_v6  ;;  %v6246_v31 = vadd.f32 %v1789_v15, %v6237_v61  ;;  %v1797_v26 = vadd.f32 %v6243_v40, %v6235_v20  ;;  %v1993_v18 = vmul.f32 %v6243_v40, %v6243_v40 }
 0x1f6   :  { %v6252_v19 = vpop.f32.mrb[48].mxu1 }
 0x1f7   :  { %9205 = vst [vmem:[#allocation100_spill] sm:$0xff] %v6252_v19  ;;  %v6254_v44 = vadd.f32 %v2221_v54, %v1988_v27  ;;  %v2229_v23 = vadd.f32 %v1993_v18, %v1992_v53  ;;  %v1798_v17 = vadd.f32 %v1797_v26, %v6252_v19  ;;  %v1994_v8 = vmul.f32 %v6252_v19, %v6252_v19  ;;  %v6259_v6 = vpop.f32.mrb[50].mxu0  ;;  %v6261_v15 = vpop.f32.mrb[49].mxu1 }
 0x1f8   :  { %9207 = vst [vmem:[#allocation102_spill] sm:$0xff] %v6259_v6  ;;  %9208 = vst [vmem:[#allocation103_spill] sm:$0xff] %v6261_v15  ;;  %v1999_v48 = vmul.f32 %v6259_v6, %v6259_v6  ;;  %v1995_v40 = vmul.f32 %v6261_v15, %v6261_v15  ;;  %v6267_v20 = vpop.f32.mrb[51].mxu0 }
 0x1f9   :  { %9206 = vst [vmem:[#allocation101_spill] sm:$0xff] %v6254_v44  ;;  %9209 = vst [vmem:[#allocation104_spill] sm:$0xff] %v6267_v20  ;;  %v2230_v27 = vadd.f32 %v2229_v23, %v1994_v8  ;;  %v6270_v53 = vadd.f32 %v1798_v17, %v6261_v15  ;;  %v1806_v54 = vadd.f32 %v6267_v20, %v6259_v6 }
 0x1fa   :  { %v2000_v26 = vmul.f32 %v6267_v20, %v6267_v20  ;;  %v6276_v18 = vpop.f32.mrb[50].mxu1 }
 0x1fb   :  { %9210 = vst [vmem:[#allocation105_spill] sm:$0xff] %v6270_v53  ;;  %9211 = vst [vmem:[#allocation106_spill] sm:$0xff] %v6276_v18  ;;  %v6278_v19 = vadd.f32 %v2230_v27, %v1995_v40  ;;  %v1807_v52 = vadd.f32 %v1806_v54, %v6276_v18  ;;  %v2001_v44 = vmul.f32 %v6276_v18, %v6276_v18  ;;  %v6283_v8 = vpop.f32.mrb[52].mxu0  ;;  %v6285_v17 = vpop.f32.mrb[51].mxu1 }
 0x1fc   :  { %v2238_v61 = vadd.f32 %v2000_v26, %v1999_v48  ;;  %9213 = vst [vmem:[#allocation108_spill] sm:$0xff] %v6283_v8  ;;  %9214 = vst [vmem:[#allocation109_spill] sm:$0xff] %v6285_v17  ;;  %v2006_v23 = vmul.f32 %v6283_v8, %v6283_v8  ;;  %v2002_v20 = vmul.f32 %v6285_v17, %v6285_v17  ;;  %v6291_v6 = vpop.f32.mrb[53].mxu0 }
 0x1fd   :  { %9212 = vst [vmem:[#allocation107_spill] sm:$0xff] %v6278_v19  ;;  %9215 = vst [vmem:[#allocation110_spill] sm:$0xff] %v6291_v6  ;;  %v6294_v48 = vadd.f32 %v1807_v52, %v6285_v17  ;;  %v1815_v27 = vadd.f32 %v6291_v6, %v6283_v8  ;;  %v2007_v54 = vmul.f32 %v6291_v6, %v6291_v6 }
 0x1fe   :  { %v2239_v40 = vadd.f32 %v2238_v61, %v2001_v44  ;;  %v6300_v26 = vpop.f32.mrb[52].mxu1 }
 0x1ff   :  { %9216 = vst [vmem:[#allocation111_spill] sm:$0xff] %v6300_v26  ;;  %v2247_v15 = vadd.f32 %v2007_v54, %v2006_v23  ;;  %v1816_v19 = vadd.f32 %v1815_v27, %v6300_v26  ;;  %v2008_v53 = vmul.f32 %v6300_v26, %v6300_v26  ;;  %v6307_v44 = vpop.f32.mrb[53].mxu1  ;;  %v6309_v52 = vpop.f32.mrb[54].mxu0 }
 0x200   :  { %v6302_v18 = vadd.f32 %v2239_v40, %v2002_v20  ;;  %9217 = vst [vmem:[#allocation112_spill] sm:$0xff] %v6307_v44  ;;  %9218 = vst [vmem:[#allocation113_spill] sm:$0xff] %v6309_v52  ;;  %v1583_v61 = vadd.f32 %v5694_v47, %v6309_v52  ;;  %v1828_v6 = vmul.f32 %v6309_v52, %v6309_v52  ;;  %v6315_v8 = vpop.f32.mrb[55].mxu0 }
 0x201   :  { %9219 = vst [vmem:[#allocation114_spill] sm:$0xff] %v6315_v8  ;;  %v2248_v20 = vadd.f32 %v2247_v15, %v2008_v53  ;;  %v6318_v23 = vadd.f32 %v1816_v19, %v6307_v44  ;;  %v2009_v40 = vmul.f32 %v6307_v44, %v6307_v44  ;;  %v1829_v27 = vmul.f32 %v6315_v8, %v6315_v8 }
 0x202   :  { %v6324_v54 = vpop.f32.mrb[54].mxu1  ;;  %v1584_v47 = vadd.f32 %v1583_v61, %v6315_v8  ;;  %v2016_v26 = vadd.f32 %v5702_v39, %v1828_v6 }
 0x203   :  { %9220 = vst [vmem:[#allocation115_spill] sm:$0xff] %v6318_v23  ;;  %9221 = vst [vmem:[#allocation116_spill] sm:$0xff] %v6324_v54  ;;  %v6328_v17 = vadd.f32 %v2248_v20, %v2009_v40  ;;  %v1830_v15 = vmul.f32 %v6324_v54, %v6324_v54  ;;  %v6332_v53 = vpop.f32.mrb[56].mxu0  ;;  %v1448_v19 = vpop.f32.mrb[55].mxu1  ;;  %v1586_v44 = vsel %vm1585_vm1, %v6324_v54, 0.0 }
 0x204   :  { %9223 = vst [vmem:[#allocation118_spill] sm:$0xff] %v6332_v53  ;;  %v1593_v52 = vadd.f32 %v5718_v43, %v6332_v53  ;;  %v1835_v23 = vmul.f32 %v6332_v53, %v6332_v53  ;;  %v6340_v61 = vpop.f32.mrb[57].mxu0  ;;  %v1587_v39 = vadd.f32 %v1586_v44, %v1584_v47  ;;  %v2017_v6 = vadd.f32 %v2016_v26, %v1829_v27 }
 0x205   :  { %9222 = vst [vmem:[#allocation117_spill] sm:$0xff] %v6328_v17  ;;  %v1836_v20 = vmul.f32 %v6340_v61, %v6340_v61  ;;  %v2018_v40 = vsel %vm1585_vm1, %v1830_v15, 0.0 }
 0x206   :  { %v6345_v8 = vpop.f32.mrb[56].mxu1  ;;  %1588 = vadd.xlane.f32.xlu1 %v1587_v39  ;;  %v2019_v19 = vadd.f32 %v2018_v40, %v2017_v6  ;;  %v1594_v54 = vadd.f32 %v1593_v52, %v6340_v61  ;;  %v2025_v43 = vadd.f32 %v5726_v7, %v1835_v23 }
 0x207   :  { %9224 = vst [vmem:[#allocation119_spill] sm:$0xff] %v6345_v8  ;;  %v1837_v53 = vmul.f32 %v6345_v8, %v6345_v8  ;;  %v6351_v17 = vpop.f32.mrb[58].mxu0  ;;  %v1453_v44 = vpop.f32.mrb[57].mxu1  ;;  %v1595_v26 = vsel %vm1585_vm1, %v6345_v8, 0.0 }
 0x208   :  { %9225 = vst [vmem:[#allocation120_spill] sm:$0xff] %v6351_v17  ;;  %v1602_v27 = vadd.f32 %v5742_v0, %v6351_v17  ;;  %v1842_v47 = vmul.f32 %v6351_v17, %v6351_v17  ;;  %v6359_v15 = vpop.f32.mrb[59].mxu0  ;;  %v1596_v52 = vadd.f32 %v1595_v26, %v1594_v54  ;;  %v2026_v39 = vadd.f32 %v2025_v43, %v1836_v20 }
 0x209   :  { %v1843_v7 = vmul.f32 %v6359_v15, %v6359_v15  ;;  %v2027_v23 = vsel %vm1585_vm1, %v1837_v53, 0.0 }
 0x20a   :  { %v6364_v6 = vpop.f32.mrb[58].mxu1  ;;  %2020 = vadd.xlane.f32.xlu1 %v2019_v19  ;;  %1597 = vadd.xlane.f32.xlu0 %v1596_v52  ;;  %v2028_v40 = vadd.f32 %v2027_v23, %v2026_v39  ;;  %v2034_v44 = vadd.f32 %v5750_v34, %v1842_v47  ;;  %v1603_v0 = vadd.f32 %v1602_v27, %v6359_v15 }
 0x20b   :  { %v1844_v17 = vmul.f32 %v6364_v6, %v6364_v6  ;;  %v6370_v8 = vpop.f32.mrb[60].mxu0  ;;  %v1458_v54 = vpop.f32.mrb[59].mxu1  ;;  %v1604_v20 = vsel %vm1585_vm1, %v6364_v6, 0.0 }
 0x20c   :  { %9226 = vst [vmem:[#allocation121_spill] sm:$0xff] %v6370_v8  ;;  %v1611_v53 = vadd.f32 %v5766_v22, %v6370_v8  ;;  %v1849_v19 = vmul.f32 %v6370_v8, %v6370_v8  ;;  %v6378_v43 = vpop.f32.mrb[61].mxu0  ;;  %v2035_v34 = vadd.f32 %v2034_v44, %v1843_v7  ;;  %v1605_v26 = vadd.f32 %v1604_v20, %v1603_v0 }
 0x20d   :  { %v1850_v27 = vmul.f32 %v6378_v43, %v6378_v43  ;;  %v2036_v47 = vsel %vm1585_vm1, %v1844_v17, 0.0 }
 0x20e   :  { %v6383_v52 = vpop.f32.mrb[60].mxu1  ;;  %2029 = vadd.xlane.f32.xlu0 %v2028_v40  ;;  %v2037_v39 = vadd.f32 %v2036_v47, %v2035_v34  ;;  %v1612_v23 = vadd.f32 %v1611_v53, %v6378_v43  ;;  %v2043_v22 = vadd.f32 %v5774_v35, %v1849_v19 }
 0x20f   :  { %v1851_v54 = vmul.f32 %v6383_v52, %v6383_v52  ;;  %v6389_v8 = vpop.f32.mrb[62].mxu0  ;;  %v1463_v7 = vpop.f32.mrb[61].mxu1  ;;  %v1613_v44 = vsel %vm1585_vm1, %v6383_v52, 0.0 }
 0x210   :  { %9227 = vst [vmem:[#allocation122_spill] sm:$0xff] %v6389_v8  ;;  %v1620_v17 = vadd.f32 %v5790_v41, %v6389_v8  ;;  %v1856_v40 = vmul.f32 %v6389_v8, %v6389_v8  ;;  %2038 = vadd.xlane.f32.xlu1 %v2037_v39  ;;  %v6397_v0 = vpop.f32.mrb[63].mxu0  ;;  %v1614_v20 = vadd.f32 %v1613_v44, %v1612_v23 }
 0x211   :  { %v2044_v35 = vadd.f32 %v2043_v22, %v1850_v27  ;;  %v1857_v53 = vmul.f32 %v6397_v0, %v6397_v0  ;;  %v2045_v19 = vsel %vm1585_vm1, %v1851_v54, 0.0 }
 0x212   :  { %v6402_v34 = vpop.f32.mrb[62].mxu1  ;;  %1606 = vadd.xlane.f32.xlu0 %v1605_v26  ;;  %v2052_v7 = vadd.f32 %v5798_v25, %v1856_v40  ;;  %v1621_v41 = vadd.f32 %v1620_v17, %v6397_v0 }
 0x213   :  { %v2046_v47 = vadd.f32 %v2045_v19, %v2044_v35  ;;  %v1858_v39 = vmul.f32 %v6402_v34, %v6402_v34  ;;  %v6408_v8 = vpop.f32.mrb[64].mxu0  ;;  %v1468_v23 = vpop.f32.mrb[63].mxu1  ;;  %v1622_v27 = vsel %vm1585_vm1, %v6402_v34, 0.0 }
 0x214   :  { %9228 = vst [vmem:[#allocation123_spill] sm:$0xff] %v6408_v8  ;;  %v1629_v22 = vadd.f32 %v5814_v50, %v6408_v8  ;;  %v1863_v26 = vmul.f32 %v6408_v8, %v6408_v8  ;;  %1615 = vadd.xlane.f32.xlu1 %v1614_v20  ;;  %v6416_v54 = vpop.f32.mrb[65].mxu0  ;;  %v2053_v25 = vadd.f32 %v2052_v7, %v1857_v53 }
 0x215   :  { %v1623_v44 = vadd.f32 %v1622_v27, %v1621_v41  ;;  %v1864_v17 = vmul.f32 %v6416_v54, %v6416_v54  ;;  %v2054_v40 = vsel %vm1585_vm1, %v1858_v39, 0.0 }
 0x216   :  { %v6421_v35 = vpop.f32.mrb[64].mxu1  ;;  %2047 = vadd.xlane.f32.xlu0 %v2046_v47  ;;  %v2055_v19 = vadd.f32 %v2054_v40, %v2053_v25  ;;  %v1630_v23 = vadd.f32 %v1629_v22, %v6416_v54  ;;  %v2061_v50 = vadd.f32 %v5822_v32, %v1863_v26 }
 0x217   :  { %v1865_v20 = vmul.f32 %v6421_v35, %v6421_v35  ;;  %v6427_v8 = vpop.f32.mrb[66].mxu0  ;;  %v1473_v53 = vpop.f32.mrb[65].mxu1  ;;  %v1631_v7 = vsel %vm1585_vm1, %v6421_v35, 0.0 }
 0x218   :  { %9229 = vst [vmem:[#allocation124_spill] sm:$0xff] %v6427_v8  ;;  %v1638_v41 = vadd.f32 %v5838_v37, %v6427_v8  ;;  %v1870_v47 = vmul.f32 %v6427_v8, %v6427_v8  ;;  %2056 = vadd.xlane.f32.xlu1 %v2055_v19  ;;  %v6435_v39 = vpop.f32.mrb[67].mxu0  ;;  %v1632_v27 = vadd.f32 %v1631_v7, %v1630_v23 }
 0x219   :  { %v2062_v32 = vadd.f32 %v2061_v50, %v1864_v17  ;;  %v1871_v22 = vmul.f32 %v6435_v39, %v6435_v39  ;;  %v2063_v26 = vsel %vm1585_vm1, %v1865_v20, 0.0 }
 0x21a   :  { %v6440_v25 = vpop.f32.mrb[66].mxu1  ;;  %1624 = vadd.xlane.f32.xlu0 %v1623_v44  ;;  %v2070_v53 = vadd.f32 %v5846_v55, %v1870_v47  ;;  %v1639_v37 = vadd.f32 %v1638_v41, %v6435_v39 }
 0x21b   :  { %v2064_v40 = vadd.f32 %v2063_v26, %v2062_v32  ;;  %v1872_v19 = vmul.f32 %v6440_v25, %v6440_v25  ;;  %v6446_v8 = vpop.f32.mrb[68].mxu0  ;;  %v1478_v23 = vpop.f32.mrb[67].mxu1  ;;  %v1640_v17 = vsel %vm1585_vm1, %v6440_v25, 0.0 }
 0x21c   :  { %9230 = vst [vmem:[#allocation125_spill] sm:$0xff] %v6446_v8  ;;  %v1647_v50 = vadd.f32 %v5862_v58, %v6446_v8  ;;  %v1877_v44 = vmul.f32 %v6446_v8, %v6446_v8  ;;  %1633 = vadd.xlane.f32.xlu1 %v1632_v27  ;;  %v6454_v20 = vpop.f32.mrb[69].mxu0  ;;  %v2071_v55 = vadd.f32 %v2070_v53, %v1871_v22 }
 0x21d   :  { %v1641_v7 = vadd.f32 %v1640_v17, %v1639_v37  ;;  %v1878_v41 = vmul.f32 %v6454_v20, %v6454_v20  ;;  %v2072_v47 = vsel %vm1585_vm1, %v1872_v19, 0.0 }
 0x21e   :  { %v6459_v32 = vpop.f32.mrb[68].mxu1  ;;  %2065 = vadd.xlane.f32.xlu0 %v2064_v40  ;;  %v2073_v26 = vadd.f32 %v2072_v47, %v2071_v55  ;;  %v1648_v23 = vadd.f32 %v1647_v50, %v6454_v20  ;;  %v2079_v58 = vadd.f32 %v5870_v12, %v1877_v44 }
 0x21f   :  { %v1879_v27 = vmul.f32 %v6459_v32, %v6459_v32  ;;  %v6465_v8 = vpop.f32.mrb[70].mxu0  ;;  %v1483_v22 = vpop.f32.mrb[69].mxu1  ;;  %v1649_v53 = vsel %vm1585_vm1, %v6459_v32, 0.0 }
 0x220   :  { %9231 = vst [vmem:[#allocation126_spill] sm:$0xff] %v6465_v8  ;;  %v1656_v37 = vadd.f32 %v5886_v4, %v6465_v8  ;;  %v1884_v40 = vmul.f32 %v6465_v8, %v6465_v8  ;;  %2074 = vadd.xlane.f32.xlu1 %v2073_v26  ;;  %v6473_v19 = vpop.f32.mrb[71].mxu0  ;;  %v1650_v17 = vadd.f32 %v1649_v53, %v1648_v23 }
 0x221   :  { %v2080_v12 = vadd.f32 %v2079_v58, %v1878_v41  ;;  %v1885_v50 = vmul.f32 %v6473_v19, %v6473_v19  ;;  %v2081_v44 = vsel %vm1585_vm1, %v1879_v27, 0.0 }
 0x222   :  { %v6478_v55 = vpop.f32.mrb[70].mxu1  ;;  %1642 = vadd.xlane.f32.xlu0 %v1641_v7  ;;  %v2088_v22 = vadd.f32 %v5894_v51, %v1884_v40  ;;  %v1657_v4 = vadd.f32 %v1656_v37, %v6473_v19 }
 0x223   :  { %v2082_v47 = vadd.f32 %v2081_v44, %v2080_v12  ;;  %v1886_v26 = vmul.f32 %v6478_v55, %v6478_v55  ;;  %v6484_v8 = vpop.f32.mrb[72].mxu0  ;;  %v1488_v23 = vpop.f32.mrb[71].mxu1  ;;  %v1658_v41 = vsel %vm1585_vm1, %v6478_v55, 0.0 }
 0x224   :  { %9232 = vst [vmem:[#allocation127_spill] sm:$0xff] %v6484_v8  ;;  %v1665_v58 = vadd.f32 %v5910_v57, %v6484_v8  ;;  %v1891_v7 = vmul.f32 %v6484_v8, %v6484_v8  ;;  %1651 = vadd.xlane.f32.xlu1 %v1650_v17  ;;  %v6492_v27 = vpop.f32.mrb[73].mxu0  ;;  %v2089_v51 = vadd.f32 %v2088_v22, %v1885_v50 }
 0x225   :  { %v1659_v53 = vadd.f32 %v1658_v41, %v1657_v4  ;;  %v1892_v37 = vmul.f32 %v6492_v27, %v6492_v27  ;;  %v2090_v40 = vsel %vm1585_vm1, %v1886_v26, 0.0 }
 0x226   :  { %v6497_v12 = vpop.f32.mrb[72].mxu1  ;;  %2083 = vadd.xlane.f32.xlu0 %v2082_v47  ;;  %v2091_v44 = vadd.f32 %v2090_v40, %v2089_v51  ;;  %v1666_v23 = vadd.f32 %v1665_v58, %v6492_v27  ;;  %v2097_v57 = vadd.f32 %v5918_v2, %v1891_v7 }
 0x227   :  { %v1893_v17 = vmul.f32 %v6497_v12, %v6497_v12  ;;  %v6503_v8 = vpop.f32.mrb[74].mxu0  ;;  %v1493_v50 = vpop.f32.mrb[73].mxu1  ;;  %v1667_v22 = vsel %vm1585_vm1, %v6497_v12, 0.0 }
 0x228   :  { %9233 = vst [vmem:[#allocation128_spill] sm:$0xff] %v6503_v8  ;;  %v1674_v4 = vadd.f32 %v5934_v62, %v6503_v8  ;;  %v1898_v47 = vmul.f32 %v6503_v8, %v6503_v8  ;;  %2092 = vadd.xlane.f32.xlu1 %v2091_v44  ;;  %v6511_v26 = vpop.f32.mrb[75].mxu0  ;;  %v1668_v41 = vadd.f32 %v1667_v22, %v1666_v23 }
 0x229   :  { %v2098_v2 = vadd.f32 %v2097_v57, %v1892_v37  ;;  %v1899_v58 = vmul.f32 %v6511_v26, %v6511_v26  ;;  %v2099_v7 = vsel %vm1585_vm1, %v1893_v17, 0.0 }
 0x22a   :  { %v6516_v51 = vpop.f32.mrb[74].mxu1  ;;  %1660 = vadd.xlane.f32.xlu0 %v1659_v53  ;;  %v2106_v50 = vadd.f32 %v5942_v1, %v1898_v47  ;;  %v1675_v62 = vadd.f32 %v1674_v4, %v6511_v26 }
 0x22b   :  { %v2100_v40 = vadd.f32 %v2099_v7, %v2098_v2  ;;  %v1900_v44 = vmul.f32 %v6516_v51, %v6516_v51  ;;  %v6522_v8 = vpop.f32.mrb[76].mxu0  ;;  %v1498_v23 = vpop.f32.mrb[75].mxu1  ;;  %v1676_v37 = vsel %vm1585_vm1, %v6516_v51, 0.0 }
 0x22c   :  { %9234 = vst [vmem:[#allocation129_spill] sm:$0xff] %v6522_v8  ;;  %v1683_v57 = vadd.f32 %v5958_v46, %v6522_v8  ;;  %v1905_v53 = vmul.f32 %v6522_v8, %v6522_v8  ;;  %1669 = vadd.xlane.f32.xlu1 %v1668_v41  ;;  %v6530_v17 = vpop.f32.mrb[77].mxu0  ;;  %v2107_v1 = vadd.f32 %v2106_v50, %v1899_v58 }
 0x22d   :  { %v1677_v22 = vadd.f32 %v1676_v37, %v1675_v62  ;;  %v1906_v4 = vmul.f32 %v6530_v17, %v6530_v17  ;;  %v2108_v47 = vsel %vm1585_vm1, %v1900_v44, 0.0 }
 0x22e   :  { %v6535_v2 = vpop.f32.mrb[76].mxu1  ;;  %2101 = vadd.xlane.f32.xlu0 %v2100_v40  ;;  %v2109_v7 = vadd.f32 %v2108_v47, %v2107_v1  ;;  %v1684_v23 = vadd.f32 %v1683_v57, %v6530_v17  ;;  %v2115_v46 = vadd.f32 %v5966_v49, %v1905_v53 }
 0x22f   :  { %v1907_v41 = vmul.f32 %v6535_v2, %v6535_v2  ;;  %v6541_v8 = vpop.f32.mrb[78].mxu0  ;;  %v1503_v58 = vpop.f32.mrb[77].mxu1  ;;  %v1685_v50 = vsel %vm1585_vm1, %v6535_v2, 0.0 }
 0x230   :  { %9235 = vst [vmem:[#allocation130_spill] sm:$0xff] %v6541_v8  ;;  %v1692_v62 = vadd.f32 %v5982_v5, %v6541_v8  ;;  %v1912_v40 = vmul.f32 %v6541_v8, %v6541_v8  ;;  %2110 = vadd.xlane.f32.xlu1 %v2109_v7  ;;  %v6549_v44 = vpop.f32.mrb[79].mxu0  ;;  %v1686_v37 = vadd.f32 %v1685_v50, %v1684_v23 }
 0x231   :  { %v2116_v49 = vadd.f32 %v2115_v46, %v1906_v4  ;;  %v1913_v57 = vmul.f32 %v6549_v44, %v6549_v44  ;;  %v2117_v53 = vsel %vm1585_vm1, %v1907_v41, 0.0 }
 0x232   :  { %v6554_v1 = vpop.f32.mrb[78].mxu1  ;;  %1678 = vadd.xlane.f32.xlu0 %v1677_v22  ;;  %v2124_v58 = vadd.f32 %v5990_v45, %v1912_v40  ;;  %v1693_v5 = vadd.f32 %v1692_v62, %v6549_v44 }
 0x233   :  { %v2118_v47 = vadd.f32 %v2117_v53, %v2116_v49  ;;  %v1914_v7 = vmul.f32 %v6554_v1, %v6554_v1  ;;  %v6560_v8 = vpop.f32.mrb[80].mxu0  ;;  %v1508_v23 = vpop.f32.mrb[79].mxu1  ;;  %v1694_v4 = vsel %vm1585_vm1, %v6554_v1, 0.0 }
 0x234   :  { %9236 = vst [vmem:[#allocation131_spill] sm:$0xff] %v6560_v8  ;;  %v1701_v46 = vadd.f32 %v6006_v21, %v6560_v8  ;;  %v1919_v22 = vmul.f32 %v6560_v8, %v6560_v8  ;;  %1687 = vadd.xlane.f32.xlu1 %v1686_v37  ;;  %v6568_v41 = vpop.f32.mrb[81].mxu0  ;;  %v2125_v45 = vadd.f32 %v2124_v58, %v1913_v57 }
 0x235   :  { %v1695_v50 = vadd.f32 %v1694_v4, %v1693_v5  ;;  %v1920_v62 = vmul.f32 %v6568_v41, %v6568_v41  ;;  %v2126_v40 = vsel %vm1585_vm1, %v1914_v7, 0.0 }
 0x236   :  { %v6573_v49 = vpop.f32.mrb[80].mxu1  ;;  %2119 = vadd.xlane.f32.xlu0 %v2118_v47  ;;  %v2127_v53 = vadd.f32 %v2126_v40, %v2125_v45  ;;  %v1702_v23 = vadd.f32 %v1701_v46, %v6568_v41  ;;  %v2133_v21 = vadd.f32 %v6014_v3, %v1919_v22 }
 0x237   :  { %v1921_v37 = vmul.f32 %v6573_v49, %v6573_v49  ;;  %v6579_v8 = vpop.f32.mrb[82].mxu0  ;;  %v1513_v57 = vpop.f32.mrb[81].mxu1  ;;  %v1703_v58 = vsel %vm1585_vm1, %v6573_v49, 0.0 }
 0x238   :  { %9237 = vst [vmem:[#allocation132_spill] sm:$0xff] %v6579_v8  ;;  %v1710_v5 = vadd.f32 %v6030_v63, %v6579_v8  ;;  %v1926_v47 = vmul.f32 %v6579_v8, %v6579_v8  ;;  %2128 = vadd.xlane.f32.xlu1 %v2127_v53  ;;  %v6587_v7 = vpop.f32.mrb[83].mxu0  ;;  %v1704_v4 = vadd.f32 %v1703_v58, %v1702_v23 }
 0x239   :  { %v2134_v3 = vadd.f32 %v2133_v21, %v1920_v62  ;;  %v1927_v46 = vmul.f32 %v6587_v7, %v6587_v7  ;;  %v2135_v22 = vsel %vm1585_vm1, %v1921_v37, 0.0 }
 0x23a   :  { %v6592_v45 = vpop.f32.mrb[82].mxu1  ;;  %1696 = vadd.xlane.f32.xlu0 %v1695_v50  ;;  %v2142_v57 = vadd.f32 %v6038_v33, %v1926_v47  ;;  %v1711_v63 = vadd.f32 %v1710_v5, %v6587_v7 }
 0x23b   :  { %v2136_v40 = vadd.f32 %v2135_v22, %v2134_v3  ;;  %v1928_v53 = vmul.f32 %v6592_v45, %v6592_v45  ;;  %v6598_v8 = vpop.f32.mrb[84].mxu0  ;;  %v1518_v23 = vpop.f32.mrb[83].mxu1  ;;  %v1712_v62 = vsel %vm1585_vm1, %v6592_v45, 0.0 }
 0x23c   :  { %9238 = vst [vmem:[#allocation133_spill] sm:$0xff] %v6598_v8  ;;  %v1719_v21 = vadd.f32 %v6054_v29, %v6598_v8  ;;  %v1933_v50 = vmul.f32 %v6598_v8, %v6598_v8  ;;  %1705 = vadd.xlane.f32.xlu1 %v1704_v4  ;;  %v6606_v37 = vpop.f32.mrb[85].mxu0  ;;  %v2143_v33 = vadd.f32 %v2142_v57, %v1927_v46 }
 0x23d   :  { %v1713_v58 = vadd.f32 %v1712_v62, %v1711_v63  ;;  %v1934_v5 = vmul.f32 %v6606_v37, %v6606_v37  ;;  %v2144_v47 = vsel %vm1585_vm1, %v1928_v53, 0.0 }
 0x23e   :  { %v6611_v3 = vpop.f32.mrb[84].mxu1  ;;  %2137 = vadd.xlane.f32.xlu0 %v2136_v40  ;;  %v2145_v22 = vadd.f32 %v2144_v47, %v2143_v33  ;;  %v1720_v23 = vadd.f32 %v1719_v21, %v6606_v37  ;;  %v2151_v29 = vadd.f32 %v6062_v38, %v1933_v50 }
 0x23f   :  { %v1935_v4 = vmul.f32 %v6611_v3, %v6611_v3  ;;  %v6617_v8 = vpop.f32.mrb[86].mxu0  ;;  %v1523_v46 = vpop.f32.mrb[85].mxu1  ;;  %v1721_v57 = vsel %vm1585_vm1, %v6611_v3, 0.0 }
 0x240   :  { %9239 = vst [vmem:[#allocation134_spill] sm:$0xff] %v6617_v8  ;;  %v1728_v63 = vadd.f32 %v6078_v13, %v6617_v8  ;;  %v1940_v40 = vmul.f32 %v6617_v8, %v6617_v8  ;;  %2146 = vadd.xlane.f32.xlu1 %v2145_v22  ;;  %v6625_v53 = vpop.f32.mrb[87].mxu0  ;;  %v1722_v62 = vadd.f32 %v1721_v57, %v1720_v23 }
 0x241   :  { %9240 = vst [vmem:[#allocation135_spill] sm:$0xff] %v6625_v53  ;;  %v2152_v38 = vadd.f32 %v2151_v29, %v1934_v5  ;;  %v1941_v21 = vmul.f32 %v6625_v53, %v6625_v53  ;;  %v2153_v50 = vsel %vm1585_vm1, %v1935_v4, 0.0 }
 0x242   :  { %v6630_v33 = vpop.f32.mrb[86].mxu1  ;;  %1714 = vadd.xlane.f32.xlu0 %v1713_v58  ;;  %v2160_v46 = vadd.f32 %v6086_v42, %v1940_v40  ;;  %v1729_v13 = vadd.f32 %v1728_v63, %v6625_v53 }
 0x243   :  { %9241 = vst [vmem:[#allocation136_spill] sm:$0xff] %v6630_v33  ;;  %v2154_v47 = vadd.f32 %v2153_v50, %v2152_v38  ;;  %v1942_v22 = vmul.f32 %v6630_v33, %v6630_v33  ;;  %v6636_v8 = vpop.f32.mrb[88].mxu0  ;;  %v1528_v23 = vpop.f32.mrb[87].mxu1  ;;  %v1730_v5 = vsel %vm1585_vm1, %v6630_v33, 0.0 }
 0x244   :  { %9242 = vst [vmem:[#allocation137_spill] sm:$0xff] %v6636_v8  ;;  %v1737_v29 = vadd.f32 %v6102_v30, %v6636_v8  ;;  %v1947_v58 = vmul.f32 %v6636_v8, %v6636_v8  ;;  %1723 = vadd.xlane.f32.xlu1 %v1722_v62  ;;  %v6644_v4 = vpop.f32.mrb[89].mxu0  ;;  %v2161_v42 = vadd.f32 %v2160_v46, %v1941_v21 }
 0x245   :  { %9243 = vst [vmem:[#allocation138_spill] sm:$0xff] %v6644_v4  ;;  %v1731_v57 = vadd.f32 %v1730_v5, %v1729_v13  ;;  %v1948_v63 = vmul.f32 %v6644_v4, %v6644_v4  ;;  %v2162_v40 = vsel %vm1585_vm1, %v1942_v22, 0.0 }
 0x246   :  { %v6649_v38 = vpop.f32.mrb[88].mxu1  ;;  %2155 = vadd.xlane.f32.xlu0 %v2154_v47  ;;  %v2163_v50 = vadd.f32 %v2162_v40, %v2161_v42  ;;  %v1738_v23 = vadd.f32 %v1737_v29, %v6644_v4  ;;  %v2169_v30 = vadd.f32 %v6110_v59, %v1947_v58 }
 0x247   :  { %9244 = vst [vmem:[#allocation139_spill] sm:$0xff] %v6649_v38  ;;  %v1949_v62 = vmul.f32 %v6649_v38, %v6649_v38  ;;  %v6655_v8 = vpop.f32.mrb[90].mxu0  ;;  %v1533_v21 = vpop.f32.mrb[89].mxu1  ;;  %v1739_v46 = vsel %vm1585_vm1, %v6649_v38, 0.0  ;;  %v9286_v38 = vld [vmem:[#allocation8_spill] sm:$0xff] }
 0x248   :  { %9245 = vst [vmem:[#allocation140_spill] sm:$0xff] %v6655_v8  ;;  %v1746_v13 = vadd.f32 %v6126_v28, %v6655_v8  ;;  %v1954_v47 = vmul.f32 %v6655_v8, %v6655_v8  ;;  %2164 = vadd.xlane.f32.xlu1 %v2163_v50  ;;  %v6663_v22 = vpop.f32.mrb[91].mxu0  ;;  %v1740_v5 = vadd.f32 %v1739_v46, %v1738_v23 }
 0x249   :  { %9246 = vst [vmem:[#allocation141_spill] sm:$0xff] %v6663_v22  ;;  %v2170_v59 = vadd.f32 %v2169_v30, %v1948_v63  ;;  %v1955_v29 = vmul.f32 %v6663_v22, %v6663_v22  ;;  %v2171_v58 = vsel %vm1585_vm1, %v1949_v62, 0.0 }
 0x24a   :  { %v6668_v42 = vpop.f32.mrb[90].mxu1  ;;  %1732 = vadd.xlane.f32.xlu0 %v1731_v57  ;;  %v2178_v21 = vadd.f32 %v6134_v24, %v1954_v47  ;;  %v1747_v28 = vadd.f32 %v1746_v13, %v6663_v22 }
 0x24b   :  { %9247 = vst [vmem:[#allocation142_spill] sm:$0xff] %v6668_v42  ;;  %v2172_v40 = vadd.f32 %v2171_v58, %v2170_v59  ;;  %v1956_v50 = vmul.f32 %v6668_v42, %v6668_v42  ;;  %v6674_v8 = vpop.f32.mrb[92].mxu0  ;;  %v1538_v23 = vpop.f32.mrb[91].mxu1  ;;  %v1748_v63 = vsel %vm1585_vm1, %v6668_v42, 0.0  ;;  %v9285_v42 = vld [vmem:[#allocation7_spill] sm:$0xff] }
 0x24c   :  { %9248 = vst [vmem:[#allocation143_spill] sm:$0xff] %v6674_v8  ;;  %v1755_v30 = vadd.f32 %v6150_v11, %v6674_v8  ;;  %v1961_v57 = vmul.f32 %v6674_v8, %v6674_v8  ;;  %1741 = vadd.xlane.f32.xlu1 %v1740_v5  ;;  %v6682_v62 = vpop.f32.mrb[93].mxu0  ;;  %v2179_v24 = vadd.f32 %v2178_v21, %v1955_v29 }
 0x24d   :  { %9249 = vst [vmem:[#allocation144_spill] sm:$0xff] %v6682_v62  ;;  %v1749_v46 = vadd.f32 %v1748_v63, %v1747_v28  ;;  %v1962_v13 = vmul.f32 %v6682_v62, %v6682_v62  ;;  %v2180_v47 = vsel %vm1585_vm1, %v1956_v50, 0.0 }
 0x24e   :  { %v6687_v59 = vpop.f32.mrb[92].mxu1  ;;  %2173 = vadd.xlane.f32.xlu0 %v2172_v40  ;;  %v2181_v58 = vadd.f32 %v2180_v47, %v2179_v24  ;;  %v1756_v23 = vadd.f32 %v1755_v30, %v6682_v62  ;;  %v2187_v11 = vadd.f32 %v6158_v60, %v1961_v57 }
 0x24f   :  { %9250 = vst [vmem:[#allocation145_spill] sm:$0xff] %v6687_v59  ;;  %v1963_v5 = vmul.f32 %v6687_v59, %v6687_v59  ;;  %v6693_v8 = vpop.f32.mrb[94].mxu0  ;;  %v1543_v29 = vpop.f32.mrb[93].mxu1  ;;  %v1757_v21 = vsel %vm1585_vm1, %v6687_v59, 0.0  ;;  %v9284_v59 = vld [vmem:[#allocation6_spill] sm:$0xff] }
 0x250   :  { %9251 = vst [vmem:[#allocation146_spill] sm:$0xff] %v6693_v8  ;;  %v1764_v28 = vadd.f32 %v6174_v9, %v6693_v8  ;;  %v1968_v40 = vmul.f32 %v6693_v8, %v6693_v8  ;;  %2182 = vadd.xlane.f32.xlu1 %v2181_v58  ;;  %v6701_v50 = vpop.f32.mrb[95].mxu0  ;;  %v1758_v63 = vadd.f32 %v1757_v21, %v1756_v23 }
 0x251   :  { %9252 = vst [vmem:[#allocation147_spill] sm:$0xff] %v6701_v50  ;;  %v2188_v60 = vadd.f32 %v2187_v11, %v1962_v13  ;;  %v1969_v30 = vmul.f32 %v6701_v50, %v6701_v50  ;;  %v2189_v57 = vsel %vm1585_vm1, %v1963_v5, 0.0 }
 0x252   :  { %v6706_v24 = vpop.f32.mrb[94].mxu1  ;;  %1750 = vadd.xlane.f32.xlu0 %v1749_v46  ;;  %v2196_v29 = vadd.f32 %v6182_v16, %v1968_v40  ;;  %v1765_v9 = vadd.f32 %v1764_v28, %v6701_v50 }
 0x253   :  { %9253 = vst [vmem:[#allocation148_spill] sm:$0xff] %v6706_v24  ;;  %v2190_v47 = vadd.f32 %v2189_v57, %v2188_v60  ;;  %v1970_v58 = vmul.f32 %v6706_v24, %v6706_v24  ;;  %v6712_v8 = vpop.f32.mrb[96].mxu0  ;;  %v1548_v23 = vpop.f32.mrb[95].mxu1  ;;  %v1766_v13 = vsel %vm1585_vm1, %v6706_v24, 0.0 }
 0x254   :  { %9254 = vst [vmem:[#allocation149_spill] sm:$0xff] %v6712_v8  ;;  %v1773_v11 = vadd.f32 %v6198_v56, %v6712_v8  ;;  %v1975_v46 = vmul.f32 %v6712_v8, %v6712_v8  ;;  %1759 = vadd.xlane.f32.xlu1 %v1758_v63  ;;  %v6720_v5 = vpop.f32.mrb[97].mxu0  ;;  %v2197_v16 = vadd.f32 %v2196_v29, %v1969_v30 }
 0x255   :  { %9255 = vst [vmem:[#allocation150_spill] sm:$0xff] %v6720_v5  ;;  %v1767_v21 = vadd.f32 %v1766_v13, %v1765_v9  ;;  %v1976_v28 = vmul.f32 %v6720_v5, %v6720_v5  ;;  %v2198_v40 = vsel %vm1585_vm1, %v1970_v58, 0.0 }
 0x256   :  { %v6725_v60 = vpop.f32.mrb[96].mxu1  ;;  %2191 = vadd.xlane.f32.xlu0 %v2190_v47  ;;  %v2199_v57 = vadd.f32 %v2198_v40, %v2197_v16  ;;  %v1774_v23 = vadd.f32 %v1773_v11, %v6720_v5  ;;  %v2205_v56 = vadd.f32 %v6206_v10, %v1975_v46 }
 0x257   :  { %9256 = vst [vmem:[#allocation151_spill] sm:$0xff] %v6725_v60  ;;  %v1977_v63 = vmul.f32 %v6725_v60, %v6725_v60  ;;  %v6731_v8 = vpop.f32.mrb[98].mxu0  ;;  %v1553_v30 = vpop.f32.mrb[97].mxu1  ;;  %v1775_v29 = vsel %vm1585_vm1, %v6725_v60, 0.0  ;;  %v2420_v60 = vld [vmem:[%s8943_s4 + $0x10] sm:$0xff] }
 0x258   :  { %9257 = vst [vmem:[#allocation152_spill] sm:$0xff] %v6731_v8  ;;  %v1782_v9 = vadd.f32 %v6222_v14, %v6731_v8  ;;  %v1982_v47 = vmul.f32 %v6731_v8, %v6731_v8  ;;  %2200 = vadd.xlane.f32.xlu1 %v2199_v57  ;;  %v6739_v58 = vpop.f32.mrb[99].mxu0  ;;  %v1776_v13 = vadd.f32 %v1775_v29, %v1774_v23 }
 0x259   :  { %9258 = vst [vmem:[#allocation153_spill] sm:$0xff] %v6739_v58  ;;  %v2206_v10 = vadd.f32 %v2205_v56, %v1976_v28  ;;  %v1983_v11 = vmul.f32 %v6739_v58, %v6739_v58  ;;  %v2207_v46 = vsel %vm1585_vm1, %v1977_v63, 0.0 }
 0x25a   :  { %v6744_v16 = vpop.f32.mrb[98].mxu1  ;;  %1768 = vadd.xlane.f32.xlu0 %v1767_v21  ;;  %v2214_v30 = vadd.f32 %v6230_v36, %v1982_v47  ;;  %v1783_v14 = vadd.f32 %v1782_v9, %v6739_v58 }
 0x25b   :  { %9259 = vst [vmem:[#allocation154_spill] sm:$0xff] %v6744_v16  ;;  %v2208_v40 = vadd.f32 %v2207_v46, %v2206_v10  ;;  %v1984_v57 = vmul.f32 %v6744_v16, %v6744_v16  ;;  %v6750_v8 = vpop.f32.mrb[100].mxu0  ;;  %v1558_v23 = vpop.f32.mrb[99].mxu1  ;;  %v1784_v28 = vsel %vm1585_vm1, %v6744_v16, 0.0 }
 0x25c   :  { %9260 = vst [vmem:[#allocation155_spill] sm:$0xff] %v6750_v8  ;;  %v1791_v56 = vadd.f32 %v6246_v31, %v6750_v8  ;;  %v1989_v21 = vmul.f32 %v6750_v8, %v6750_v8  ;;  %1777 = vadd.xlane.f32.xlu1 %v1776_v13  ;;  %v6758_v63 = vpop.f32.mrb[101].mxu0  ;;  %v2215_v36 = vadd.f32 %v2214_v30, %v1983_v11  ;;  %v9263_v31 = vld [vmem:[#allocation101_spill] sm:$0xff] }
 0x25d   :  { %9261 = vst [vmem:[#allocation156_spill] sm:$0xff] %v6758_v63  ;;  %v1785_v29 = vadd.f32 %v1784_v28, %v1783_v14  ;;  %v1990_v9 = vmul.f32 %v6758_v63, %v6758_v63  ;;  %v2216_v47 = vsel %vm1585_vm1, %v1984_v57, 0.0  ;;  %v9265_v14 = vld [vmem:[#allocation105_spill] sm:$0xff] }
 0x25e   :  { %v6763_v10 = vpop.f32.mrb[100].mxu1  ;;  %2209 = vadd.xlane.f32.xlu0 %v2208_v40  ;;  %v2217_v46 = vadd.f32 %v2216_v47, %v2215_v36  ;;  %v1792_v23 = vadd.f32 %v1791_v56, %v6758_v63  ;;  %v2223_v16 = vadd.f32 %v9263_v31, %v1989_v21 }
 0x25f   :  { %9262 = vst [vmem:[#allocation157_spill] sm:$0xff] %v6763_v10  ;;  %v1991_v13 = vmul.f32 %v6763_v10, %v6763_v10  ;;  %v6769_v8 = vpop.f32.mrb[102].mxu0  ;;  %v1563_v11 = vpop.f32.mrb[101].mxu1  ;;  %v1793_v30 = vsel %vm1585_vm1, %v6763_v10, 0.0  ;;  %v9268_v10 = vld [vmem:[#allocation107_spill] sm:$0xff] }
 0x260   :  { %9264 = vst [vmem:[#allocation101_spill] sm:$0xff] %v6769_v8  ;;  %v1800_v57 = vadd.f32 %v9265_v14, %v6769_v8  ;;  %v1996_v40 = vmul.f32 %v6769_v8, %v6769_v8  ;;  %2218 = vadd.xlane.f32.xlu1 %v2217_v46  ;;  %v6777_v28 = vpop.f32.mrb[103].mxu0  ;;  %v1794_v56 = vadd.f32 %v1793_v30, %v1792_v23 }
 0x261   :  { %9266 = vst [vmem:[#allocation105_spill] sm:$0xff] %v6777_v28  ;;  %v2224_v21 = vadd.f32 %v2223_v16, %v1990_v9  ;;  %v1997_v36 = vmul.f32 %v6777_v28, %v6777_v28  ;;  %v2225_v47 = vsel %vm1585_vm1, %v1991_v13, 0.0 }
 0x262   :  { %v6782_v31 = vpop.f32.mrb[102].mxu1  ;;  %1786 = vadd.xlane.f32.xlu0 %v1785_v29  ;;  %v2232_v63 = vadd.f32 %v9268_v10, %v1996_v40  ;;  %v1801_v14 = vadd.f32 %v1800_v57, %v6777_v28 }
 0x263   :  { %9267 = vst [vmem:[#allocation158_spill] sm:$0xff] %v6782_v31  ;;  %v2226_v11 = vadd.f32 %v2225_v47, %v2224_v21  ;;  %v1998_v46 = vmul.f32 %v6782_v31, %v6782_v31  ;;  %v6788_v8 = vpop.f32.mrb[104].mxu0  ;;  %v1568_v23 = vpop.f32.mrb[103].mxu1  ;;  %v1802_v16 = vsel %vm1585_vm1, %v6782_v31, 0.0 }
 0x264   :  { %9269 = vst [vmem:[#allocation107_spill] sm:$0xff] %v6788_v8  ;;  %v1809_v9 = vadd.f32 %v6294_v48, %v6788_v8  ;;  %v2003_v29 = vmul.f32 %v6788_v8, %v6788_v8  ;;  %1795 = vadd.xlane.f32.xlu1 %v1794_v56  ;;  %v6796_v13 = vpop.f32.mrb[105].mxu0  ;;  %v2233_v10 = vadd.f32 %v2232_v63, %v1997_v36 }
 0x265   :  { %9270 = vst [vmem:[#allocation159_spill] sm:$0xff] %v6796_v13  ;;  %v1803_v30 = vadd.f32 %v1802_v16, %v1801_v14  ;;  %v2004_v57 = vmul.f32 %v6796_v13, %v6796_v13  ;;  %v2234_v40 = vsel %vm1585_vm1, %v1998_v46, 0.0  ;;  %v9273_v14 = vld [vmem:[#allocation115_spill] sm:$0xff] }
 0x266   :  { %v6801_v21 = vpop.f32.mrb[104].mxu1  ;;  %2227 = vadd.xlane.f32.xlu0 %v2226_v11  ;;  %v2235_v47 = vadd.f32 %v2234_v40, %v2233_v10  ;;  %v1810_v23 = vadd.f32 %v1809_v9, %v6796_v13  ;;  %v2241_v48 = vadd.f32 %v6302_v18, %v2003_v29 }
 0x267   :  { %9271 = vst [vmem:[#allocation160_spill] sm:$0xff] %v6801_v21  ;;  %v2005_v56 = vmul.f32 %v6801_v21, %v6801_v21  ;;  %v6807_v8 = vpop.f32.mrb[106].mxu0  ;;  %v1573_v63 = vpop.f32.mrb[105].mxu1  ;;  %v1811_v36 = vsel %vm1585_vm1, %v6801_v21, 0.0 }
 0x268   :  { %9272 = vst [vmem:[#allocation161_spill] sm:$0xff] %v6807_v8  ;;  %v1818_v46 = vadd.f32 %v9273_v14, %v6807_v8  ;;  %v2010_v11 = vmul.f32 %v6807_v8, %v6807_v8  ;;  %2236 = vadd.xlane.f32.xlu1 %v2235_v47  ;;  %v6815_v16 = vpop.f32.mrb[107].mxu0  ;;  %v1812_v9 = vadd.f32 %v1811_v36, %v1810_v23  ;;  %v9276_v14 = vld [vmem:[#allocation117_spill] sm:$0xff] }
 0x269   :  { %9274 = vst [vmem:[#allocation115_spill] sm:$0xff] %v6815_v16  ;;  %v2242_v18 = vadd.f32 %v2241_v48, %v2004_v57  ;;  %v2011_v29 = vmul.f32 %v6815_v16, %v6815_v16  ;;  %v2243_v10 = vsel %vm1585_vm1, %v2005_v56, 0.0 }
 0x26a   :  { %v1819_v40 = vadd.f32 %v1818_v46, %v6815_v16  ;;  %v6821_v63 = vpop.f32.mrb[106].mxu1  ;;  %1804 = vadd.xlane.f32.xlu0 %v1803_v30  ;;  %v2250_v13 = vadd.f32 %v9276_v14, %v2010_v11 }
 0x26b   :  { %9275 = vst [vmem:[#allocation162_spill] sm:$0xff] %v6821_v63  ;;  %v2244_v21 = vadd.f32 %v2243_v10, %v2242_v18  ;;  %v2012_v47 = vmul.f32 %v6821_v63, %v6821_v63  ;;  %v1578_v8 = vpop.f32.mrb[107].mxu1  ;;  %v1820_v57 = vsel %vm1585_vm1, %v6821_v63, 0.0 }
 0x26c   :  { %1813 = vadd.xlane.f32.xlu1 %v1812_v9  ;;  %v2251_v23 = vadd.f32 %v2250_v13, %v2011_v29  ;;  %v1821_v48 = vadd.f32 %v1820_v57, %v1819_v40 }
 0x26d   :  { %v2252_v56 = vsel %vm1585_vm1, %v2012_v47, 0.0 }
 0x26e   :  { %2245 = vadd.xlane.f32.xlu0 %v2244_v21  ;;  %v2253_v36 = vadd.f32 %v2252_v56, %v2251_v23 }
 0x270   :  { %2254 = vadd.xlane.f32.xlu1 %v2253_v36 }
 0x272   :  { %1822 = vadd.xlane.f32.xlu0 %v1821_v48 }
 0x293   :  { %v1589_v30 = vpop.xlane.xlu1 %1588 }
 0x294   :  { %v2256_v46 = vmul.f32 0.0012755102, %v1589_v30 }
 0x296   :  { %v2310_v10 = vmul.f32 %v2256_v46, %v2256_v46 }
 0x297   :  { %v2021_v18 = vpop.xlane.xlu1 %2020  ;;  %v1598_v11 = vpop.xlane.xlu0 %1597 }
 0x298   :  { %v2283_v14 = vmul.f32 0.0012755102, %v2021_v18  ;;  %v6829_v16 = vmul.f32 0.0012755102, %v1598_v11 }
 0x29a   :  { %v2337_v8 = vsub.f32 %v2283_v14, %v2310_v10  ;;  %v2311_v13 = vmul.f32 %v6829_v16, %v6829_v16 }
 0x29b   :  { %v2030_v31 = vpop.xlane.xlu0 %2029 }
 0x29c   :  { %v2364_v63 = vadd.f32 1e-05, %v2337_v8  ;;  %v2284_v9 = vmul.f32 0.0012755102, %v2030_v31  ;;  %v2418_v8 = vld [vmem:[%s8943_s4] sm:$0xff] }
 0x29d   :  { %v2039_v29 = vpop.xlane.xlu1 %2038 }
 0x29e   :  { %4080 = vrsqrt.f32 %v2364_v63  ;;  %v2338_v21 = vsub.f32 %v2284_v9, %v2311_v13  ;;  %v2285_v48 = vmul.f32 0.0012755102, %v2039_v29 }
 0x29f   :  { %v1607_v40 = vpop.xlane.xlu0 %1606 }
 0x2a0   :  { %v2365_v47 = vadd.f32 1e-05, %v2338_v21  ;;  %v6833_v57 = vmul.f32 0.0012755102, %v1607_v40 }
 0x2a1   :  { %v1616_v23 = vpop.xlane.xlu1 %1615 }
 0x2a2   :  { %4082 = vrsqrt.f32 %v2365_v47  ;;  %v2312_v56 = vmul.f32 %v6833_v57, %v6833_v57  ;;  %v6837_v36 = vmul.f32 0.0012755102, %v1616_v23 }
 0x2a3   :  { %v2048_v30 = vpop.xlane.xlu0 %2047 }
 0x2a4   :  { %v2339_v18 = vsub.f32 %v2285_v48, %v2312_v56  ;;  %v2313_v31 = vmul.f32 %v6837_v36, %v6837_v36  ;;  %v2286_v11 = vmul.f32 0.0012755102, %v2048_v30  ;;  %v2419_v30 = vld [vmem:[%s8943_s4 + $0x8] sm:$0xff] }
 0x2a5   :  { %v2057_v63 = vpop.xlane.xlu1 %2056 }
 0x2a6   :  { %v2366_v10 = vadd.f32 1e-05, %v2339_v18  ;;  %v2340_v14 = vsub.f32 %v2286_v11, %v2313_v31  ;;  %v2287_v23 = vmul.f32 0.0012755102, %v2057_v63  ;;  %v2472_v18 = vld [vmem:[%s8944_s5] sm:$0xff] }
 0x2a7   :  { %v1625_v13 = vpop.xlane.xlu0 %1624 }
 0x2a8   :  { %v4081_v9 = vpop.eup %4080  ;;  %4084 = vrsqrt.f32 %v2366_v10  ;;  %v2367_v29 = vadd.f32 1e-05, %v2340_v14  ;;  %v6844_v21 = vmul.f32 0.0012755102, %v1625_v13 }
 0x2a9   :  { %v1634_v40 = vpop.xlane.xlu1 %1633  ;;  %v2445_v47 = vmul.f32 %v4081_v9, %v2418_v8 }
 0x2aa   :  { %4086 = vrsqrt.f32 %v2367_v29  ;;  %v2314_v48 = vmul.f32 %v6844_v21, %v6844_v21  ;;  %v6848_v56 = vmul.f32 0.0012755102, %v1634_v40 }
 0x2ab   :  { %v2066_v31 = vpop.xlane.xlu0 %2065  ;;  %2744 = vperm.xlu0 %4078, %v2445_v47   ;;  %v2499_v11 = vmul.f32 %v2445_v47, %v2256_v46 }
 0x2ac   :  { %v4083_v10 = vpop.eup %4082  ;;  %v2341_v14 = vsub.f32 %v2287_v23, %v2314_v48  ;;  %v2315_v63 = vmul.f32 %v6848_v56, %v6848_v56  ;;  %v2288_v8 = vmul.f32 0.0012755102, %v2066_v31 }
 0x2ad   :  { %v2075_v13 = vpop.xlane.xlu1 %2074  ;;  %v2446_v9 = vmul.f32 %v4083_v10, %v2419_v30  ;;  %v2526_v29 = vsub.f32 %v2472_v18, %v2499_v11  ;;  %v2421_v11 = vld [vmem:[%s8943_s4 + $0x18] sm:$0xff] }
 0x2ae   :  { %v2368_v40 = vadd.f32 1e-05, %v2341_v14  ;;  %v2342_v28 = vsub.f32 %v2288_v8, %v2315_v63  ;;  %v2289_v31 = vmul.f32 0.0012755102, %v2075_v13  ;;  %v2473_v13 = vld [vmem:[%s8944_s5 + $0x8] sm:$0xff] }
 0x2af   :  { %v1643_v58 = vpop.xlane.xlu0 %1642  ;;  %2749 = vperm.xlu1 %4079, %v2446_v9   ;;  %3257 = vperm.xlu0 %4078, %v2526_v29   ;;  %v2500_v63 = vmul.f32 %v2446_v9, %v6829_v16  ;;  %v2474_v16 = vld [vmem:[%s8944_s5 + $0x10] sm:$0xff] }
 0x2b0   :  { %4088 = vrsqrt.f32 %v2368_v40  ;;  %v2369_v46 = vadd.f32 1e-05, %v2342_v28  ;;  %v6861_v47 = vmul.f32 0.0012755102, %v1643_v58 }
 0x2b1   :  { %v1652_v23 = vpop.xlane.xlu1 %1651 }
 0x2b2   :  { %v4085_v48 = vpop.eup %4084  ;;  %4090 = vrsqrt.f32 %v2369_v46  ;;  %v2316_v30 = vmul.f32 %v6861_v47, %v6861_v47  ;;  %v6865_v18 = vmul.f32 0.0012755102, %v1652_v23 }
 0x2b3   :  { %v2447_v10 = vmul.f32 %v4085_v48, %v2420_v60  ;;  %v2084_v14 = vpop.xlane.xlu0 %2083  ;;  %v2527_v48 = vsub.f32 %v2473_v13, %v2500_v63  ;;  %v2423_v63 = vld [vmem:[%s8943_s4 + $0x28] sm:$0xff] }
 0x2b4   :  { %v4087_v28 = vpop.eup %4086  ;;  %v2343_v58 = vsub.f32 %v2289_v31, %v2316_v30  ;;  %v2317_v8 = vmul.f32 %v6865_v18, %v6865_v18  ;;  %v2290_v29 = vmul.f32 0.0012755102, %v2084_v14  ;;  %v2422_v31 = vld [vmem:[%s8943_s4 + $0x20] sm:$0xff] }
 0x2b5   :  { %v2501_v40 = vmul.f32 %v2447_v10, %v6833_v57  ;;  %v2093_v46 = vpop.xlane.xlu1 %2092  ;;  %2754 = vperm.xlu1 %4079, %v2447_v10   ;;  %v2448_v23 = vmul.f32 %v4087_v28, %v2421_v11 }
 0x2b6   :  { %v2370_v5 = vadd.f32 1e-05, %v2343_v58  ;;  %v2344_v60 = vsub.f32 %v2290_v29, %v2317_v8  ;;  %v2291_v28 = vmul.f32 0.0012755102, %v2093_v46 }
 0x2b7   :  { %v1661_v9 = vpop.xlane.xlu0 %1660  ;;  %2759 = vperm.xlu0 %4078, %v2448_v23   ;;  %v2528_v11 = vsub.f32 %v2474_v16, %v2501_v40  ;;  %v2502_v13 = vmul.f32 %v2448_v23, %v6837_v36  ;;  %v2475_v16 = vld [vmem:[%s8944_s5 + $0x18] sm:$0xff]  ;;  %v2476_v36 = vld [vmem:[%s8944_s5 + $0x20] sm:$0xff] }
 0x2b8   :  { %4092 = vrsqrt.f32 %v2370_v5  ;;  %v2371_v30 = vadd.f32 1e-05, %v2344_v60  ;;  %v6883_v14 = vmul.f32 0.0012755102, %v1661_v9 }
 0x2b9   :  { %v1670_v57 = vpop.xlane.xlu1 %1669  ;;  %3262 = vperm.xlu1 %4079, %v2527_v48  }
 0x2ba   :  { %v4089_v10 = vpop.eup %4088  ;;  %4094 = vrsqrt.f32 %v2371_v30  ;;  %v2318_v58 = vmul.f32 %v6883_v14, %v6883_v14  ;;  %v6887_v8 = vmul.f32 0.0012755102, %v1670_v57 }
 0x2bb   :  { %v2449_v29 = vmul.f32 %v4089_v10, %v2422_v31  ;;  %v2102_v5 = vpop.xlane.xlu0 %2101  ;;  %3267 = vperm.xlu0 %4078, %v2528_v11   ;;  %v2529_v11 = vsub.f32 %v2475_v16, %v2502_v13  ;;  %v2425_v13 = vld [vmem:[%s8943_s4 + $0x38] sm:$0xff] }
 0x2bc   :  { %v4091_v60 = vpop.eup %4090  ;;  %v2345_v9 = vsub.f32 %v2291_v28, %v2318_v58  ;;  %v2319_v40 = vmul.f32 %v6887_v8, %v6887_v8  ;;  %v2292_v46 = vmul.f32 0.0012755102, %v2102_v5  ;;  %v2424_v28 = vld [vmem:[%s8943_s4 + $0x30] sm:$0xff] }
 0x2bd   :  { %v2503_v48 = vmul.f32 %v2449_v29, %v6844_v21  ;;  %v2111_v30 = vpop.xlane.xlu1 %2110  ;;  %2764 = vperm.xlu1 %4079, %v2449_v29   ;;  %v2450_v57 = vmul.f32 %v4091_v60, %v2423_v63 }
 0x2be   :  { %v2372_v31 = vadd.f32 1e-05, %v2345_v9  ;;  %v2346_v10 = vsub.f32 %v2292_v46, %v2319_v40  ;;  %v2293_v60 = vmul.f32 0.0012755102, %v2111_v30 }
 0x2bf   :  { %v1679_v23 = vpop.xlane.xlu0 %1678  ;;  %2769 = vperm.xlu0 %4078, %v2450_v57   ;;  %v2530_v63 = vsub.f32 %v2476_v36, %v2503_v48  ;;  %v2477_v36 = vld [vmem:[%s8944_s5 + $0x28] sm:$0xff] }
 0x2c0   :  { %4096 = vrsqrt.f32 %v2372_v31  ;;  %v2373_v58 = vadd.f32 1e-05, %v2346_v10  ;;  %v6905_v5 = vmul.f32 0.0012755102, %v1679_v23  ;;  %v2504_v31 = vmul.f32 %v2450_v57, %v6848_v56  ;;  %v2478_v56 = vld [vmem:[%s8944_s5 + $0x30] sm:$0xff] }
 0x2c1   :  { %v1688_v21 = vpop.xlane.xlu1 %1687  ;;  %3272 = vperm.xlu1 %4079, %v2529_v11  }
 0x2c2   :  { %v4093_v29 = vpop.eup %4092  ;;  %4098 = vrsqrt.f32 %v2373_v58  ;;  %v2320_v9 = vmul.f32 %v6905_v5, %v6905_v5  ;;  %v6909_v40 = vmul.f32 0.0012755102, %v1688_v21 }
 0x2c3   :  { %v2451_v46 = vmul.f32 %v4093_v29, %v2424_v28  ;;  %v2120_v16 = vpop.xlane.xlu0 %2119  ;;  %3277 = vperm.xlu0 %4078, %v2530_v63   ;;  %v2531_v63 = vsub.f32 %v2477_v36, %v2504_v31  ;;  %v2427_v31 = vld [vmem:[%s8943_s4 + $0x48] sm:$0xff] }
 0x2c4   :  { %v4095_v10 = vpop.eup %4094  ;;  %v2347_v23 = vsub.f32 %v2293_v60, %v2320_v9  ;;  %v2321_v48 = vmul.f32 %v6909_v40, %v6909_v40  ;;  %v2294_v30 = vmul.f32 0.0012755102, %v2120_v16  ;;  %v2426_v60 = vld [vmem:[%s8943_s4 + $0x40] sm:$0xff] }
 0x2c5   :  { %v2505_v11 = vmul.f32 %v2451_v46, %v6861_v47  ;;  %v2129_v58 = vpop.xlane.xlu1 %2128  ;;  %2774 = vperm.xlu1 %4079, %v2451_v46   ;;  %v2452_v21 = vmul.f32 %v4095_v10, %v2425_v13 }
 0x2c6   :  { %v2374_v28 = vadd.f32 1e-05, %v2347_v23  ;;  %v2348_v29 = vsub.f32 %v2294_v30, %v2321_v48  ;;  %v2295_v10 = vmul.f32 0.0012755102, %v2129_v58 }
 0x2c7   :  { %v1697_v57 = vpop.xlane.xlu0 %1696  ;;  %2779 = vperm.xlu0 %4078, %v2452_v21   ;;  %v2532_v13 = vsub.f32 %v2478_v56, %v2505_v11  ;;  %v2479_v56 = vld [vmem:[%s8944_s5 + $0x38] sm:$0xff] }
 0x2c8   :  { %4100 = vrsqrt.f32 %v2374_v28  ;;  %v2375_v9 = vadd.f32 1e-05, %v2348_v29  ;;  %v6927_v16 = vmul.f32 0.0012755102, %v1697_v57  ;;  %v2506_v28 = vmul.f32 %v2452_v21, %v6865_v18 }
 0x2c9   :  { %v1706_v47 = vpop.xlane.xlu1 %1705  ;;  %3282 = vperm.xlu1 %4079, %v2531_v63  }
 0x2ca   :  { %v4097_v46 = vpop.eup %4096  ;;  %4102 = vrsqrt.f32 %v2375_v9  ;;  %v2322_v23 = vmul.f32 %v6927_v16, %v6927_v16  ;;  %v6931_v48 = vmul.f32 0.0012755102, %v1706_v47 }
 0x2cb   :  { %v2453_v30 = vmul.f32 %v4097_v46, %v2426_v60  ;;  %v2138_v36 = vpop.xlane.xlu0 %2137  ;;  %3287 = vperm.xlu0 %4078, %v2532_v13   ;;  %v2480_v60 = vld [vmem:[%s8944_s5 + $0x40] sm:$0xff]  ;;  %v2533_v46 = vsub.f32 %v2479_v56, %v2506_v28  ;;  %v2429_v28 = vld [vmem:[%s8943_s4 + $0x58] sm:$0xff] }
 0x2cc   :  { %v4099_v29 = vpop.eup %4098  ;;  %v2349_v57 = vsub.f32 %v2295_v10, %v2322_v23  ;;  %v2323_v11 = vmul.f32 %v6931_v48, %v6931_v48  ;;  %v2296_v58 = vmul.f32 0.0012755102, %v2138_v36  ;;  %v2428_v10 = vld [vmem:[%s8943_s4 + $0x50] sm:$0xff] }
 0x2cd   :  { %v2507_v63 = vmul.f32 %v2453_v30, %v6883_v14  ;;  %v2147_v9 = vpop.xlane.xlu1 %2146  ;;  %2784 = vperm.xlu1 %4079, %v2453_v30   ;;  %v2454_v47 = vmul.f32 %v4099_v29, %v2427_v31 }
 0x2ce   :  { %v2376_v18 = vadd.f32 1e-05, %v2349_v57  ;;  %v2350_v21 = vsub.f32 %v2296_v58, %v2323_v11  ;;  %v2297_v29 = vmul.f32 0.0012755102, %v2147_v9 }
 0x2cf   :  { %v1715_v13 = vpop.xlane.xlu0 %1714  ;;  %2789 = vperm.xlu0 %4078, %v2454_v47   ;;  %v2534_v14 = vsub.f32 %v2480_v60, %v2507_v63 }
 0x2d0   :  { %4104 = vrsqrt.f32 %v2376_v18  ;;  %v2377_v23 = vadd.f32 1e-05, %v2350_v21  ;;  %v6949_v36 = vmul.f32 0.0012755102, %v1715_v13  ;;  %v2508_v18 = vmul.f32 %v2454_v47, %v6887_v8  ;;  %v2481_v13 = vld [vmem:[%s8944_s5 + $0x48] sm:$0xff] }
 0x2d1   :  { %v1724_v30 = vpop.xlane.xlu1 %1723  ;;  %3292 = vperm.xlu1 %4079, %v2533_v46  }
 0x2d2   :  { %v4101_v31 = vpop.eup %4100  ;;  %4106 = vrsqrt.f32 %v2377_v23  ;;  %v2324_v57 = vmul.f32 %v6949_v36, %v6949_v36  ;;  %v6953_v11 = vmul.f32 0.0012755102, %v1724_v30 }
 0x2d3   :  { %v2455_v58 = vmul.f32 %v4101_v31, %v2428_v10  ;;  %v2156_v56 = vpop.xlane.xlu0 %2155  ;;  %3297 = vperm.xlu0 %4078, %v2534_v14   ;;  %v2482_v10 = vld [vmem:[%s8944_s5 + $0x50] sm:$0xff]  ;;  %v2535_v31 = vsub.f32 %v2481_v13, %v2508_v18  ;;  %v2431_v18 = vld [vmem:[%s8943_s4 + $0x68] sm:$0xff] }
 0x2d4   :  { %v4103_v63 = vpop.eup %4102  ;;  %v2351_v60 = vsub.f32 %v2297_v29, %v2324_v57  ;;  %v2325_v21 = vmul.f32 %v6953_v11, %v6953_v11  ;;  %v2298_v9 = vmul.f32 0.0012755102, %v2156_v56  ;;  %v2430_v29 = vld [vmem:[%s8943_s4 + $0x60] sm:$0xff] }
 0x2d5   :  { %v2509_v46 = vmul.f32 %v2455_v58, %v6905_v5  ;;  %v2165_v23 = vpop.xlane.xlu1 %2164  ;;  %2794 = vperm.xlu1 %4079, %v2455_v58   ;;  %v2456_v30 = vmul.f32 %v4103_v63, %v2429_v28 }
 0x2d6   :  { %v2378_v8 = vadd.f32 1e-05, %v2351_v60  ;;  %v2352_v47 = vsub.f32 %v2298_v9, %v2325_v21  ;;  %v2299_v63 = vmul.f32 0.0012755102, %v2165_v23 }
 0x2d7   :  { %v1733_v14 = vpop.xlane.xlu0 %1732  ;;  %2799 = vperm.xlu0 %4078, %v2456_v30   ;;  %v2536_v5 = vsub.f32 %v2482_v10, %v2509_v46 }
 0x2d8   :  { %4108 = vrsqrt.f32 %v2378_v8  ;;  %v2379_v57 = vadd.f32 1e-05, %v2352_v47  ;;  %v6971_v56 = vmul.f32 0.0012755102, %v1733_v14  ;;  %v2510_v8 = vmul.f32 %v2456_v30, %v6909_v40  ;;  %v2483_v14 = vld [vmem:[%s8944_s5 + $0x58] sm:$0xff] }
 0x2d9   :  { %v1742_v58 = vpop.xlane.xlu1 %1741  ;;  %3302 = vperm.xlu1 %4079, %v2535_v31  }
 0x2da   :  { %v4105_v28 = vpop.eup %4104  ;;  %4110 = vrsqrt.f32 %v2379_v57  ;;  %v2326_v60 = vmul.f32 %v6971_v56, %v6971_v56  ;;  %v6975_v21 = vmul.f32 0.0012755102, %v1742_v58 }
 0x2db   :  { %v2457_v9 = vmul.f32 %v4105_v28, %v2430_v29  ;;  %v2174_v13 = vpop.xlane.xlu0 %2173  ;;  %3307 = vperm.xlu0 %4078, %v2536_v5   ;;  %v2484_v29 = vld [vmem:[%s8944_s5 + $0x60] sm:$0xff]  ;;  %v2537_v28 = vsub.f32 %v2483_v14, %v2510_v8  ;;  %v2433_v8 = vld [vmem:[%s8943_s4 + $0x78] sm:$0xff] }
 0x2dc   :  { %v4107_v46 = vpop.eup %4106  ;;  %v2353_v10 = vsub.f32 %v2299_v63, %v2326_v60  ;;  %v2327_v47 = vmul.f32 %v6975_v21, %v6975_v21  ;;  %v2300_v23 = vmul.f32 0.0012755102, %v2174_v13  ;;  %v2432_v63 = vld [vmem:[%s8943_s4 + $0x70] sm:$0xff] }
 0x2dd   :  { %v2511_v31 = vmul.f32 %v2457_v9, %v6927_v16  ;;  %v2183_v57 = vpop.xlane.xlu1 %2182  ;;  %2804 = vperm.xlu1 %4079, %v2457_v9   ;;  %v2458_v58 = vmul.f32 %v4107_v46, %v2431_v18 }
 0x2de   :  { %v2380_v40 = vadd.f32 1e-05, %v2353_v10  ;;  %v2354_v30 = vsub.f32 %v2300_v23, %v2327_v47  ;;  %v2301_v46 = vmul.f32 0.0012755102, %v2183_v57 }
 0x2df   :  { %v1751_v5 = vpop.xlane.xlu0 %1750  ;;  %2809 = vperm.xlu0 %4078, %v2458_v58   ;;  %v2538_v16 = vsub.f32 %v2484_v29, %v2511_v31 }
 0x2e0   :  { %4112 = vrsqrt.f32 %v2380_v40  ;;  %v2381_v60 = vadd.f32 1e-05, %v2354_v30  ;;  %v6993_v13 = vmul.f32 0.0012755102, %v1751_v5  ;;  %v2512_v40 = vmul.f32 %v2458_v58, %v6931_v48  ;;  %v2485_v5 = vld [vmem:[%s8944_s5 + $0x68] sm:$0xff] }
 0x2e1   :  { %v1760_v9 = vpop.xlane.xlu1 %1759  ;;  %3312 = vperm.xlu1 %4079, %v2537_v28  }
 0x2e2   :  { %v4109_v18 = vpop.eup %4108  ;;  %4114 = vrsqrt.f32 %v2381_v60  ;;  %v2328_v10 = vmul.f32 %v6993_v13, %v6993_v13  ;;  %v6997_v47 = vmul.f32 0.0012755102, %v1760_v9 }
 0x2e3   :  { %v2459_v23 = vmul.f32 %v4109_v18, %v2432_v63  ;;  %v2192_v14 = vpop.xlane.xlu0 %2191  ;;  %3317 = vperm.xlu0 %4078, %v2538_v16   ;;  %v2486_v63 = vld [vmem:[%s8944_s5 + $0x70] sm:$0xff]  ;;  %v2539_v18 = vsub.f32 %v2485_v5, %v2512_v40  ;;  %v2435_v40 = vld [vmem:[%s8943_s4 + $0x88] sm:$0xff] }
 0x2e4   :  { %v4111_v31 = vpop.eup %4110  ;;  %v2355_v29 = vsub.f32 %v2301_v46, %v2328_v10  ;;  %v2329_v30 = vmul.f32 %v6997_v47, %v6997_v47  ;;  %v2302_v57 = vmul.f32 0.0012755102, %v2192_v14  ;;  %v2434_v46 = vld [vmem:[%s8943_s4 + $0x80] sm:$0xff] }
 0x2e5   :  { %v2513_v28 = vmul.f32 %v2459_v23, %v6949_v36  ;;  %v2201_v60 = vpop.xlane.xlu1 %2200  ;;  %2814 = vperm.xlu1 %4079, %v2459_v23   ;;  %v2460_v9 = vmul.f32 %v4111_v31, %v2433_v8 }
 0x2e6   :  { %v2382_v48 = vadd.f32 1e-05, %v2355_v29  ;;  %v2356_v58 = vsub.f32 %v2302_v57, %v2329_v30  ;;  %v2303_v31 = vmul.f32 0.0012755102, %v2201_v60 }
 0x2e7   :  { %v1769_v16 = vpop.xlane.xlu0 %1768  ;;  %2819 = vperm.xlu0 %4078, %v2460_v9   ;;  %v2540_v36 = vsub.f32 %v2486_v63, %v2513_v28 }
 0x2e8   :  { %4116 = vrsqrt.f32 %v2382_v48  ;;  %v2383_v10 = vadd.f32 1e-05, %v2356_v58  ;;  %v7015_v14 = vmul.f32 0.0012755102, %v1769_v16  ;;  %v2514_v48 = vmul.f32 %v2460_v9, %v6953_v11  ;;  %v2487_v16 = vld [vmem:[%s8944_s5 + $0x78] sm:$0xff] }
 0x2e9   :  { %v1778_v23 = vpop.xlane.xlu1 %1777  ;;  %3322 = vperm.xlu1 %4079, %v2539_v18  }
 0x2ea   :  { %v4113_v8 = vpop.eup %4112  ;;  %4118 = vrsqrt.f32 %v2383_v10  ;;  %v2330_v29 = vmul.f32 %v7015_v14, %v7015_v14  ;;  %v7019_v30 = vmul.f32 0.0012755102, %v1778_v23 }
 0x2eb   :  { %v2461_v57 = vmul.f32 %v4113_v8, %v2434_v46  ;;  %v2210_v5 = vpop.xlane.xlu0 %2209  ;;  %3327 = vperm.xlu0 %4078, %v2540_v36   ;;  %v2488_v46 = vld [vmem:[%s8944_s5 + $0x80] sm:$0xff]  ;;  %v2541_v8 = vsub.f32 %v2487_v16, %v2514_v48  ;;  %v2437_v48 = vld [vmem:[%s8943_s4 + $0x98] sm:$0xff] }
 0x2ec   :  { %v4115_v28 = vpop.eup %4114  ;;  %v2357_v63 = vsub.f32 %v2303_v31, %v2330_v29  ;;  %v2331_v58 = vmul.f32 %v7019_v30, %v7019_v30  ;;  %v2304_v60 = vmul.f32 0.0012755102, %v2210_v5  ;;  %v2436_v31 = vld [vmem:[%s8943_s4 + $0x90] sm:$0xff] }
 0x2ed   :  { %v2515_v18 = vmul.f32 %v2461_v57, %v6971_v56  ;;  %v2219_v10 = vpop.xlane.xlu1 %2218  ;;  %2824 = vperm.xlu1 %4079, %v2461_v57   ;;  %v2462_v23 = vmul.f32 %v4115_v28, %v2435_v40 }
 0x2ee   :  { %v2384_v11 = vadd.f32 1e-05, %v2357_v63  ;;  %v2358_v9 = vsub.f32 %v2304_v60, %v2331_v58  ;;  %v2305_v28 = vmul.f32 0.0012755102, %v2219_v10 }
 0x2ef   :  { %v1787_v36 = vpop.xlane.xlu0 %1786  ;;  %2829 = vperm.xlu0 %4078, %v2462_v23   ;;  %v2542_v56 = vsub.f32 %v2488_v46, %v2515_v18 }
 0x2f0   :  { %4120 = vrsqrt.f32 %v2384_v11  ;;  %v2385_v29 = vadd.f32 1e-05, %v2358_v9  ;;  %v7037_v5 = vmul.f32 0.0012755102, %v1787_v36  ;;  %v2516_v11 = vmul.f32 %v2462_v23, %v6975_v21  ;;  %v2489_v36 = vld [vmem:[%s8944_s5 + $0x88] sm:$0xff] }
 0x2f1   :  { %v1796_v57 = vpop.xlane.xlu1 %1795  ;;  %3332 = vperm.xlu1 %4079, %v2541_v8  }
 0x2f2   :  { %v4117_v40 = vpop.eup %4116  ;;  %4122 = vrsqrt.f32 %v2385_v29  ;;  %v2332_v63 = vmul.f32 %v7037_v5, %v7037_v5  ;;  %v7041_v58 = vmul.f32 0.0012755102, %v1796_v57 }
 0x2f3   :  { %v2463_v60 = vmul.f32 %v4117_v40, %v2436_v31  ;;  %v2228_v16 = vpop.xlane.xlu0 %2227  ;;  %3337 = vperm.xlu0 %4078, %v2542_v56   ;;  %v2490_v31 = vld [vmem:[%s8944_s5 + $0x90] sm:$0xff]  ;;  %v2543_v40 = vsub.f32 %v2489_v36, %v2516_v11  ;;  %v2439_v11 = vld [vmem:[%s8943_s4 + $0xa8] sm:$0xff] }
 0x2f4   :  { %v4119_v18 = vpop.eup %4118  ;;  %v2359_v46 = vsub.f32 %v2305_v28, %v2332_v63  ;;  %v2333_v9 = vmul.f32 %v7041_v58, %v7041_v58  ;;  %v2306_v10 = vmul.f32 0.0012755102, %v2228_v16  ;;  %v2438_v28 = vld [vmem:[%s8943_s4 + $0xa0] sm:$0xff] }
 0x2f5   :  { %v2517_v8 = vmul.f32 %v2463_v60, %v6993_v13  ;;  %v2237_v29 = vpop.xlane.xlu1 %2236  ;;  %2834 = vperm.xlu1 %4079, %v2463_v60   ;;  %v2464_v57 = vmul.f32 %v4119_v18, %v2437_v48 }
 0x2f6   :  { %v2386_v21 = vadd.f32 1e-05, %v2359_v46  ;;  %v2360_v23 = vsub.f32 %v2306_v10, %v2333_v9  ;;  %v2307_v18 = vmul.f32 0.0012755102, %v2237_v29 }
 0x2f7   :  { %v1805_v56 = vpop.xlane.xlu0 %1804  ;;  %2839 = vperm.xlu0 %4078, %v2464_v57   ;;  %v2544_v13 = vsub.f32 %v2490_v31, %v2517_v8 }
 0x2f8   :  { %4124 = vrsqrt.f32 %v2386_v21  ;;  %v2387_v63 = vadd.f32 1e-05, %v2360_v23  ;;  %v7059_v16 = vmul.f32 0.0012755102, %v1805_v56  ;;  %v2518_v21 = vmul.f32 %v2464_v57, %v6997_v47  ;;  %v2491_v56 = vld [vmem:[%s8944_s5 + $0x98] sm:$0xff] }
 0x2f9   :  { %v1814_v60 = vpop.xlane.xlu1 %1813  ;;  %3342 = vperm.xlu1 %4079, %v2543_v40  }
 0x2fa   :  { %v4121_v48 = vpop.eup %4120  ;;  %4126 = vrsqrt.f32 %v2387_v63  ;;  %v2334_v46 = vmul.f32 %v7059_v16, %v7059_v16  ;;  %v7063_v9 = vmul.f32 0.0012755102, %v1814_v60 }
 0x2fb   :  { %v2465_v10 = vmul.f32 %v4121_v48, %v2438_v28  ;;  %v2246_v36 = vpop.xlane.xlu0 %2245  ;;  %3347 = vperm.xlu0 %4078, %v2544_v13   ;;  %v2492_v28 = vld [vmem:[%s8944_s5 + $0xa0] sm:$0xff]  ;;  %v2545_v48 = vsub.f32 %v2491_v56, %v2518_v21 }
 0x2fc   :  { %v4123_v8 = vpop.eup %4122  ;;  %v2361_v31 = vsub.f32 %v2307_v18, %v2334_v46  ;;  %v2335_v23 = vmul.f32 %v7063_v9, %v7063_v9  ;;  %v2308_v29 = vmul.f32 0.0012755102, %v2246_v36  ;;  %v2440_v18 = vld [vmem:[%s8943_s4 + $0xb0] sm:$0xff] }
 0x2fd   :  { %v2519_v40 = vmul.f32 %v2465_v10, %v7015_v14  ;;  %2844 = vperm.xlu1 %4079, %v2465_v10   ;;  %v2466_v63 = vmul.f32 %v4123_v8, %v2439_v11  ;;  %v2255_v57 = vpop.xlane.xlu1 %2254 }
 0x2fe   :  { %v2388_v13 = vadd.f32 1e-05, %v2361_v31  ;;  %v2362_v47 = vsub.f32 %v2308_v29, %v2335_v23  ;;  %v2309_v10 = vmul.f32 0.0012755102, %v2255_v57  ;;  %v2441_v31 = vld [vmem:[%s8943_s4 + $0xb8] sm:$0xff] }
 0x2ff   :  { %2849 = vperm.xlu0 %4078, %v2466_v63   ;;  %v1823_v60 = vpop.xlane.xlu0 %1822  ;;  %v2546_v14 = vsub.f32 %v2492_v28, %v2519_v40  ;;  %v2520_v21 = vmul.f32 %v2466_v63, %v7019_v30  ;;  %v2442_v30 = vld [vmem:[%s8943_s4 + $0xc0] sm:$0xff] }
 0x300   :  { %4128 = vrsqrt.f32 %v2388_v13  ;;  %v2389_v46 = vadd.f32 1e-05, %v2362_v47  ;;  %v2282_v36 = vmul.f32 0.0012755102, %v1823_v60  ;;  %v2493_v13 = vld [vmem:[%s8944_s5 + $0xa8] sm:$0xff]  ;;  %v2494_v47 = vld [vmem:[%s8944_s5 + $0xb0] sm:$0xff] }
 0x301   :  { %3352 = vperm.xlu1 %4079, %v2545_v48   ;;  %v2547_v60 = vsub.f32 %v2493_v13, %v2520_v21  ;;  %v2444_v21 = vld [vmem:[%s8943_s4 + $0xd0] sm:$0xff] }
 0x302   :  { %v4125_v11 = vpop.eup %4124  ;;  %4130 = vrsqrt.f32 %v2389_v46  ;;  %v2336_v8 = vmul.f32 %v2282_v36, %v2282_v36 }
 0x303   :  { %v2467_v23 = vmul.f32 %v4125_v11, %v2440_v18  ;;  %3357 = vperm.xlu0 %4078, %v2546_v14   ;;  %v2495_v11 = vld [vmem:[%s8944_s5 + $0xb8] sm:$0xff] }
 0x304   :  { %v4127_v29 = vpop.eup %4126  ;;  %v2363_v56 = vsub.f32 %v2309_v10, %v2336_v8 }
 0x305   :  { %v2521_v40 = vmul.f32 %v2467_v23, %v7037_v5  ;;  %2854 = vperm.xlu1 %4079, %v2467_v23   ;;  %v2468_v28 = vmul.f32 %v4127_v29, %v2441_v31  ;;  %v2443_v5 = vld [vmem:[%s8943_s4 + $0xc8] sm:$0xff]  ;;  %v2496_v31 = vld [vmem:[%s8944_s5 + $0xc0] sm:$0xff] }
 0x306   :  { %v2390_v57 = vadd.f32 1e-05, %v2363_v56 }
 0x307   :  { %2859 = vperm.xlu0 %4078, %v2468_v28   ;;  %v2548_v63 = vsub.f32 %v2494_v47, %v2521_v40  ;;  %v2522_v46 = vmul.f32 %v2468_v28, %v7041_v58  ;;  %v2497_v40 = vld [vmem:[%s8944_s5 + $0xc8] sm:$0xff] }
 0x308   :  { %4132 = vrsqrt.f32 %v2390_v57 }
 0x309   :  { %3362 = vperm.xlu1 %4079, %v2547_v60   ;;  %v2549_v23 = vsub.f32 %v2495_v11, %v2522_v46  ;;  %v2553_v60 = vld [vmem:[%s8945_s1] sm:$0xff] }
 0x30a   :  { %v4129_v48 = vpop.eup %4128 }
 0x30b   :  { %v2469_v18 = vmul.f32 %v4129_v48, %v2442_v30  ;;  %3367 = vperm.xlu0 %4078, %v2548_v63   ;;  %v2555_v63 = vld [vmem:[%s8945_s1 + $0x10] sm:$0xff]  ;;  %v9277_v48 = vld [vmem:[#allocation2_spill] sm:$0xff] }
 0x30c   :  { %v4131_v14 = vpop.eup %4130 }
 0x30d   :  { %v2523_v10 = vmul.f32 %v2469_v18, %v7059_v16  ;;  %2864 = vperm.xlu1 %4079, %v2469_v18   ;;  %v2470_v8 = vmul.f32 %v4131_v14, %v2443_v5  ;;  %v2498_v16 = vld [vmem:[%s8944_s5 + $0xd0] sm:$0xff]  ;;  %v9278_v18 = vld [vmem:[#allocation3_spill] sm:$0xff] }
 0x30e   :  { %v9279_v14 = vld [vmem:[#allocation4_spill] sm:$0xff] }
 0x30f   :  { %2869 = vperm.xlu0 %4078, %v2470_v8   ;;  %v2550_v58 = vsub.f32 %v2496_v31, %v2523_v10  ;;  %v2524_v13 = vmul.f32 %v2470_v8, %v7063_v9  ;;  %v2554_v9 = vld [vmem:[%s8945_s1 + $0x8] sm:$0xff]  ;;  %v9280_v10 = vld [vmem:[#allocation5_spill] sm:$0xff]  ;;  %v2557_v31 = vld [vmem:[%s8945_s1 + $0x20] sm:$0xff] }
 0x311   :  { %3372 = vperm.xlu1 %4079, %v2549_v23   ;;  %v2551_v57 = vsub.f32 %v2497_v40, %v2524_v13  ;;  %v2558_v23 = vld [vmem:[%s8945_s1 + $0x28] sm:$0xff] }
 0x312   :  { %v4133_v29 = vpop.eup %4132 }
 0x313   :  { %v2471_v56 = vmul.f32 %v4133_v29, %v2444_v21  ;;  %3377 = vperm.xlu0 %4078, %v2550_v58   ;;  %v2559_v21 = vld [vmem:[%s8945_s1 + $0x30] sm:$0xff]  ;;  %v9281_v58 = vld [vmem:[#allocation113_spill] sm:$0xff] }
 0x315   :  { %v2525_v28 = vmul.f32 %v2471_v56, %v2282_v36  ;;  %2874 = vperm.xlu1 %4079, %v2471_v56   ;;  %v2556_v36 = vld [vmem:[%s8945_s1 + $0x18] sm:$0xff]  ;;  %v9282_v56 = vld [vmem:[#allocation114_spill] sm:$0xff] }
 0x317   :  { %v2552_v47 = vsub.f32 %v2498_v16, %v2525_v28  ;;  %v9283_v16 = vld [vmem:[#allocation116_spill] sm:$0xff] }
 0x319   :  { %3382 = vperm.xlu1 %4079, %v2551_v57   ;;  %3387 = vperm.xlu0 %4078, %v2552_v47  }
 0x32a   :  { %v2745_v30 = vpop.permute.xlu0 %2744 }
 0x32b   :  { %v2877_v5 = vmul.f32 %v2745_v30, %v9277_v48  ;;  %v2878_v46 = vmul.f32 %v2745_v30, %v9278_v18  ;;  %v2879_v11 = vmul.f32 %v2745_v30, %v9279_v14  ;;  %v2880_v8 = vmul.f32 %v2745_v30, %v9280_v10 }
 0x32c   :  { %v2881_v29 = vmul.f32 %v2745_v30, %v9281_v58  ;;  %v2882_v13 = vmul.f32 %v2745_v30, %v9282_v56  ;;  %v2883_v40 = vmul.f32 %v2745_v30, %v9283_v16  ;;  %v9287_v58 = vld [vmem:[#allocation10_spill] sm:$0xff]  ;;  %v9289_v30 = vld [vmem:[#allocation119_spill] sm:$0xff] }
 0x32d   :  { %v3066_v28 = vadd.f32 %v2877_v5, %v2553_v60  ;;  %v3067_v47 = vadd.f32 %v2878_v46, %v2554_v9  ;;  %v3068_v57 = vadd.f32 %v2879_v11, %v2555_v63  ;;  %v3069_v48 = vadd.f32 %v2880_v8, %v2556_v36  ;;  %v9288_v56 = vld [vmem:[#allocation118_spill] sm:$0xff]  ;;  %v2560_v36 = vld [vmem:[%s8945_s1 + $0x38] sm:$0xff] }
 0x32e   :  { %v2750_v18 = vpop.permute.xlu1 %2749  ;;  %v3070_v14 = vadd.f32 %v2881_v29, %v2557_v31  ;;  %v3071_v10 = vadd.f32 %v2882_v13, %v2558_v23  ;;  %v3072_v24 = vadd.f32 %v2883_v40, %v2559_v21  ;;  %v3258_v50 = vpop.permute.xlu0 %3257  ;;  %v2564_v8 = vld [vmem:[%s8945_s1 + $0x58] sm:$0xff]  ;;  %v2565_v31 = vld [vmem:[%s8945_s1 + $0x60] sm:$0xff]  ;;  %v2566_v29 = vld [vmem:[%s8945_s1 + $0x68] sm:$0xff] }
 0x32f   :  { %v2884_v62 = vmul.f32 %v2750_v18, %v9284_v59  ;;  %v2885_v22 = vmul.f32 %v2750_v18, %v9285_v42  ;;  %v2886_v4 = vmul.f32 %v2750_v18, %v9286_v38  ;;  %v2887_v33 = vmul.f32 %v2750_v18, %v9287_v58  ;;  %v2561_v59 = vld [vmem:[%s8945_s1 + $0x40] sm:$0xff]  ;;  %v2562_v38 = vld [vmem:[%s8945_s1 + $0x48] sm:$0xff]  ;;  %v2567_v58 = vld [vmem:[%s8945_s1 + $0x70] sm:$0xff] }
 0x330   :  { %v2888_v53 = vmul.f32 %v2750_v18, %v9288_v56  ;;  %v2889_v60 = vmul.f32 %v2750_v18, %v6340_v61  ;;  %v2890_v9 = vmul.f32 %v2750_v18, %v9289_v30  ;;  %v3390_v63 = vadd.f32 %v3258_v50, %v3066_v28  ;;  %v2563_v61 = vld [vmem:[%s8945_s1 + $0x50] sm:$0xff]  ;;  %v9291_v18 = vld [vmem:[#allocation11_spill] sm:$0xff]  ;;  %v9293_v56 = vld [vmem:[#allocation14_spill] sm:$0xff] }
 0x331   :  { %v3391_v42 = vadd.f32 %v3258_v50, %v3067_v47  ;;  %v3392_v5 = vadd.f32 %v3258_v50, %v3068_v57  ;;  %v3393_v46 = vadd.f32 %v3258_v50, %v3069_v48  ;;  %v3394_v11 = vadd.f32 %v3258_v50, %v3070_v14  ;;  %v9290_v57 = vld [vmem:[#allocation9_spill] sm:$0xff] }
 0x332   :  { %v3395_v23 = vadd.f32 %v3258_v50, %v3071_v10  ;;  %v3396_v21 = vadd.f32 %v3258_v50, %v3072_v24  ;;  %3579 = vst [vmem:[%s8946_s6] sm:$0xff] %v3390_v63  ;;  %v3073_v50 = vadd.f32 %v2884_v62, %v2560_v36  ;;  %v3074_v24 = vadd.f32 %v2885_v22, %v2561_v59  ;;  %v9292_v62 = vld [vmem:[#allocation12_spill] sm:$0xff] }
 0x333   :  { %3580 = vst [vmem:[%s8946_s6 + $0x8] sm:$0xff] %v3391_v42  ;;  %3581 = vst [vmem:[%s8946_s6 + $0x10] sm:$0xff] %v3392_v5  ;;  %v3075_v16 = vadd.f32 %v2886_v4, %v2562_v38  ;;  %v3076_v40 = vadd.f32 %v2887_v33, %v2563_v61  ;;  %v3077_v28 = vadd.f32 %v2888_v53, %v2564_v8  ;;  %v9294_v63 = vld [vmem:[#allocation120_spill] sm:$0xff]  ;;  %v9296_v38 = vld [vmem:[#allocation15_spill] sm:$0xff] }
 0x334   :  { %3582 = vst [vmem:[%s8946_s6 + $0x18] sm:$0xff] %v3393_v46  ;;  %3583 = vst [vmem:[%s8946_s6 + $0x20] sm:$0xff] %v3394_v11  ;;  %v2755_v13 = vpop.permute.xlu1 %2754  ;;  %v3078_v47 = vadd.f32 %v2889_v60, %v2565_v31  ;;  %v3079_v10 = vadd.f32 %v2890_v9, %v2566_v29  ;;  %v9295_v60 = vld [vmem:[#allocation13_spill] sm:$0xff]  ;;  %v9297_v5 = vld [vmem:[#allocation16_spill] sm:$0xff] }
 0x335   :  { %3584 = vst [vmem:[%s8946_s6 + $0x28] sm:$0xff] %v3395_v23  ;;  %3585 = vst.msk [vmem:[%s8946_s6 + $0x30] sm:$0xff] %vm1585_vm1, %v3396_v21  ;;  %v2891_v48 = vmul.f32 %v2755_v13, %v9290_v57  ;;  %v2892_v14 = vmul.f32 %v2755_v13, %v9291_v18  ;;  %v2893_v22 = vmul.f32 %v2755_v13, %v9292_v62  ;;  %v9298_v46 = vld [vmem:[#allocation18_spill] sm:$0xff]  ;;  %v2568_v61 = vld [vmem:[%s8945_s1 + $0x78] sm:$0xff] }
 0x336   :  { %v2894_v30 = vmul.f32 %v2755_v13, %v9293_v56  ;;  %v2895_v36 = vmul.f32 %v2755_v13, %v9294_v63  ;;  %v2896_v4 = vmul.f32 %v2755_v13, %v6359_v15  ;;  %v2897_v53 = vmul.f32 %v2755_v13, %v6364_v6  ;;  %v2760_v33 = vpop.permute.xlu0 %2759  ;;  %v2569_v15 = vld [vmem:[%s8945_s1 + $0x80] sm:$0xff]  ;;  %v9299_v6 = vld [vmem:[#allocation121_spill] sm:$0xff]  ;;  %v2570_v29 = vld [vmem:[%s8945_s1 + $0x88] sm:$0xff] }
 0x337   :  { %v2898_v59 = vmul.f32 %v2760_v33, %v9295_v60  ;;  %v7206_v42 = vmul.f32 %v2760_v33, %v9296_v38  ;;  %v7209_v9 = vmul.f32 %v2760_v33, %v9297_v5  ;;  %v7212_v11 = vmul.f32 %v2760_v33, %v9298_v46  ;;  %v2571_v13 = vld [vmem:[%s8945_s1 + $0x90] sm:$0xff]  ;;  %v2572_v57 = vld [vmem:[%s8945_s1 + $0x98] sm:$0xff] }
 0x338   :  { %v7221_v8 = vmul.f32 %v2760_v33, %v9299_v6  ;;  %v7224_v31 = vmul.f32 %v2760_v33, %v6378_v43  ;;  %v7227_v23 = vmul.f32 %v2760_v33, %v6383_v52  ;;  %v3263_v21 = vpop.permute.xlu1 %3262  ;;  %v3080_v18 = vadd.f32 %v2891_v48, %v2567_v58  ;;  %v2573_v52 = vld [vmem:[%s8945_s1 + $0xa0] sm:$0xff]  ;;  %v2574_v33 = vld [vmem:[%s8945_s1 + $0xa8] sm:$0xff] }
 0x339   :  { %v3397_v62 = vadd.f32 %v3263_v21, %v3073_v50  ;;  %v3398_v43 = vadd.f32 %v3263_v21, %v3074_v24  ;;  %v3399_v56 = vadd.f32 %v3263_v21, %v3075_v16  ;;  %v3400_v63 = vadd.f32 %v3263_v21, %v3076_v40 }
 0x33a   :  { %v3401_v60 = vadd.f32 %v3263_v21, %v3077_v28  ;;  %v3402_v38 = vadd.f32 %v3263_v21, %v3078_v47  ;;  %v3403_v5 = vadd.f32 %v3263_v21, %v3079_v10  ;;  %v3081_v46 = vadd.f32 %v2892_v14, %v2568_v61  ;;  %v3268_v6 = vpop.permute.xlu0 %3267  ;;  %v9300_v61 = vld [vmem:[#allocation17_spill] sm:$0xff] }
 0x33b   :  { %3586 = vst [vmem:[%s8946_s6 + $0x38] sm:$0xff] %v3397_v62  ;;  %3587 = vst [vmem:[%s8946_s6 + $0x40] sm:$0xff] %v3398_v43  ;;  %v3082_v50 = vadd.f32 %v2893_v22, %v2569_v15  ;;  %v3083_v24 = vadd.f32 %v2894_v30, %v2570_v29  ;;  %v3084_v16 = vadd.f32 %v2895_v36, %v2571_v13  ;;  %v9302_v29 = vld [vmem:[#allocation20_spill] sm:$0xff]  ;;  %v9303_v62 = vld [vmem:[#allocation22_spill] sm:$0xff] }
 0x33c   :  { %3588 = vst [vmem:[%s8946_s6 + $0x48] sm:$0xff] %v3399_v56  ;;  %3589 = vst [vmem:[%s8946_s6 + $0x50] sm:$0xff] %v3400_v63  ;;  %v3085_v40 = vadd.f32 %v2896_v4, %v2572_v57  ;;  %v3086_v28 = vadd.f32 %v2897_v53, %v2573_v52  ;;  %v3404_v47 = vadd.f32 %v3268_v6, %v3080_v18  ;;  %v2765_v14 = vpop.permute.xlu1 %2764  ;;  %v9301_v53 = vld [vmem:[#allocation19_spill] sm:$0xff]  ;;  %v2575_v57 = vld [vmem:[%s8945_s1 + $0xb0] sm:$0xff] }
 0x33d   :  { %3590 = vst [vmem:[%s8946_s6 + $0x58] sm:$0xff] %v3401_v60  ;;  %3591 = vst [vmem:[%s8946_s6 + $0x60] sm:$0xff] %v3402_v38  ;;  %v3405_v48 = vadd.f32 %v3268_v6, %v3081_v46  ;;  %v3087_v22 = vadd.f32 %v2898_v59, %v2574_v33  ;;  %v3406_v10 = vadd.f32 %v3268_v6, %v3082_v50  ;;  %v2576_v18 = vld [vmem:[%s8945_s1 + $0xb8] sm:$0xff]  ;;  %v9304_v56 = vld [vmem:[#allocation122_spill] sm:$0xff] }
 0x33e   :  { %3592 = vst.msk [vmem:[%s8946_s6 + $0x68] sm:$0xff] %vm1585_vm1, %v3403_v5  ;;  %v3407_v58 = vadd.f32 %v3268_v6, %v3083_v24  ;;  %v3408_v30 = vadd.f32 %v3268_v6, %v3084_v16  ;;  %v3409_v36 = vadd.f32 %v3268_v6, %v3085_v40  ;;  %v3410_v4 = vadd.f32 %v3268_v6, %v3086_v28  ;;  %v2770_v59 = vpop.permute.xlu0 %2769  ;;  %v2577_v60 = vld [vmem:[%s8945_s1 + $0xc0] sm:$0xff]  ;;  %v2578_v38 = vld [vmem:[%s8945_s1 + $0xc8] sm:$0xff]  ;;  %v2579_v5 = vld [vmem:[%s8945_s1 + $0xd0] sm:$0xff] }
 0x33f   :  { %3593 = vst [vmem:[%s8946_s6 + $0x70] sm:$0xff] %v3404_v47  ;;  %3594 = vst [vmem:[%s8946_s6 + $0x78] sm:$0xff] %v3405_v48  ;;  %v2905_v15 = vmul.f32 %v2765_v14, %v9300_v61  ;;  %v2906_v21 = vmul.f32 %v2765_v14, %v9301_v53  ;;  %v2907_v13 = vmul.f32 %v2765_v14, %v9302_v29  ;;  %v9307_v50 = vld [vmem:[#allocation24_spill] sm:$0xff]  ;;  %v9308_v16 = vld [vmem:[#allocation26_spill] sm:$0xff] }
 0x340   :  { %3595 = vst [vmem:[%s8946_s6 + $0x80] sm:$0xff] %v3406_v10  ;;  %3596 = vst [vmem:[%s8946_s6 + $0x88] sm:$0xff] %v3407_v58  ;;  %v2908_v43 = vmul.f32 %v2765_v14, %v9303_v62  ;;  %v2909_v63 = vmul.f32 %v2765_v14, %v9304_v56  ;;  %v2910_v52 = vmul.f32 %v2765_v14, %v6397_v0  ;;  %v9305_v0 = vld [vmem:[#allocation21_spill] sm:$0xff]  ;;  %v3273_v47 = vpop.permute.xlu1 %3272  ;;  %v2581_v48 = vld [vmem:[%s8945_s1 + $0xe0] sm:$0xff] }
 0x341   :  { %3597 = vst [vmem:[%s8946_s6 + $0x90] sm:$0xff] %v3408_v30  ;;  %3598 = vst [vmem:[%s8946_s6 + $0x98] sm:$0xff] %v3409_v36  ;;  %v2911_v33 = vmul.f32 %v2765_v14, %v6402_v34  ;;  %v7311_v46 = vmul.f32 %v2770_v59, %v9305_v0  ;;  %v9306_v34 = vld [vmem:[#allocation23_spill] sm:$0xff]  ;;  %v7317_v24 = vmul.f32 %v2770_v59, %v9307_v50  ;;  %v2580_v28 = vld [vmem:[%s8945_s1 + $0xd8] sm:$0xff] }
 0x342   :  { %3599 = vst.msk [vmem:[%s8946_s6 + $0xa0] sm:$0xff] %vm1585_vm1, %v3410_v4  ;;  %v7314_v6 = vmul.f32 %v2770_v59, %v9306_v34  ;;  %v7320_v40 = vmul.f32 %v2770_v59, %v9308_v16  ;;  %v9309_v14 = vld [vmem:[#allocation123_spill] sm:$0xff]  ;;  %v7332_v58 = vmul.f32 %v2770_v59, %v6416_v54  ;;  %v7335_v30 = vmul.f32 %v2770_v59, %v6421_v35  ;;  %v2583_v54 = vld [vmem:[%s8945_s1 + $0xf0] sm:$0xff]  ;;  %v2584_v35 = vld [vmem:[%s8945_s1 + $0xf8] sm:$0xff] }
 0x343   :  { %v7329_v10 = vmul.f32 %v2770_v59, %v9309_v14  ;;  %v3088_v36 = vadd.f32 %v7206_v42, %v2575_v57  ;;  %v3089_v4 = vadd.f32 %v7209_v9, %v2576_v18  ;;  %v3090_v61 = vadd.f32 %v7212_v11, %v2577_v60  ;;  %v2582_v62 = vld [vmem:[%s8945_s1 + $0xe8] sm:$0xff]  ;;  %v3278_v42 = vpop.permute.xlu0 %3277  ;;  %v2587_v57 = vld [vmem:[%s8945_s1 + $0x110] sm:$0xff]  ;;  %v9310_v14 = vld [vmem:[#allocation25_spill] sm:$0xff] }
 0x344   :  { %v3091_v53 = vadd.f32 %v7221_v8, %v2578_v38  ;;  %v3092_v29 = vadd.f32 %v7224_v31, %v2579_v5  ;;  %v3093_v9 = vadd.f32 %v7227_v23, %v2580_v28  ;;  %v3411_v11 = vadd.f32 %v3273_v47, %v3087_v22  ;;  %v2585_v8 = vld [vmem:[%s8945_s1 + $0x100] sm:$0xff]  ;;  %v2586_v31 = vld [vmem:[%s8945_s1 + $0x108] sm:$0xff]  ;;  %v2775_v23 = vpop.permute.xlu1 %2774 }
 0x345   :  { %v3412_v59 = vadd.f32 %v3273_v47, %v3088_v36  ;;  %v3094_v18 = vadd.f32 %v2905_v15, %v2581_v48  ;;  %v3413_v56 = vadd.f32 %v3273_v47, %v3089_v4  ;;  %v3414_v60 = vadd.f32 %v3273_v47, %v3090_v61 }
 0x346   :  { %v3415_v38 = vadd.f32 %v3273_v47, %v3091_v53  ;;  %v3416_v5 = vadd.f32 %v3273_v47, %v3092_v29  ;;  %v3417_v22 = vadd.f32 %v3273_v47, %v3093_v9  ;;  %3600 = vst [vmem:[%s8946_s6 + $0xa8] sm:$0xff] %v3411_v11  ;;  %v3095_v0 = vadd.f32 %v2906_v21, %v2582_v62  ;;  %v2589_v29 = vld [vmem:[%s8945_s1 + $0x120] sm:$0xff]  ;;  %v9314_v11 = vld [vmem:[#allocation124_spill] sm:$0xff] }
 0x347   :  { %3601 = vst [vmem:[%s8946_s6 + $0xb0] sm:$0xff] %v3412_v59  ;;  %v3096_v34 = vadd.f32 %v2907_v13, %v2583_v54  ;;  %v3097_v50 = vadd.f32 %v2908_v43, %v2584_v35  ;;  %3602 = vst [vmem:[%s8946_s6 + $0xb8] sm:$0xff] %v3413_v56  ;;  %v3098_v15 = vadd.f32 %v2909_v63, %v2585_v8  ;;  %v2780_v16 = vpop.permute.xlu0 %2779  ;;  %v9311_v63 = vld [vmem:[#allocation27_spill] sm:$0xff]  ;;  %v9312_v54 = vld [vmem:[#allocation28_spill] sm:$0xff] }
 0x348   :  { %3603 = vst [vmem:[%s8946_s6 + $0xc0] sm:$0xff] %v3414_v60  ;;  %3604 = vst [vmem:[%s8946_s6 + $0xc8] sm:$0xff] %v3415_v38  ;;  %v3099_v21 = vadd.f32 %v2910_v52, %v2586_v31  ;;  %v3100_v13 = vadd.f32 %v2911_v33, %v2587_v57  ;;  %v3418_v43 = vadd.f32 %v3278_v42, %v3094_v18  ;;  %v2588_v33 = vld [vmem:[%s8945_s1 + $0x118] sm:$0xff]  ;;  %v3283_v62 = vpop.permute.xlu1 %3282  ;;  %v2590_v31 = vld [vmem:[%s8945_s1 + $0x128] sm:$0xff] }
 0x349   :  { %3605 = vst [vmem:[%s8946_s6 + $0xd0] sm:$0xff] %v3416_v5  ;;  %3606 = vst.msk [vmem:[%s8946_s6 + $0xd8] sm:$0xff] %vm1585_vm1, %v3417_v22  ;;  %v3419_v28 = vadd.f32 %v3278_v42, %v3095_v0  ;;  %v3420_v47 = vadd.f32 %v3278_v42, %v3096_v34  ;;  %v3421_v48 = vadd.f32 %v3278_v42, %v3097_v50  ;;  %v2591_v57 = vld [vmem:[%s8945_s1 + $0x130] sm:$0xff]  ;;  %v2592_v18 = vld [vmem:[%s8945_s1 + $0x138] sm:$0xff] }
 0x34a   :  { %v2919_v36 = vmul.f32 %v2775_v23, %v9310_v14  ;;  %v3422_v4 = vadd.f32 %v3278_v42, %v3098_v15  ;;  %v3423_v61 = vadd.f32 %v3278_v42, %v3099_v21  ;;  %v3424_v53 = vadd.f32 %v3278_v42, %v3100_v13  ;;  %3607 = vst [vmem:[%s8946_s6 + $0xe0] sm:$0xff] %v3418_v43  ;;  %v9313_v42 = vld [vmem:[#allocation30_spill] sm:$0xff]  ;;  %v9315_v56 = vld [vmem:[#allocation29_spill] sm:$0xff]  ;;  %v9316_v38 = vld [vmem:[#allocation31_spill] sm:$0xff] }
 0x34b   :  { %v2920_v52 = vmul.f32 %v2775_v23, %v9311_v63  ;;  %3608 = vst [vmem:[%s8946_s6 + $0xe8] sm:$0xff] %v3419_v28  ;;  %3609 = vst [vmem:[%s8946_s6 + $0xf0] sm:$0xff] %v3420_v47  ;;  %v2921_v35 = vmul.f32 %v2775_v23, %v9312_v54  ;;  %v2922_v9 = vmul.f32 %v2775_v23, %v9313_v42  ;;  %v9317_v22 = vld [vmem:[#allocation32_spill] sm:$0xff]  ;;  %v2593_v34 = vld [vmem:[%s8945_s1 + $0x140] sm:$0xff] }
 0x34c   :  { %3610 = vst [vmem:[%s8946_s6 + $0xf8] sm:$0xff] %v3421_v48  ;;  %v2923_v59 = vmul.f32 %v2775_v23, %v9314_v11  ;;  %v2924_v8 = vmul.f32 %v2775_v23, %v6435_v39  ;;  %3611 = vst [vmem:[%s8946_s6 + $0x100] sm:$0xff] %v3422_v4  ;;  %v2925_v39 = vmul.f32 %v2775_v23, %v6440_v25  ;;  %v2594_v50 = vld [vmem:[%s8945_s1 + $0x148] sm:$0xff]  ;;  %v2595_v25 = vld [vmem:[%s8945_s1 + $0x150] sm:$0xff]  ;;  %v3288_v23 = vpop.permute.xlu0 %3287  ;;  %v2785_v63 = vpop.permute.xlu1 %2784 }
 0x34d   :  { %3612 = vst [vmem:[%s8946_s6 + $0x108] sm:$0xff] %v3423_v61  ;;  %3613 = vst.msk [vmem:[%s8946_s6 + $0x110] sm:$0xff] %vm1585_vm1, %v3424_v53  ;;  %v7428_v60 = vmul.f32 %v2780_v16, %v9315_v56  ;;  %v7431_v5 = vmul.f32 %v2780_v16, %v9316_v38  ;;  %v7434_v0 = vmul.f32 %v2780_v16, %v9317_v22  ;;  %v9318_v15 = vld [vmem:[#allocation34_spill] sm:$0xff]  ;;  %v9319_v13 = vld [vmem:[#allocation125_spill] sm:$0xff] }
 0x34e   :  { %v7446_v21 = vmul.f32 %v2780_v16, %v9318_v15  ;;  %v7449_v43 = vmul.f32 %v2780_v16, %v9319_v13  ;;  %v7452_v28 = vmul.f32 %v2780_v16, %v6454_v20  ;;  %v7455_v47 = vmul.f32 %v2780_v16, %v6459_v32  ;;  %v2596_v53 = vld [vmem:[%s8945_s1 + $0x158] sm:$0xff]  ;;  %v2597_v20 = vld [vmem:[%s8945_s1 + $0x160] sm:$0xff] }
 0x34f   :  { %v3101_v48 = vadd.f32 %v7311_v46, %v2588_v33  ;;  %v3102_v14 = vadd.f32 %v7314_v6, %v2589_v29  ;;  %v3103_v4 = vadd.f32 %v7317_v24, %v2590_v31  ;;  %v3104_v61 = vadd.f32 %v7320_v40, %v2591_v57  ;;  %v2598_v6 = vld [vmem:[%s8945_s1 + $0x168] sm:$0xff]  ;;  %v2599_v24 = vld [vmem:[%s8945_s1 + $0x170] sm:$0xff]  ;;  %v2600_v40 = vld [vmem:[%s8945_s1 + $0x178] sm:$0xff] }
 0x350   :  { %v3105_v32 = vadd.f32 %v7329_v10, %v2592_v18  ;;  %v3106_v16 = vadd.f32 %v7332_v58, %v2593_v34  ;;  %v3107_v46 = vadd.f32 %v7335_v30, %v2594_v50  ;;  %v3108_v33 = vadd.f32 %v2919_v36, %v2595_v25  ;;  %v2601_v58 = vld [vmem:[%s8945_s1 + $0x180] sm:$0xff]  ;;  %v2790_v30 = vpop.permute.xlu0 %2789  ;;  %v7494_v38 = vpop.permute.xlu1 %3292 }
 0x351   :  { %v3425_v29 = vadd.f32 %v3283_v62, %v3101_v48  ;;  %v3426_v54 = vadd.f32 %v3283_v62, %v3102_v14  ;;  %v3427_v10 = vadd.f32 %v3283_v62, %v3103_v4  ;;  %v3428_v42 = vadd.f32 %v3283_v62, %v3104_v61  ;;  %v9322_v4 = vld [vmem:[#allocation36_spill] sm:$0xff] }
 0x352   :  { %v3429_v11 = vadd.f32 %v3283_v62, %v3105_v32  ;;  %v3430_v31 = vadd.f32 %v3283_v62, %v3106_v16  ;;  %v3431_v57 = vadd.f32 %v3283_v62, %v3107_v46  ;;  %v3109_v18 = vadd.f32 %v2920_v52, %v2596_v53  ;;  %v9323_v53 = vld [vmem:[#allocation38_spill] sm:$0xff]  ;;  %v2602_v32 = vld [vmem:[%s8945_s1 + $0x188] sm:$0xff]  ;;  %v2604_v16 = vld [vmem:[%s8945_s1 + $0x198] sm:$0xff] }
 0x353   :  { %3614 = vst [vmem:[%s8946_s6 + $0x118] sm:$0xff] %v3425_v29  ;;  %3615 = vst [vmem:[%s8946_s6 + $0x120] sm:$0xff] %v3426_v54  ;;  %v3110_v36 = vadd.f32 %v2921_v35, %v2597_v20  ;;  %v3111_v56 = vadd.f32 %v2922_v9, %v2598_v6  ;;  %v3112_v62 = vadd.f32 %v2923_v59, %v2599_v24  ;;  %v9320_v59 = vld [vmem:[#allocation33_spill] sm:$0xff]  ;;  %v9324_v46 = vld [vmem:[#allocation126_spill] sm:$0xff] }
 0x354   :  { %3616 = vst [vmem:[%s8946_s6 + $0x128] sm:$0xff] %v3427_v10  ;;  %3617 = vst [vmem:[%s8946_s6 + $0x130] sm:$0xff] %v3428_v42  ;;  %v3113_v52 = vadd.f32 %v2924_v8, %v2600_v40  ;;  %v3114_v22 = vadd.f32 %v2925_v39, %v2601_v58  ;;  %v3432_v35 = vadd.f32 %v3288_v23, %v3108_v33  ;;  %v7507_v13 = vpop.permute.xlu0 %3297  ;;  %v9321_v39 = vld [vmem:[#allocation35_spill] sm:$0xff]  ;;  %v9325_v33 = vld [vmem:[#allocation37_spill] sm:$0xff]  ;;  %v7554_v58 = vpop.permute.xlu1 %2794 }
 0x355   :  { %3618 = vst [vmem:[%s8946_s6 + $0x138] sm:$0xff] %v3429_v11  ;;  %3619 = vst [vmem:[%s8946_s6 + $0x140] sm:$0xff] %v3430_v31  ;;  %v3433_v9 = vadd.f32 %v3288_v23, %v3109_v18  ;;  %v2933_v8 = vmul.f32 %v2785_v63, %v9320_v59  ;;  %v3434_v34 = vadd.f32 %v3288_v23, %v3110_v36  ;;  %v2605_v54 = vld [vmem:[%s8945_s1 + $0x1a0] sm:$0xff]  ;;  %v2606_v10 = vld [vmem:[%s8945_s1 + $0x1a8] sm:$0xff] }
 0x356   :  { %3620 = vst.msk [vmem:[%s8946_s6 + $0x148] sm:$0xff] %vm1585_vm1, %v3431_v57  ;;  %v3435_v50 = vadd.f32 %v3288_v23, %v3111_v56  ;;  %v3436_v25 = vadd.f32 %v3288_v23, %v3112_v62  ;;  %v3437_v15 = vadd.f32 %v3288_v23, %v3113_v52  ;;  %v3438_v48 = vadd.f32 %v3288_v23, %v3114_v22  ;;  %v2603_v23 = vld [vmem:[%s8945_s1 + $0x190] sm:$0xff]  ;;  %v9328_v31 = vld [vmem:[#allocation42_spill] sm:$0xff]  ;;  %v9329_v18 = vld [vmem:[#allocation127_spill] sm:$0xff] }
 0x357   :  { %3621 = vst [vmem:[%s8946_s6 + $0x150] sm:$0xff] %v3432_v35  ;;  %3622 = vst [vmem:[%s8946_s6 + $0x158] sm:$0xff] %v3433_v9  ;;  %v2934_v14 = vmul.f32 %v2785_v63, %v9321_v39  ;;  %v2935_v61 = vmul.f32 %v2785_v63, %v9322_v4  ;;  %v2936_v20 = vmul.f32 %v2785_v63, %v9323_v53  ;;  %v2607_v42 = vld [vmem:[%s8945_s1 + $0x1b0] sm:$0xff]  ;;  %v2608_v56 = vld [vmem:[%s8945_s1 + $0x1b8] sm:$0xff] }
 0x358   :  { %3623 = vst [vmem:[%s8946_s6 + $0x160] sm:$0xff] %v3434_v34  ;;  %3624 = vst [vmem:[%s8946_s6 + $0x168] sm:$0xff] %v3435_v50  ;;  %v2937_v6 = vmul.f32 %v2785_v63, %v9324_v46  ;;  %v2938_v24 = vmul.f32 %v2785_v63, %v6473_v19  ;;  %v2939_v40 = vmul.f32 %v2785_v63, %v6478_v55  ;;  %v9326_v19 = vld [vmem:[#allocation39_spill] sm:$0xff]  ;;  %v9327_v63 = vld [vmem:[#allocation40_spill] sm:$0xff]  ;;  %v7586_v59 = vpop.permute.xlu0 %2799  ;;  %v7613_v39 = vpop.permute.xlu1 %3302 }
 0x359   :  { %3625 = vst [vmem:[%s8946_s6 + $0x170] sm:$0xff] %v3436_v25  ;;  %3626 = vst [vmem:[%s8946_s6 + $0x178] sm:$0xff] %v3437_v15  ;;  %v7543_v29 = vmul.f32 %v2790_v30, %v9325_v33  ;;  %v7561_v55 = vmul.f32 %v2790_v30, %v9326_v19  ;;  %v7564_v11 = vmul.f32 %v2790_v30, %v9327_v63  ;;  %v2609_v62 = vld [vmem:[%s8945_s1 + $0x1c0] sm:$0xff]  ;;  %v9330_v19 = vld [vmem:[#allocation41_spill] sm:$0xff] }
 0x35a   :  { %3627 = vst.msk [vmem:[%s8946_s6 + $0x180] sm:$0xff] %vm1585_vm1, %v3438_v48  ;;  %v7567_v57 = vmul.f32 %v2790_v30, %v9328_v31  ;;  %v7570_v36 = vmul.f32 %v2790_v30, %v9329_v18  ;;  %v7579_v52 = vmul.f32 %v2790_v30, %v6492_v27  ;;  %v7582_v22 = vmul.f32 %v2790_v30, %v6497_v12  ;;  %v2610_v27 = vld [vmem:[%s8945_s1 + $0x1c8] sm:$0xff]  ;;  %v2611_v12 = vld [vmem:[%s8945_s1 + $0x1d0] sm:$0xff] }
 0x35b   :  { %v3115_v35 = vadd.f32 %v7428_v60, %v2602_v32  ;;  %v3116_v9 = vadd.f32 %v7431_v5, %v2603_v23  ;;  %v3117_v34 = vadd.f32 %v7434_v0, %v2604_v16  ;;  %v3118_v50 = vadd.f32 %v7446_v21, %v2605_v54  ;;  %v2612_v60 = vld [vmem:[%s8945_s1 + $0x1d8] sm:$0xff]  ;;  %v2615_v30 = vld [vmem:[%s8945_s1 + $0x1f0] sm:$0xff]  ;;  %v9331_v18 = vld [vmem:[#allocation43_spill] sm:$0xff] }
 0x35c   :  { %v3119_v25 = vadd.f32 %v7449_v43, %v2606_v10  ;;  %v3120_v15 = vadd.f32 %v7452_v28, %v2607_v42  ;;  %v3121_v5 = vadd.f32 %v7455_v47, %v2608_v56  ;;  %v2613_v43 = vld [vmem:[%s8945_s1 + $0x1e0] sm:$0xff]  ;;  %v2614_v28 = vld [vmem:[%s8945_s1 + $0x1e8] sm:$0xff]  ;;  %v3122_v48 = vadd.f32 %v2933_v8, %v2609_v62  ;;  %v7626_v33 = vpop.permute.xlu0 %3307  ;;  %v7650_v31 = vpop.permute.xlu1 %2804  ;;  %v2616_v62 = vld [vmem:[%s8945_s1 + $0x1f8] sm:$0xff] }
 0x35d   :  { %v3439_v0 = vadd.f32 %v7494_v38, %v3115_v35  ;;  %v3440_v21 = vadd.f32 %v7494_v38, %v3116_v9  ;;  %v3441_v47 = vadd.f32 %v7494_v38, %v3117_v34  ;;  %v3442_v4 = vadd.f32 %v7494_v38, %v3118_v50  ;;  %v2617_v35 = vld [vmem:[%s8945_s1 + $0x200] sm:$0xff] }
 0x35e   :  { %v3443_v53 = vadd.f32 %v7494_v38, %v3119_v25  ;;  %v3444_v32 = vadd.f32 %v7494_v38, %v3120_v15  ;;  %v3445_v23 = vadd.f32 %v7494_v38, %v3121_v5  ;;  %v3123_v8 = vadd.f32 %v2934_v14, %v2610_v27  ;;  %v9333_v34 = vld [vmem:[#allocation46_spill] sm:$0xff]  ;;  %v9334_v25 = vld [vmem:[#allocation128_spill] sm:$0xff]  ;;  %v2620_v5 = vld [vmem:[%s8945_s1 + $0x218] sm:$0xff] }
 0x35f   :  { %3628 = vst [vmem:[%s8946_s6 + $0x188] sm:$0xff] %v3439_v0  ;;  %3629 = vst [vmem:[%s8946_s6 + $0x190] sm:$0xff] %v3440_v21  ;;  %v3124_v16 = vadd.f32 %v2935_v61, %v2611_v12  ;;  %v3125_v46 = vadd.f32 %v2936_v20, %v2612_v60  ;;  %v3126_v38 = vadd.f32 %v2937_v6, %v2613_v43  ;;  %v2618_v12 = vld [vmem:[%s8945_s1 + $0x208] sm:$0xff]  ;;  %v2619_v60 = vld [vmem:[%s8945_s1 + $0x210] sm:$0xff] }
 0x360   :  { %3630 = vst [vmem:[%s8946_s6 + $0x198] sm:$0xff] %v3441_v47  ;;  %3631 = vst [vmem:[%s8946_s6 + $0x1a0] sm:$0xff] %v3442_v4  ;;  %v3127_v14 = vadd.f32 %v2938_v24, %v2614_v28  ;;  %v3128_v61 = vadd.f32 %v2939_v40, %v2615_v30  ;;  %v3446_v20 = vadd.f32 %v7507_v13, %v3122_v48  ;;  %v7692_v0 = vpop.permute.xlu0 %2809  ;;  %v9335_v21 = vld [vmem:[#allocation45_spill] sm:$0xff]  ;;  %v9336_v28 = vld [vmem:[#allocation47_spill] sm:$0xff] }
 0x361   :  { %3632 = vst [vmem:[%s8946_s6 + $0x1a8] sm:$0xff] %v3443_v53  ;;  %3633 = vst [vmem:[%s8946_s6 + $0x1b0] sm:$0xff] %v3444_v32  ;;  %v3447_v54 = vadd.f32 %v7507_v13, %v3123_v8  ;;  %v3448_v10 = vadd.f32 %v7507_v13, %v3124_v16  ;;  %v3449_v42 = vadd.f32 %v7507_v13, %v3125_v46  ;;  %v9337_v48 = vld [vmem:[#allocation48_spill] sm:$0xff]  ;;  %v2621_v4 = vld [vmem:[%s8945_s1 + $0x220] sm:$0xff] }
 0x362   :  { %3634 = vst.msk [vmem:[%s8946_s6 + $0x1b8] sm:$0xff] %vm1585_vm1, %v3445_v23  ;;  %v2947_v63 = vmul.f32 %v7554_v58, %v9330_v19  ;;  %v3450_v6 = vadd.f32 %v7507_v13, %v3126_v38  ;;  %v3451_v24 = vadd.f32 %v7507_v13, %v3127_v14  ;;  %v3452_v40 = vadd.f32 %v7507_v13, %v3128_v61  ;;  %v9332_v13 = vld [vmem:[#allocation44_spill] sm:$0xff]  ;;  %v9338_v53 = vld [vmem:[#allocation50_spill] sm:$0xff]  ;;  %v9339_v23 = vld [vmem:[#allocation129_spill] sm:$0xff]  ;;  %v7743_v38 = vpop.permute.xlu1 %3312 }
 0x363   :  { %3635 = vst [vmem:[%s8946_s6 + $0x1c0] sm:$0xff] %v3446_v20  ;;  %v2948_v56 = vmul.f32 %v7554_v58, %v9331_v18  ;;  %3636 = vst [vmem:[%s8946_s6 + $0x1c8] sm:$0xff] %v3447_v54  ;;  %v2949_v9 = vmul.f32 %v7554_v58, %v9332_v13  ;;  %v2950_v50 = vmul.f32 %v7554_v58, %v9333_v34 }
 0x364   :  { %3637 = vst [vmem:[%s8946_s6 + $0x1d0] sm:$0xff] %v3448_v10  ;;  %3638 = vst [vmem:[%s8946_s6 + $0x1d8] sm:$0xff] %v3449_v42  ;;  %v2951_v15 = vmul.f32 %v7554_v58, %v9334_v25  ;;  %v2952_v27 = vmul.f32 %v7554_v58, %v6511_v26  ;;  %v2953_v26 = vmul.f32 %v7554_v58, %v6516_v51  ;;  %v2622_v51 = vld [vmem:[%s8945_s1 + $0x228] sm:$0xff]  ;;  %v2623_v58 = vld [vmem:[%s8945_s1 + $0x230] sm:$0xff] }
 0x365   :  { %3639 = vst [vmem:[%s8946_s6 + $0x1e0] sm:$0xff] %v3450_v6  ;;  %3640 = vst [vmem:[%s8946_s6 + $0x1e8] sm:$0xff] %v3451_v24  ;;  %v7708_v43 = vmul.f32 %v7586_v59, %v9335_v21  ;;  %v7712_v30 = vmul.f32 %v7586_v59, %v9336_v28  ;;  %v7716_v47 = vmul.f32 %v7586_v59, %v9337_v48  ;;  %v2624_v10 = vld [vmem:[%s8945_s1 + $0x238] sm:$0xff]  ;;  %v2629_v6 = vld [vmem:[%s8945_s1 + $0x260] sm:$0xff]  ;;  %v7774_v24 = vpop.permute.xlu0 %3317 }
 0x366   :  { %3641 = vst.msk [vmem:[%s8946_s6 + $0x1f0] sm:$0xff] %vm1585_vm1, %v3452_v40  ;;  %v7729_v32 = vmul.f32 %v7586_v59, %v9338_v53  ;;  %v7733_v8 = vmul.f32 %v7586_v59, %v9339_v23  ;;  %v7737_v16 = vmul.f32 %v7586_v59, %v6530_v17  ;;  %v7741_v46 = vmul.f32 %v7586_v59, %v6535_v2  ;;  %v2625_v17 = vld [vmem:[%s8945_s1 + $0x240] sm:$0xff]  ;;  %v2631_v23 = vld [vmem:[%s8945_s1 + $0x270] sm:$0xff] }
 0x367   :  { %v3129_v14 = vadd.f32 %v7543_v29, %v2616_v62  ;;  %v3130_v61 = vadd.f32 %v7561_v55, %v2617_v35  ;;  %v3131_v20 = vadd.f32 %v7564_v11, %v2618_v12  ;;  %v3132_v54 = vadd.f32 %v7567_v57, %v2619_v60  ;;  %v2626_v55 = vld [vmem:[%s8945_s1 + $0x248] sm:$0xff]  ;;  %v2627_v11 = vld [vmem:[%s8945_s1 + $0x250] sm:$0xff]  ;;  %v2628_v57 = vld [vmem:[%s8945_s1 + $0x258] sm:$0xff]  ;;  %v7779_v35 = vpop.permute.xlu1 %2814 }
 0x368   :  { %v3133_v2 = vadd.f32 %v7570_v36, %v2620_v5  ;;  %v3134_v59 = vadd.f32 %v7579_v52, %v2621_v4  ;;  %v3135_v29 = vadd.f32 %v7582_v22, %v2622_v51  ;;  %v3136_v42 = vadd.f32 %v2947_v63, %v2623_v58  ;;  %v9342_v4 = vld [vmem:[#allocation52_spill] sm:$0xff]  ;;  %v9343_v58 = vld [vmem:[#allocation54_spill] sm:$0xff] }
 0x369   :  { %v3453_v19 = vadd.f32 %v7613_v39, %v3129_v14  ;;  %v3454_v36 = vadd.f32 %v7613_v39, %v3130_v61  ;;  %v3455_v52 = vadd.f32 %v7613_v39, %v3131_v20  ;;  %v3456_v22 = vadd.f32 %v7613_v39, %v3132_v54  ;;  %v2632_v14 = vld [vmem:[%s8945_s1 + $0x278] sm:$0xff]  ;;  %v9344_v61 = vld [vmem:[#allocation130_spill] sm:$0xff] }
 0x36a   :  { %v3457_v40 = vadd.f32 %v7613_v39, %v3133_v2  ;;  %v3458_v18 = vadd.f32 %v7613_v39, %v3134_v59  ;;  %v3459_v63 = vadd.f32 %v7613_v39, %v3135_v29  ;;  %v3137_v62 = vadd.f32 %v2948_v56, %v2624_v10  ;;  %v2633_v59 = vld [vmem:[%s8945_s1 + $0x280] sm:$0xff]  ;;  %v2634_v29 = vld [vmem:[%s8945_s1 + $0x288] sm:$0xff] }
 0x36b   :  { %3642 = vst [vmem:[%s8946_s6 + $0x1f8] sm:$0xff] %v3453_v19  ;;  %3643 = vst [vmem:[%s8946_s6 + $0x200] sm:$0xff] %v3454_v36  ;;  %v3138_v39 = vadd.f32 %v2949_v9, %v2625_v17  ;;  %v3139_v56 = vadd.f32 %v2950_v50, %v2626_v55  ;;  %v3140_v13 = vadd.f32 %v2951_v15, %v2627_v11  ;;  %v9340_v50 = vld [vmem:[#allocation49_spill] sm:$0xff]  ;;  %v2635_v55 = vld [vmem:[%s8945_s1 + $0x290] sm:$0xff] }
 0x36c   :  { %3644 = vst [vmem:[%s8946_s6 + $0x208] sm:$0xff] %v3455_v52  ;;  %3645 = vst [vmem:[%s8946_s6 + $0x210] sm:$0xff] %v3456_v22  ;;  %v3141_v34 = vadd.f32 %v2952_v27, %v2628_v57  ;;  %v3142_v25 = vadd.f32 %v2953_v26, %v2629_v6  ;;  %v3460_v12 = vadd.f32 %v7626_v33, %v3136_v42  ;;  %v9341_v26 = vld [vmem:[#allocation51_spill] sm:$0xff]  ;;  %v9345_v17 = vld [vmem:[#allocation53_spill] sm:$0xff] }
 0x36d   :  { %3646 = vst [vmem:[%s8946_s6 + $0x218] sm:$0xff] %v3457_v40  ;;  %3647 = vst [vmem:[%s8946_s6 + $0x220] sm:$0xff] %v3458_v18  ;;  %v3461_v9 = vadd.f32 %v7626_v33, %v3137_v62  ;;  %v2961_v15 = vmul.f32 %v7650_v31, %v9340_v50  ;;  %v3462_v27 = vadd.f32 %v7626_v33, %v3138_v39  ;;  %v9347_v11 = vld [vmem:[#allocation56_spill] sm:$0xff]  ;;  %v9348_v42 = vld [vmem:[#allocation58_spill] sm:$0xff]  ;;  %v7892_v40 = vpop.permute.xlu1 %3322 }
 0x36e   :  { %3648 = vst.msk [vmem:[%s8946_s6 + $0x228] sm:$0xff] %vm1585_vm1, %v3459_v63  ;;  %v3463_v60 = vadd.f32 %v7626_v33, %v3139_v56  ;;  %v3464_v5 = vadd.f32 %v7626_v33, %v3140_v13  ;;  %v3465_v21 = vadd.f32 %v7626_v33, %v3141_v34  ;;  %v3466_v28 = vadd.f32 %v7626_v33, %v3142_v25  ;;  %v2630_v33 = vld [vmem:[%s8945_s1 + $0x268] sm:$0xff]  ;;  %v2636_v22 = vld [vmem:[%s8945_s1 + $0x298] sm:$0xff]  ;;  %v2637_v6 = vld [vmem:[%s8945_s1 + $0x2a0] sm:$0xff] }
 0x36f   :  { %3649 = vst [vmem:[%s8946_s6 + $0x230] sm:$0xff] %v3460_v12  ;;  %3650 = vst [vmem:[%s8946_s6 + $0x238] sm:$0xff] %v3461_v9  ;;  %v2962_v48 = vmul.f32 %v7650_v31, %v9341_v26  ;;  %v2963_v51 = vmul.f32 %v7650_v31, %v9342_v4  ;;  %v2964_v53 = vmul.f32 %v7650_v31, %v9343_v58  ;;  %v9349_v36 = vld [vmem:[#allocation131_spill] sm:$0xff] }
 0x370   :  { %3651 = vst [vmem:[%s8946_s6 + $0x240] sm:$0xff] %v3462_v27  ;;  %3652 = vst [vmem:[%s8946_s6 + $0x248] sm:$0xff] %v3463_v60  ;;  %v2965_v20 = vmul.f32 %v7650_v31, %v9344_v61  ;;  %v2966_v54 = vmul.f32 %v7650_v31, %v6549_v44  ;;  %v2967_v10 = vmul.f32 %v7650_v31, %v6554_v1  ;;  %v7864_v44 = vpop.permute.xlu0 %2819  ;;  %v9346_v1 = vld [vmem:[#allocation55_spill] sm:$0xff] }
 0x371   :  { %3653 = vst [vmem:[%s8946_s6 + $0x250] sm:$0xff] %v3464_v5  ;;  %3654 = vst [vmem:[%s8946_s6 + $0x258] sm:$0xff] %v3465_v21  ;;  %v7853_v2 = vmul.f32 %v7692_v0, %v9345_v17  ;;  %v7872_v31 = vmul.f32 %v7692_v0, %v9346_v1  ;;  %v7876_v57 = vmul.f32 %v7692_v0, %v9347_v11  ;;  %v9353_v1 = vld [vmem:[#allocation62_spill] sm:$0xff] }
 0x372   :  { %3655 = vst.msk [vmem:[%s8946_s6 + $0x260] sm:$0xff] %vm1585_vm1, %v3466_v28  ;;  %v7880_v19 = vmul.f32 %v7692_v0, %v9348_v42  ;;  %v7884_v52 = vmul.f32 %v7692_v0, %v9349_v36  ;;  %v7896_v18 = vmul.f32 %v7692_v0, %v6568_v41  ;;  %v7900_v63 = vmul.f32 %v7692_v0, %v6573_v49  ;;  %v2638_v41 = vld [vmem:[%s8945_s1 + $0x2a8] sm:$0xff]  ;;  %v2639_v49 = vld [vmem:[%s8945_s1 + $0x2b0] sm:$0xff]  ;;  %v2640_v0 = vld [vmem:[%s8945_s1 + $0x2b8] sm:$0xff] }
 0x373   :  { %v3143_v62 = vadd.f32 %v7708_v43, %v2630_v33  ;;  %v3144_v39 = vadd.f32 %v7712_v30, %v2631_v23  ;;  %v3145_v56 = vadd.f32 %v7716_v47, %v2632_v14  ;;  %v3146_v13 = vadd.f32 %v7729_v32, %v2633_v59  ;;  %v2641_v32 = vld [vmem:[%s8945_s1 + $0x2c0] sm:$0xff]  ;;  %v9350_v23 = vld [vmem:[#allocation57_spill] sm:$0xff]  ;;  %v9354_v42 = vld [vmem:[#allocation132_spill] sm:$0xff] }
 0x374   :  { %v3147_v34 = vadd.f32 %v7733_v8, %v2634_v29  ;;  %v3148_v25 = vadd.f32 %v7737_v16, %v2635_v55  ;;  %v3149_v43 = vadd.f32 %v7741_v46, %v2636_v22  ;;  %v2642_v8 = vld [vmem:[%s8945_s1 + $0x2c8] sm:$0xff]  ;;  %v2643_v16 = vld [vmem:[%s8945_s1 + $0x2d0] sm:$0xff]  ;;  %v3150_v12 = vadd.f32 %v2961_v15, %v2637_v6  ;;  %v7940_v28 = vpop.permute.xlu0 %3327  ;;  %v2644_v59 = vld [vmem:[%s8945_s1 + $0x2d8] sm:$0xff] }
 0x375   :  { %v3467_v30 = vadd.f32 %v7743_v38, %v3143_v62  ;;  %v3468_v47 = vadd.f32 %v7743_v38, %v3144_v39  ;;  %v3469_v9 = vadd.f32 %v7743_v38, %v3145_v56  ;;  %v3470_v46 = vadd.f32 %v7743_v38, %v3146_v13  ;;  %v2645_v29 = vld [vmem:[%s8945_s1 + $0x2e0] sm:$0xff]  ;;  %v2646_v6 = vld [vmem:[%s8945_s1 + $0x2e8] sm:$0xff]  ;;  %v2647_v62 = vld [vmem:[%s8945_s1 + $0x2f0] sm:$0xff] }
 0x376   :  { %v3471_v50 = vadd.f32 %v7743_v38, %v3147_v34  ;;  %v3472_v27 = vadd.f32 %v7743_v38, %v3148_v25  ;;  %v3473_v60 = vadd.f32 %v7743_v38, %v3149_v43  ;;  %v3151_v5 = vadd.f32 %v2962_v48, %v2638_v41  ;;  %v2648_v39 = vld [vmem:[%s8945_s1 + $0x2f8] sm:$0xff]  ;;  %v9356_v34 = vld [vmem:[#allocation63_spill] sm:$0xff]  ;;  %v9357_v41 = vld [vmem:[#allocation64_spill] sm:$0xff] }
 0x377   :  { %3656 = vst [vmem:[%s8946_s6 + $0x268] sm:$0xff] %v3467_v30  ;;  %3657 = vst [vmem:[%s8946_s6 + $0x270] sm:$0xff] %v3468_v47  ;;  %v3152_v15 = vadd.f32 %v2963_v51, %v2639_v49  ;;  %v3153_v21 = vadd.f32 %v2964_v53, %v2640_v0  ;;  %v3154_v38 = vadd.f32 %v2965_v20, %v2641_v32  ;;  %v7955_v51 = vpop.permute.xlu1 %2824  ;;  %v9355_v56 = vld [vmem:[#allocation61_spill] sm:$0xff]  ;;  %v2649_v0 = vld [vmem:[%s8945_s1 + $0x300] sm:$0xff] }
 0x378   :  { %3658 = vst [vmem:[%s8946_s6 + $0x278] sm:$0xff] %v3469_v9  ;;  %3659 = vst [vmem:[%s8946_s6 + $0x280] sm:$0xff] %v3470_v46  ;;  %v3155_v26 = vadd.f32 %v2966_v54, %v2642_v8  ;;  %v3156_v48 = vadd.f32 %v2967_v10, %v2643_v16  ;;  %v3474_v4 = vadd.f32 %v7774_v24, %v3150_v12  ;;  %v9351_v10 = vld [vmem:[#allocation59_spill] sm:$0xff]  ;;  %v9358_v43 = vld [vmem:[#allocation66_spill] sm:$0xff]  ;;  %v8055_v12 = vpop.permute.xlu0 %2829 }
 0x379   :  { %3660 = vst [vmem:[%s8946_s6 + $0x288] sm:$0xff] %v3471_v50  ;;  %3661 = vst [vmem:[%s8946_s6 + $0x290] sm:$0xff] %v3472_v27  ;;  %v3475_v58 = vadd.f32 %v7774_v24, %v3151_v5  ;;  %v3476_v53 = vadd.f32 %v7774_v24, %v3152_v15  ;;  %v3477_v33 = vadd.f32 %v7774_v24, %v3153_v21  ;;  %v9359_v47 = vld [vmem:[#allocation133_spill] sm:$0xff] }
 0x37a   :  { %3662 = vst.msk [vmem:[%s8946_s6 + $0x298] sm:$0xff] %vm1585_vm1, %v3473_v60  ;;  %v2975_v14 = vmul.f32 %v7779_v35, %v9350_v23  ;;  %v3478_v61 = vadd.f32 %v7774_v24, %v3154_v38  ;;  %v3479_v20 = vadd.f32 %v7774_v24, %v3155_v26  ;;  %v3480_v54 = vadd.f32 %v7774_v24, %v3156_v48  ;;  %v9352_v24 = vld [vmem:[#allocation60_spill] sm:$0xff]  ;;  %v2652_v60 = vld [vmem:[%s8945_s1 + $0x318] sm:$0xff]  ;;  %v2657_v38 = vld [vmem:[%s8945_s1 + $0x340] sm:$0xff] }
 0x37b   :  { %3663 = vst [vmem:[%s8946_s6 + $0x2a0] sm:$0xff] %v3474_v4  ;;  %v2976_v17 = vmul.f32 %v7779_v35, %v9351_v10  ;;  %3664 = vst [vmem:[%s8946_s6 + $0x2a8] sm:$0xff] %v3475_v58  ;;  %v2977_v55 = vmul.f32 %v7779_v35, %v9352_v24  ;;  %v2978_v11 = vmul.f32 %v7779_v35, %v9353_v1  ;;  %v2656_v5 = vld [vmem:[%s8945_s1 + $0x338] sm:$0xff] }
 0x37c   :  { %3665 = vst [vmem:[%s8946_s6 + $0x2b0] sm:$0xff] %v3476_v53  ;;  %3666 = vst [vmem:[%s8946_s6 + $0x2b8] sm:$0xff] %v3477_v33  ;;  %v2979_v36 = vmul.f32 %v7779_v35, %v9354_v42  ;;  %v2980_v22 = vmul.f32 %v7779_v35, %v6587_v7  ;;  %v2981_v7 = vmul.f32 %v7779_v35, %v6592_v45  ;;  %v2650_v45 = vld [vmem:[%s8945_s1 + $0x308] sm:$0xff]  ;;  %v2651_v35 = vld [vmem:[%s8945_s1 + $0x310] sm:$0xff] }
 0x37d   :  { %3667 = vst [vmem:[%s8946_s6 + $0x2c0] sm:$0xff] %v3478_v61  ;;  %3668 = vst [vmem:[%s8946_s6 + $0x2c8] sm:$0xff] %v3479_v20  ;;  %v8020_v13 = vmul.f32 %v7864_v44, %v9355_v56  ;;  %v8024_v25 = vmul.f32 %v7864_v44, %v9356_v34  ;;  %v8028_v49 = vmul.f32 %v7864_v44, %v9357_v41  ;;  %v9361_v42 = vld [vmem:[#allocation67_spill] sm:$0xff]  ;;  %v2660_v56 = vld [vmem:[%s8945_s1 + $0x358] sm:$0xff] }
 0x37e   :  { %3669 = vst.msk [vmem:[%s8946_s6 + $0x2d0] sm:$0xff] %vm1585_vm1, %v3480_v54  ;;  %v8041_v30 = vmul.f32 %v7864_v44, %v9358_v43  ;;  %v8045_v32 = vmul.f32 %v7864_v44, %v9359_v47  ;;  %v8049_v8 = vmul.f32 %v7864_v44, %v6606_v37  ;;  %v8053_v16 = vmul.f32 %v7864_v44, %v6611_v3  ;;  %v2653_v37 = vld [vmem:[%s8945_s1 + $0x320] sm:$0xff]  ;;  %v8067_v3 = vpop.permute.xlu1 %3332  ;;  %v9360_v54 = vld [vmem:[#allocation65_spill] sm:$0xff] }
 0x37f   :  { %v3157_v9 = vadd.f32 %v7853_v2, %v2644_v59  ;;  %v3158_v46 = vadd.f32 %v7872_v31, %v2645_v29  ;;  %v3159_v50 = vadd.f32 %v7876_v57, %v2646_v6  ;;  %v3160_v27 = vadd.f32 %v7880_v19, %v2647_v62  ;;  %v2654_v57 = vld [vmem:[%s8945_s1 + $0x328] sm:$0xff]  ;;  %v2655_v19 = vld [vmem:[%s8945_s1 + $0x330] sm:$0xff]  ;;  %v9363_v62 = vld [vmem:[#allocation70_spill] sm:$0xff] }
 0x380   :  { %v3161_v44 = vadd.f32 %v7884_v52, %v2648_v39  ;;  %v3162_v2 = vadd.f32 %v7896_v18, %v2649_v0  ;;  %v3163_v31 = vadd.f32 %v7900_v63, %v2650_v45  ;;  %v3164_v15 = vadd.f32 %v2975_v14, %v2651_v35  ;;  %v9364_v34 = vld [vmem:[#allocation134_spill] sm:$0xff]  ;;  %v9365_v0 = vld [vmem:[#allocation135_spill] sm:$0xff]  ;;  %v9366_v35 = vld [vmem:[#allocation136_spill] sm:$0xff] }
 0x381   :  { %v3481_v21 = vadd.f32 %v7892_v40, %v3157_v9  ;;  %v3482_v52 = vadd.f32 %v7892_v40, %v3158_v46  ;;  %v3483_v18 = vadd.f32 %v7892_v40, %v3159_v50  ;;  %v3484_v63 = vadd.f32 %v7892_v40, %v3160_v27  ;;  %v9367_v47 = vld [vmem:[#allocation69_spill] sm:$0xff]  ;;  %v2661_v46 = vld [vmem:[%s8945_s1 + $0x360] sm:$0xff]  ;;  %v2662_v50 = vld [vmem:[%s8945_s1 + $0x368] sm:$0xff] }
 0x382   :  { %v3485_v26 = vadd.f32 %v7892_v40, %v3161_v44  ;;  %v3486_v48 = vadd.f32 %v7892_v40, %v3162_v2  ;;  %v3487_v4 = vadd.f32 %v7892_v40, %v3163_v31  ;;  %v3165_v58 = vadd.f32 %v2976_v17, %v2652_v60  ;;  %v8117_v17 = vpop.permute.xlu0 %3337  ;;  %v8123_v1 = vpop.permute.xlu1 %2834  ;;  %v2663_v27 = vld [vmem:[%s8945_s1 + $0x370] sm:$0xff]  ;;  %v9370_v2 = vld [vmem:[#allocation74_spill] sm:$0xff] }
 0x383   :  { %3670 = vst [vmem:[%s8946_s6 + $0x2d8] sm:$0xff] %v3481_v21  ;;  %3671 = vst [vmem:[%s8946_s6 + $0x2e0] sm:$0xff] %v3482_v52  ;;  %v3166_v53 = vadd.f32 %v2977_v55, %v2653_v37  ;;  %v3167_v33 = vadd.f32 %v2978_v11, %v2654_v57  ;;  %v3168_v40 = vadd.f32 %v2979_v36, %v2655_v19  ;;  %v9369_v37 = vld [vmem:[#allocation72_spill] sm:$0xff]  ;;  %v9371_v57 = vld [vmem:[#allocation137_spill] sm:$0xff] }
 0x384   :  { %3672 = vst [vmem:[%s8946_s6 + $0x2e8] sm:$0xff] %v3483_v18  ;;  %3673 = vst [vmem:[%s8946_s6 + $0x2f0] sm:$0xff] %v3484_v63  ;;  %v3169_v23 = vadd.f32 %v2980_v22, %v2656_v5  ;;  %v3170_v14 = vadd.f32 %v2981_v7, %v2657_v38  ;;  %v3488_v61 = vadd.f32 %v7940_v28, %v3164_v15  ;;  %v9362_v22 = vld [vmem:[#allocation68_spill] sm:$0xff]  ;;  %v2664_v5 = vld [vmem:[%s8945_s1 + $0x378] sm:$0xff] }
 0x385   :  { %3674 = vst [vmem:[%s8946_s6 + $0x2f8] sm:$0xff] %v3485_v26  ;;  %3675 = vst [vmem:[%s8946_s6 + $0x300] sm:$0xff] %v3486_v48  ;;  %v3489_v20 = vadd.f32 %v7940_v28, %v3165_v58  ;;  %v2989_v10 = vmul.f32 %v7955_v51, %v9360_v54  ;;  %v3490_v59 = vadd.f32 %v7940_v28, %v3166_v53  ;;  %v2659_v7 = vld [vmem:[%s8945_s1 + $0x350] sm:$0xff]  ;;  %v2665_v15 = vld [vmem:[%s8945_s1 + $0x380] sm:$0xff] }
 0x386   :  { %3676 = vst.msk [vmem:[%s8946_s6 + $0x308] sm:$0xff] %vm1585_vm1, %v3487_v4  ;;  %v3491_v29 = vadd.f32 %v7940_v28, %v3167_v33  ;;  %v3492_v24 = vadd.f32 %v7940_v28, %v3168_v40  ;;  %v3493_v55 = vadd.f32 %v7940_v28, %v3169_v23  ;;  %v3494_v11 = vadd.f32 %v7940_v28, %v3170_v14  ;;  %v2658_v28 = vld [vmem:[%s8945_s1 + $0x348] sm:$0xff]  ;;  %v9372_v21 = vld [vmem:[#allocation138_spill] sm:$0xff]  ;;  %v2671_v23 = vld [vmem:[%s8945_s1 + $0x3b0] sm:$0xff] }
 0x387   :  { %3677 = vst [vmem:[%s8946_s6 + $0x310] sm:$0xff] %v3488_v61  ;;  %3678 = vst [vmem:[%s8946_s6 + $0x318] sm:$0xff] %v3489_v20  ;;  %v2990_v36 = vmul.f32 %v7955_v51, %v9361_v42  ;;  %v2991_v6 = vmul.f32 %v7955_v51, %v9362_v22  ;;  %v2992_v39 = vmul.f32 %v7955_v51, %v9363_v62  ;;  %v9373_v18 = vld [vmem:[#allocation139_spill] sm:$0xff]  ;;  %v8241_v61 = vpop.permute.xlu1 %3342 }
 0x388   :  { %3679 = vst [vmem:[%s8946_s6 + $0x320] sm:$0xff] %v3490_v59  ;;  %3680 = vst [vmem:[%s8946_s6 + $0x328] sm:$0xff] %v3491_v29  ;;  %v2993_v41 = vmul.f32 %v7955_v51, %v9364_v34  ;;  %v2994_v45 = vmul.f32 %v7955_v51, %v9365_v0  ;;  %v2995_v43 = vmul.f32 %v7955_v51, %v9366_v35  ;;  %v9368_v51 = vld [vmem:[#allocation71_spill] sm:$0xff]  ;;  %v2673_v35 = vld [vmem:[%s8945_s1 + $0x3c0] sm:$0xff] }
 0x389   :  { %3681 = vst [vmem:[%s8946_s6 + $0x330] sm:$0xff] %v3492_v24  ;;  %3682 = vst [vmem:[%s8946_s6 + $0x338] sm:$0xff] %v3493_v55  ;;  %v8167_v9 = vmul.f32 %v8055_v12, %v9367_v47  ;;  %v8184_v60 = vmul.f32 %v8055_v12, %v9368_v51  ;;  %v8188_v44 = vmul.f32 %v8055_v12, %v9369_v37  ;;  %v2666_v33 = vld [vmem:[%s8945_s1 + $0x388] sm:$0xff]  ;;  %v9379_v37 = vld [vmem:[#allocation141_spill] sm:$0xff] }
 0x38a   :  { %3683 = vst.msk [vmem:[%s8946_s6 + $0x340] sm:$0xff] %vm1585_vm1, %v3494_v11  ;;  %v8192_v31 = vmul.f32 %v8055_v12, %v9370_v2  ;;  %v8196_v19 = vmul.f32 %v8055_v12, %v9371_v57  ;;  %v8206_v52 = vmul.f32 %v8055_v12, %v9372_v21  ;;  %v8210_v63 = vmul.f32 %v8055_v12, %v9373_v18  ;;  %v2667_v12 = vld [vmem:[%s8945_s1 + $0x390] sm:$0xff]  ;;  %v2670_v40 = vld [vmem:[%s8945_s1 + $0x3a8] sm:$0xff]  ;;  %v9380_v18 = vld [vmem:[#allocation142_spill] sm:$0xff] }
 0x38b   :  { %v3171_v38 = vadd.f32 %v8020_v13, %v2658_v28  ;;  %v3172_v26 = vadd.f32 %v8024_v25, %v2659_v7  ;;  %v3173_v48 = vadd.f32 %v8028_v49, %v2660_v56  ;;  %v3174_v4 = vadd.f32 %v8041_v30, %v2661_v46  ;;  %v2668_v13 = vld [vmem:[%s8945_s1 + $0x398] sm:$0xff]  ;;  %v8227_v25 = vpop.permute.xlu0 %2839  ;;  %v9377_v46 = vld [vmem:[#allocation78_spill] sm:$0xff]  ;;  %v2674_v57 = vld [vmem:[%s8945_s1 + $0x3c8] sm:$0xff]  ;;  %v8318_v21 = vpop.permute.xlu1 %2844 }
 0x38c   :  { %v3175_v58 = vadd.f32 %v8045_v32, %v2662_v50  ;;  %v3176_v53 = vadd.f32 %v8049_v8, %v2663_v27  ;;  %v3177_v49 = vadd.f32 %v8053_v16, %v2664_v5  ;;  %v2669_v8 = vld [vmem:[%s8945_s1 + $0x3a0] sm:$0xff]  ;;  %v3178_v14 = vadd.f32 %v2989_v10, %v2665_v15  ;;  %v9378_v27 = vld [vmem:[#allocation140_spill] sm:$0xff]  ;;  %v2676_v15 = vld [vmem:[%s8945_s1 + $0x3d8] sm:$0xff] }
 0x38d   :  { %v3495_v30 = vadd.f32 %v8067_v3, %v3171_v38  ;;  %v3496_v32 = vadd.f32 %v8067_v3, %v3172_v26  ;;  %v3497_v16 = vadd.f32 %v8067_v3, %v3173_v48  ;;  %v3498_v20 = vadd.f32 %v8067_v3, %v3174_v4  ;;  %v2675_v5 = vld [vmem:[%s8945_s1 + $0x3d0] sm:$0xff]  ;;  %v9381_v26 = vld [vmem:[#allocation77_spill] sm:$0xff]  ;;  %v9382_v4 = vld [vmem:[#allocation79_spill] sm:$0xff] }
 0x38e   :  { %v3499_v54 = vadd.f32 %v8067_v3, %v3175_v58  ;;  %v3500_v59 = vadd.f32 %v8067_v3, %v3176_v53  ;;  %v3501_v29 = vadd.f32 %v8067_v3, %v3177_v49  ;;  %v3179_v10 = vadd.f32 %v2990_v36, %v2666_v33  ;;  %v9383_v53 = vld [vmem:[#allocation80_spill] sm:$0xff]  ;;  %v9384_v49 = vld [vmem:[#allocation82_spill] sm:$0xff] }
 0x38f   :  { %3684 = vst [vmem:[%s8946_s6 + $0x348] sm:$0xff] %v3495_v30  ;;  %3685 = vst [vmem:[%s8946_s6 + $0x350] sm:$0xff] %v3496_v32  ;;  %v3180_v24 = vadd.f32 %v2991_v6, %v2667_v12  ;;  %v3181_v55 = vadd.f32 %v2992_v39, %v2668_v13  ;;  %v3182_v3 = vadd.f32 %v2993_v41, %v2669_v8  ;;  %v9374_v39 = vld [vmem:[#allocation73_spill] sm:$0xff]  ;;  %v9375_v41 = vld [vmem:[#allocation75_spill] sm:$0xff] }
 0x390   :  { %3686 = vst [vmem:[%s8946_s6 + $0x358] sm:$0xff] %v3497_v16  ;;  %3687 = vst [vmem:[%s8946_s6 + $0x360] sm:$0xff] %v3498_v20  ;;  %v3183_v11 = vadd.f32 %v2994_v45, %v2670_v40  ;;  %v3184_v42 = vadd.f32 %v2995_v43, %v2671_v23  ;;  %v3502_v36 = vadd.f32 %v8117_v17, %v3178_v14  ;;  %v2672_v45 = vld [vmem:[%s8945_s1 + $0x3b8] sm:$0xff]  ;;  %v8290_v43 = vpop.permute.xlu0 %3347  ;;  %v2677_v12 = vld [vmem:[%s8945_s1 + $0x3e0] sm:$0xff] }
 0x391   :  { %3688 = vst [vmem:[%s8946_s6 + $0x368] sm:$0xff] %v3499_v54  ;;  %3689 = vst [vmem:[%s8946_s6 + $0x370] sm:$0xff] %v3500_v59  ;;  %v3503_v22 = vadd.f32 %v8117_v17, %v3179_v10  ;;  %v3504_v6 = vadd.f32 %v8117_v17, %v3180_v24  ;;  %v3505_v62 = vadd.f32 %v8117_v17, %v3181_v55  ;;  %v2679_v13 = vld [vmem:[%s8945_s1 + $0x3f0] sm:$0xff]  ;;  %v9385_v32 = vld [vmem:[#allocation143_spill] sm:$0xff] }
 0x392   :  { %3690 = vst.msk [vmem:[%s8946_s6 + $0x378] sm:$0xff] %vm1585_vm1, %v3501_v29  ;;  %v3003_v28 = vmul.f32 %v8123_v1, %v9374_v39  ;;  %v3506_v7 = vadd.f32 %v8117_v17, %v3182_v3  ;;  %v3507_v56 = vadd.f32 %v8117_v17, %v3183_v11  ;;  %v3508_v34 = vadd.f32 %v8117_v17, %v3184_v42  ;;  %v9376_v17 = vld [vmem:[#allocation76_spill] sm:$0xff]  ;;  %v9387_v14 = vld [vmem:[#allocation145_spill] sm:$0xff]  ;;  %v2681_v24 = vld [vmem:[%s8945_s1 + $0x400] sm:$0xff] }
 0x393   :  { %3691 = vst [vmem:[%s8946_s6 + $0x380] sm:$0xff] %v3502_v36  ;;  %v3004_v0 = vmul.f32 %v8123_v1, %v9375_v41  ;;  %3692 = vst [vmem:[%s8946_s6 + $0x388] sm:$0xff] %v3503_v22  ;;  %v3005_v47 = vmul.f32 %v8123_v1, %v9376_v17  ;;  %v3006_v50 = vmul.f32 %v8123_v1, %v9377_v46  ;;  %v9386_v40 = vld [vmem:[#allocation144_spill] sm:$0xff]  ;;  %v2680_v10 = vld [vmem:[%s8945_s1 + $0x3f8] sm:$0xff] }
 0x394   :  { %3693 = vst [vmem:[%s8946_s6 + $0x390] sm:$0xff] %v3504_v6  ;;  %3694 = vst [vmem:[%s8946_s6 + $0x398] sm:$0xff] %v3505_v62  ;;  %v3007_v51 = vmul.f32 %v8123_v1, %v9378_v27  ;;  %v3008_v2 = vmul.f32 %v8123_v1, %v9379_v37  ;;  %v3009_v38 = vmul.f32 %v8123_v1, %v9380_v18  ;;  %v2678_v1 = vld [vmem:[%s8945_s1 + $0x3e8] sm:$0xff]  ;;  %v2685_v42 = vld [vmem:[%s8945_s1 + $0x420] sm:$0xff]  ;;  %v2850_v36 = vpop.permute.xlu0 %2849 }
 0x395   :  { %3695 = vst [vmem:[%s8946_s6 + $0x3a0] sm:$0xff] %v3506_v7  ;;  %3696 = vst [vmem:[%s8946_s6 + $0x3a8] sm:$0xff] %v3507_v56  ;;  %v8334_v48 = vmul.f32 %v8227_v25, %v9381_v26  ;;  %v8338_v58 = vmul.f32 %v8227_v25, %v9382_v4  ;;  %v8342_v33 = vmul.f32 %v8227_v25, %v9383_v53  ;;  %v9389_v37 = vld [vmem:[#allocation83_spill] sm:$0xff]  ;;  %v2688_v26 = vld [vmem:[%s8945_s1 + $0x438] sm:$0xff] }
 0x396   :  { %3697 = vst.msk [vmem:[%s8946_s6 + $0x3b0] sm:$0xff] %vm1585_vm1, %v3508_v34  ;;  %v8355_v30 = vmul.f32 %v8227_v25, %v9384_v49  ;;  %v8359_v8 = vmul.f32 %v8227_v25, %v9385_v32  ;;  %v8363_v23 = vmul.f32 %v8227_v25, %v9386_v40  ;;  %v8367_v16 = vmul.f32 %v8227_v25, %v9387_v14  ;;  %v9392_v4 = vld [vmem:[#allocation146_spill] sm:$0xff]  ;;  %v9395_v32 = vld [vmem:[#allocation85_spill] sm:$0xff] }
 0x397   :  { %v3185_v20 = vadd.f32 %v8167_v9, %v2672_v45  ;;  %v3186_v54 = vadd.f32 %v8184_v60, %v2673_v35  ;;  %v3187_v59 = vadd.f32 %v8188_v44, %v2674_v57  ;;  %v3188_v29 = vadd.f32 %v8192_v31, %v2675_v5  ;;  %v2682_v60 = vld [vmem:[%s8945_s1 + $0x408] sm:$0xff]  ;;  %v2683_v44 = vld [vmem:[%s8945_s1 + $0x410] sm:$0xff]  ;;  %v2684_v31 = vld [vmem:[%s8945_s1 + $0x418] sm:$0xff] }
 0x398   :  { %v3189_v55 = vadd.f32 %v8196_v19, %v2676_v15  ;;  %v3190_v25 = vadd.f32 %v8206_v52, %v2677_v12  ;;  %v3191_v9 = vadd.f32 %v8210_v63, %v2678_v1  ;;  %v3192_v3 = vadd.f32 %v3003_v28, %v2679_v13  ;;  %v8401_v28 = vpop.permute.xlu1 %3352  ;;  %v9388_v35 = vld [vmem:[#allocation81_spill] sm:$0xff]  ;;  %v9390_v57 = vld [vmem:[#allocation84_spill] sm:$0xff]  ;;  %v9391_v15 = vld [vmem:[#allocation86_spill] sm:$0xff] }
 0x399   :  { %v3509_v11 = vadd.f32 %v8241_v61, %v3185_v20  ;;  %v3510_v19 = vadd.f32 %v8241_v61, %v3186_v54  ;;  %v3511_v52 = vadd.f32 %v8241_v61, %v3187_v59  ;;  %v3512_v63 = vadd.f32 %v8241_v61, %v3188_v29  ;;  %v9393_v12 = vld [vmem:[#allocation147_spill] sm:$0xff]  ;;  %v9394_v13 = vld [vmem:[#allocation148_spill] sm:$0xff]  ;;  %v2689_v14 = vld [vmem:[%s8945_s1 + $0x440] sm:$0xff]  ;;  %v3358_v59 = vpop.permute.xlu0 %3357 }
 0x39a   :  { %v3513_v22 = vadd.f32 %v8241_v61, %v3189_v55  ;;  %v3514_v6 = vadd.f32 %v8241_v61, %v3190_v25  ;;  %v3515_v62 = vadd.f32 %v8241_v61, %v3191_v9  ;;  %v3193_v39 = vadd.f32 %v3004_v0, %v2680_v10  ;;  %v2690_v20 = vld [vmem:[%s8945_s1 + $0x448] sm:$0xff]  ;;  %v2691_v54 = vld [vmem:[%s8945_s1 + $0x450] sm:$0xff]  ;;  %v9398_v55 = vld [vmem:[#allocation90_spill] sm:$0xff] }
 0x39b   :  { %3698 = vst [vmem:[%s8946_s6 + $0x3b8] sm:$0xff] %v3509_v11  ;;  %3699 = vst [vmem:[%s8946_s6 + $0x3c0] sm:$0xff] %v3510_v19  ;;  %v3194_v61 = vadd.f32 %v3005_v47, %v2681_v24  ;;  %v3195_v7 = vadd.f32 %v3006_v50, %v2682_v60  ;;  %v3196_v56 = vadd.f32 %v3007_v51, %v2683_v44  ;;  %v9397_v10 = vld [vmem:[#allocation88_spill] sm:$0xff]  ;;  %v9399_v9 = vld [vmem:[#allocation149_spill] sm:$0xff] }
 0x39c   :  { %3700 = vst [vmem:[%s8946_s6 + $0x3c8] sm:$0xff] %v3511_v52  ;;  %3701 = vst [vmem:[%s8946_s6 + $0x3d0] sm:$0xff] %v3512_v63  ;;  %v3197_v34 = vadd.f32 %v3008_v2, %v2684_v31  ;;  %v3198_v41 = vadd.f32 %v3009_v38, %v2685_v42  ;;  %v3516_v0 = vadd.f32 %v8290_v43, %v3192_v3  ;;  %v2687_v38 = vld [vmem:[%s8945_s1 + $0x430] sm:$0xff]  ;;  %v2692_v44 = vld [vmem:[%s8945_s1 + $0x458] sm:$0xff]  ;;  %v8507_v3 = vpop.permute.xlu1 %2854 }
 0x39d   :  { %3702 = vst [vmem:[%s8946_s6 + $0x3d8] sm:$0xff] %v3513_v22  ;;  %3703 = vst [vmem:[%s8946_s6 + $0x3e0] sm:$0xff] %v3514_v6  ;;  %v3517_v45 = vadd.f32 %v8290_v43, %v3193_v39  ;;  %v3017_v17 = vmul.f32 %v8318_v21, %v9388_v35  ;;  %v3518_v47 = vadd.f32 %v8290_v43, %v3194_v61  ;;  %v2693_v31 = vld [vmem:[%s8945_s1 + $0x460] sm:$0xff]  ;;  %v9401_v52 = vld [vmem:[#allocation151_spill] sm:$0xff] }
 0x39e   :  { %3704 = vst.msk [vmem:[%s8946_s6 + $0x3e8] sm:$0xff] %vm1585_vm1, %v3515_v62  ;;  %v3519_v46 = vadd.f32 %v8290_v43, %v3195_v7  ;;  %v3520_v50 = vadd.f32 %v8290_v43, %v3196_v56  ;;  %v3521_v27 = vadd.f32 %v8290_v43, %v3197_v34  ;;  %v3522_v51 = vadd.f32 %v8290_v43, %v3198_v41  ;;  %v2686_v43 = vld [vmem:[%s8945_s1 + $0x428] sm:$0xff]  ;;  %v9400_v11 = vld [vmem:[#allocation150_spill] sm:$0xff]  ;;  %v2699_v56 = vld [vmem:[%s8945_s1 + $0x490] sm:$0xff] }
 0x39f   :  { %3705 = vst [vmem:[%s8946_s6 + $0x3f0] sm:$0xff] %v3516_v0  ;;  %3706 = vst [vmem:[%s8946_s6 + $0x3f8] sm:$0xff] %v3517_v45  ;;  %v3018_v2 = vmul.f32 %v8318_v21, %v9389_v37  ;;  %v3019_v5 = vmul.f32 %v8318_v21, %v9390_v57  ;;  %v3020_v18 = vmul.f32 %v8318_v21, %v9391_v15  ;;  %v2694_v7 = vld [vmem:[%s8945_s1 + $0x468] sm:$0xff] }
 0x3a0   :  { %3707 = vst [vmem:[%s8946_s6 + $0x400] sm:$0xff] %v3518_v47  ;;  %3708 = vst [vmem:[%s8946_s6 + $0x408] sm:$0xff] %v3519_v46  ;;  %v3021_v53 = vmul.f32 %v8318_v21, %v9392_v4  ;;  %v3022_v1 = vmul.f32 %v8318_v21, %v9393_v12  ;;  %v3023_v49 = vmul.f32 %v8318_v21, %v9394_v13  ;;  %v9396_v21 = vld [vmem:[#allocation87_spill] sm:$0xff]  ;;  %v2701_v13 = vld [vmem:[%s8945_s1 + $0x4a0] sm:$0xff] }
 0x3a1   :  { %3709 = vst [vmem:[%s8946_s6 + $0x410] sm:$0xff] %v3520_v50  ;;  %3710 = vst [vmem:[%s8946_s6 + $0x418] sm:$0xff] %v3521_v27  ;;  %v8474_v40 = vmul.f32 %v2850_v36, %v9395_v32  ;;  %v8490_v29 = vmul.f32 %v2850_v36, %v9396_v21  ;;  %v8493_v24 = vmul.f32 %v2850_v36, %v9397_v10  ;;  %v2860_v50 = vpop.permute.xlu0 %2859  ;;  %v9407_v21 = vld [vmem:[#allocation153_spill] sm:$0xff] }
 0x3a2   :  { %3711 = vst.msk [vmem:[%s8946_s6 + $0x420] sm:$0xff] %vm1585_vm1, %v3522_v51  ;;  %v8496_v25 = vmul.f32 %v2850_v36, %v9398_v55  ;;  %v8499_v60 = vmul.f32 %v2850_v36, %v9399_v9  ;;  %v8510_v19 = vmul.f32 %v2850_v36, %v9400_v11  ;;  %v8513_v63 = vmul.f32 %v2850_v36, %v9401_v52  ;;  %v2695_v36 = vld [vmem:[%s8945_s1 + $0x470] sm:$0xff]  ;;  %v2702_v55 = vld [vmem:[%s8945_s1 + $0x4a8] sm:$0xff]  ;;  %v9409_v52 = vld [vmem:[#allocation93_spill] sm:$0xff] }
 0x3a3   :  { %v3199_v42 = vadd.f32 %v8334_v48, %v2686_v43  ;;  %v3200_v22 = vadd.f32 %v8338_v58, %v2687_v38  ;;  %v3201_v6 = vadd.f32 %v8342_v33, %v2688_v26  ;;  %v3202_v62 = vadd.f32 %v8355_v30, %v2689_v14  ;;  %v2696_v48 = vld [vmem:[%s8945_s1 + $0x478] sm:$0xff]  ;;  %v9405_v14 = vld [vmem:[#allocation94_spill] sm:$0xff]  ;;  %v2703_v9 = vld [vmem:[%s8945_s1 + $0x4b0] sm:$0xff] }
 0x3a4   :  { %v3203_v39 = vadd.f32 %v8359_v8, %v2690_v20  ;;  %v3204_v61 = vadd.f32 %v8363_v23, %v2691_v54  ;;  %v3205_v58 = vadd.f32 %v8367_v16, %v2692_v44  ;;  %v2697_v8 = vld [vmem:[%s8945_s1 + $0x480] sm:$0xff]  ;;  %v2698_v23 = vld [vmem:[%s8945_s1 + $0x488] sm:$0xff]  ;;  %v3206_v34 = vadd.f32 %v3017_v17, %v2693_v31  ;;  %v9406_v54 = vld [vmem:[#allocation152_spill] sm:$0xff] }
 0x3a5   :  { %v3523_v33 = vadd.f32 %v8401_v28, %v3199_v42  ;;  %v3524_v30 = vadd.f32 %v8401_v28, %v3200_v22  ;;  %v3525_v41 = vadd.f32 %v8401_v28, %v3201_v6  ;;  %v3526_v16 = vadd.f32 %v8401_v28, %v3202_v62  ;;  %v2704_v44 = vld [vmem:[%s8945_s1 + $0x4b8] sm:$0xff]  ;;  %v9408_v31 = vld [vmem:[#allocation154_spill] sm:$0xff]  ;;  %v9410_v22 = vld [vmem:[#allocation95_spill] sm:$0xff] }
 0x3a6   :  { %v3527_v0 = vadd.f32 %v8401_v28, %v3203_v39  ;;  %v3528_v45 = vadd.f32 %v8401_v28, %v3204_v61  ;;  %v3529_v35 = vadd.f32 %v8401_v28, %v3205_v58  ;;  %v3207_v47 = vadd.f32 %v3018_v2, %v2694_v7  ;;  %v3363_v2 = vpop.permute.xlu1 %3362  ;;  %v9411_v62 = vld [vmem:[#allocation96_spill] sm:$0xff]  ;;  %v2705_v61 = vld [vmem:[%s8945_s1 + $0x4c0] sm:$0xff]  ;;  %v2706_v7 = vld [vmem:[%s8945_s1 + $0x4c8] sm:$0xff] }
 0x3a7   :  { %3712 = vst [vmem:[%s8946_s6 + $0x428] sm:$0xff] %v3523_v33  ;;  %3713 = vst [vmem:[%s8946_s6 + $0x430] sm:$0xff] %v3524_v30  ;;  %v3208_v17 = vadd.f32 %v3019_v5, %v2695_v36  ;;  %v3209_v46 = vadd.f32 %v3020_v18, %v2696_v48  ;;  %v3210_v28 = vadd.f32 %v3021_v53, %v2697_v8  ;;  %v9402_v18 = vld [vmem:[#allocation89_spill] sm:$0xff]  ;;  %v9403_v53 = vld [vmem:[#allocation91_spill] sm:$0xff] }
 0x3a8   :  { %3714 = vst [vmem:[%s8946_s6 + $0x438] sm:$0xff] %v3525_v41  ;;  %3715 = vst [vmem:[%s8946_s6 + $0x440] sm:$0xff] %v3526_v16  ;;  %v3211_v27 = vadd.f32 %v3022_v1, %v2698_v23  ;;  %v3212_v51 = vadd.f32 %v3023_v49, %v2699_v56  ;;  %v3530_v37 = vadd.f32 %v3358_v59, %v3206_v34  ;;  %v2700_v1 = vld [vmem:[%s8945_s1 + $0x498] sm:$0xff]  ;;  %v9404_v49 = vld [vmem:[#allocation92_spill] sm:$0xff]  ;;  %v3368_v34 = vpop.permute.xlu0 %3367 }
 0x3a9   :  { %3716 = vst [vmem:[%s8946_s6 + $0x448] sm:$0xff] %v3527_v0  ;;  %3717 = vst [vmem:[%s8946_s6 + $0x450] sm:$0xff] %v3528_v45  ;;  %v3531_v57 = vadd.f32 %v3358_v59, %v3207_v47  ;;  %v3532_v5 = vadd.f32 %v3358_v59, %v3208_v17  ;;  %v3533_v15 = vadd.f32 %v3358_v59, %v3209_v46  ;;  %v9412_v36 = vld [vmem:[#allocation98_spill] sm:$0xff]  ;;  %v9413_v58 = vld [vmem:[#allocation155_spill] sm:$0xff] }
 0x3aa   :  { %3718 = vst.msk [vmem:[%s8946_s6 + $0x458] sm:$0xff] %vm1585_vm1, %v3529_v35  ;;  %v3031_v43 = vmul.f32 %v8507_v3, %v9402_v18  ;;  %v3534_v38 = vadd.f32 %v3358_v59, %v3210_v28  ;;  %v3535_v26 = vadd.f32 %v3358_v59, %v3211_v27  ;;  %v3536_v4 = vadd.f32 %v3358_v59, %v3212_v51  ;;  %v9414_v30 = vld [vmem:[#allocation156_spill] sm:$0xff]  ;;  %v9415_v23 = vld [vmem:[#allocation157_spill] sm:$0xff]  ;;  %v2709_v47 = vld [vmem:[%s8945_s1 + $0x4e0] sm:$0xff]  ;;  %v2865_v17 = vpop.permute.xlu1 %2864 }
 0x3ab   :  { %3719 = vst [vmem:[%s8946_s6 + $0x460] sm:$0xff] %v3530_v37  ;;  %v3032_v12 = vmul.f32 %v8507_v3, %v9403_v53  ;;  %3720 = vst [vmem:[%s8946_s6 + $0x468] sm:$0xff] %v3531_v57  ;;  %v3033_v32 = vmul.f32 %v8507_v3, %v9404_v49  ;;  %v3034_v20 = vmul.f32 %v8507_v3, %v9405_v14  ;;  %v2708_v35 = vld [vmem:[%s8945_s1 + $0x4d8] sm:$0xff] }
 0x3ac   :  { %3721 = vst [vmem:[%s8946_s6 + $0x470] sm:$0xff] %v3532_v5  ;;  %3722 = vst [vmem:[%s8946_s6 + $0x478] sm:$0xff] %v3533_v15  ;;  %v3035_v59 = vmul.f32 %v8507_v3, %v9406_v54  ;;  %v3036_v10 = vmul.f32 %v8507_v3, %v9407_v21  ;;  %v3037_v11 = vmul.f32 %v8507_v3, %v9408_v31  ;;  %v2707_v3 = vld [vmem:[%s8945_s1 + $0x4d0] sm:$0xff]  ;;  %v9417_v21 = vld [vmem:[#allocation99_spill] sm:$0xff] }
 0x3ad   :  { %3723 = vst [vmem:[%s8946_s6 + $0x480] sm:$0xff] %v3534_v38  ;;  %3724 = vst [vmem:[%s8946_s6 + $0x488] sm:$0xff] %v3535_v26  ;;  %v8621_v42 = vmul.f32 %v2860_v50, %v9409_v52  ;;  %v8624_v6 = vmul.f32 %v2860_v50, %v9410_v22  ;;  %v8627_v39 = vmul.f32 %v2860_v50, %v9411_v62  ;;  %v2715_v52 = vld [vmem:[%s8945_s1 + $0x510] sm:$0xff]  ;;  %v2716_v22 = vld [vmem:[%s8945_s1 + $0x518] sm:$0xff] }
 0x3ae   :  { %3725 = vst.msk [vmem:[%s8946_s6 + $0x490] sm:$0xff] %vm1585_vm1, %v3536_v4  ;;  %v8639_v48 = vmul.f32 %v2860_v50, %v9412_v36  ;;  %v8642_v33 = vmul.f32 %v2860_v50, %v9413_v58  ;;  %v8645_v8 = vmul.f32 %v2860_v50, %v9414_v30  ;;  %v8648_v56 = vmul.f32 %v2860_v50, %v9415_v23  ;;  %v3373_v54 = vpop.permute.xlu1 %3372  ;;  %v9420_v62 = vld [vmem:[#allocation101_spill] sm:$0xff]  ;;  %v9422_v36 = vld [vmem:[#allocation158_spill] sm:$0xff] }
 0x3af   :  { %v3213_v41 = vadd.f32 %v8474_v40, %v2700_v1  ;;  %v3214_v16 = vadd.f32 %v8490_v29, %v2701_v13  ;;  %v3215_v0 = vadd.f32 %v8493_v24, %v2702_v55  ;;  %v3216_v45 = vadd.f32 %v8496_v25, %v2703_v9  ;;  %v2710_v29 = vld [vmem:[%s8945_s1 + $0x4e8] sm:$0xff]  ;;  %v2711_v24 = vld [vmem:[%s8945_s1 + $0x4f0] sm:$0xff]  ;;  %v2712_v25 = vld [vmem:[%s8945_s1 + $0x4f8] sm:$0xff]  ;;  %v2870_v13 = vpop.permute.xlu0 %2869 }
 0x3b0   :  { %v3217_v46 = vadd.f32 %v8499_v60, %v2704_v44  ;;  %v3218_v50 = vadd.f32 %v8510_v19, %v2705_v61  ;;  %v3219_v40 = vadd.f32 %v8513_v63, %v2706_v7  ;;  %v3220_v28 = vadd.f32 %v3031_v43, %v2707_v3  ;;  %v2713_v19 = vld [vmem:[%s8945_s1 + $0x500] sm:$0xff]  ;;  %v9418_v55 = vld [vmem:[#allocation100_spill] sm:$0xff]  ;;  %v9419_v44 = vld [vmem:[#allocation103_spill] sm:$0xff] }
 0x3b1   :  { %v3537_v27 = vadd.f32 %v3363_v2, %v3213_v41  ;;  %v3538_v51 = vadd.f32 %v3363_v2, %v3214_v16  ;;  %v3539_v60 = vadd.f32 %v3363_v2, %v3215_v0  ;;  %v3540_v37 = vadd.f32 %v3363_v2, %v3216_v45  ;;  %v9421_v7 = vld [vmem:[#allocation105_spill] sm:$0xff]  ;;  %v9423_v30 = vld [vmem:[#allocation102_spill] sm:$0xff]  ;;  %v2718_v41 = vld [vmem:[%s8945_s1 + $0x528] sm:$0xff] }
 0x3b2   :  { %v3541_v63 = vadd.f32 %v3363_v2, %v3217_v46  ;;  %v3542_v57 = vadd.f32 %v3363_v2, %v3218_v50  ;;  %v3543_v5 = vadd.f32 %v3363_v2, %v3219_v40  ;;  %v3221_v15 = vadd.f32 %v3032_v12, %v2708_v35  ;;  %v9416_v12 = vld [vmem:[#allocation97_spill] sm:$0xff]  ;;  %v2719_v16 = vld [vmem:[%s8945_s1 + $0x530] sm:$0xff]  ;;  %v9425_v35 = vld [vmem:[#allocation106_spill] sm:$0xff] }
 0x3b3   :  { %3726 = vst [vmem:[%s8946_s6 + $0x498] sm:$0xff] %v3537_v27  ;;  %3727 = vst [vmem:[%s8946_s6 + $0x4a0] sm:$0xff] %v3538_v51  ;;  %v3222_v18 = vadd.f32 %v3033_v32, %v2709_v47  ;;  %v3223_v43 = vadd.f32 %v3034_v20, %v2710_v29  ;;  %v3224_v2 = vadd.f32 %v3035_v59, %v2711_v24  ;;  %v9424_v0 = vld [vmem:[#allocation104_spill] sm:$0xff]  ;;  %v9427_v50 = vld [vmem:[#allocation107_spill] sm:$0xff] }
 0x3b4   :  { %3728 = vst [vmem:[%s8946_s6 + $0x4a8] sm:$0xff] %v3539_v60  ;;  %3729 = vst [vmem:[%s8946_s6 + $0x4b0] sm:$0xff] %v3540_v37  ;;  %v3225_v38 = vadd.f32 %v3036_v10, %v2712_v25  ;;  %v3226_v26 = vadd.f32 %v3037_v11, %v2713_v19  ;;  %v3544_v4 = vadd.f32 %v3368_v34, %v3220_v28  ;;  %v2714_v11 = vld [vmem:[%s8945_s1 + $0x508] sm:$0xff]  ;;  %v2720_v29 = vld [vmem:[%s8945_s1 + $0x538] sm:$0xff] }
 0x3b5   :  { %3730 = vst [vmem:[%s8946_s6 + $0x4b8] sm:$0xff] %v3541_v63  ;;  %3731 = vst [vmem:[%s8946_s6 + $0x4c0] sm:$0xff] %v3542_v57  ;;  %v3545_v53 = vadd.f32 %v3368_v34, %v3221_v15  ;;  %v3045_v1 = vmul.f32 %v2865_v17, %v9416_v12  ;;  %v3546_v49 = vadd.f32 %v3368_v34, %v3222_v18  ;;  %v2721_v24 = vld [vmem:[%s8945_s1 + $0x540] sm:$0xff]  ;;  %v9428_v25 = vld [vmem:[#allocation159_spill] sm:$0xff] }
 0x3b6   :  { %3732 = vst.msk [vmem:[%s8946_s6 + $0x4c8] sm:$0xff] %vm1585_vm1, %v3543_v5  ;;  %v3547_v32 = vadd.f32 %v3368_v34, %v3223_v43  ;;  %v3548_v14 = vadd.f32 %v3368_v34, %v3224_v2  ;;  %v3549_v20 = vadd.f32 %v3368_v34, %v3225_v38  ;;  %v3550_v59 = vadd.f32 %v3368_v34, %v3226_v26  ;;  %v2717_v34 = vld [vmem:[%s8945_s1 + $0x520] sm:$0xff]  ;;  %v9429_v27 = vld [vmem:[#allocation160_spill] sm:$0xff]  ;;  %v2722_v15 = vld [vmem:[%s8945_s1 + $0x548] sm:$0xff]  ;;  %v3378_v38 = vpop.permute.xlu0 %3377  ;;  %v2875_v26 = vpop.permute.xlu1 %2874 }
 0x3b7   :  { %3733 = vst [vmem:[%s8946_s6 + $0x4d0] sm:$0xff] %v3544_v4  ;;  %3734 = vst [vmem:[%s8946_s6 + $0x4d8] sm:$0xff] %v3545_v53  ;;  %v3046_v10 = vmul.f32 %v2865_v17, %v9417_v21  ;;  %v3047_v9 = vmul.f32 %v2865_v17, %v9418_v55  ;;  %v3048_v31 = vmul.f32 %v2865_v17, %v9419_v44  ;;  %v2723_v18 = vld [vmem:[%s8945_s1 + $0x550] sm:$0xff]  ;;  %v2728_v21 = vld [vmem:[%s8945_s1 + $0x578] sm:$0xff] }
 0x3b8   :  { %3735 = vst [vmem:[%s8946_s6 + $0x4e0] sm:$0xff] %v3546_v49  ;;  %3736 = vst [vmem:[%s8946_s6 + $0x4e8] sm:$0xff] %v3547_v32  ;;  %v3049_v61 = vmul.f32 %v2865_v17, %v9420_v62  ;;  %v3050_v3 = vmul.f32 %v2865_v17, %v9421_v7  ;;  %v3051_v58 = vmul.f32 %v2865_v17, %v9422_v36  ;;  %v9426_v17 = vld [vmem:[#allocation109_spill] sm:$0xff]  ;;  %v2727_v43 = vld [vmem:[%s8945_s1 + $0x570] sm:$0xff] }
 0x3b9   :  { %3737 = vst [vmem:[%s8946_s6 + $0x4f0] sm:$0xff] %v3548_v14  ;;  %3738 = vst [vmem:[%s8946_s6 + $0x4f8] sm:$0xff] %v3549_v20  ;;  %v8732_v23 = vmul.f32 %v2870_v13, %v9423_v30  ;;  %v8748_v45 = vmul.f32 %v2870_v13, %v9424_v0  ;;  %v8751_v47 = vmul.f32 %v2870_v13, %v9425_v35  ;;  %v9430_v44 = vld [vmem:[#allocation108_spill] sm:$0xff]  ;;  %v2733_v30 = vld [vmem:[%s8945_s1 + $0x5a0] sm:$0xff] }
 0x3ba   :  { %3739 = vst.msk [vmem:[%s8946_s6 + $0x500] sm:$0xff] %vm1585_vm1, %v3550_v59  ;;  %v8754_v46 = vmul.f32 %v2870_v13, %v9426_v17  ;;  %v8757_v40 = vmul.f32 %v2870_v13, %v9427_v50  ;;  %v8766_v28 = vmul.f32 %v2870_v13, %v9428_v25  ;;  %v8769_v51 = vmul.f32 %v2870_v13, %v9429_v27  ;;  %v9433_v0 = vld [vmem:[#allocation112_spill] sm:$0xff]  ;;  %v9434_v17 = vld [vmem:[#allocation161_spill] sm:$0xff]  ;;  %v3383_v25 = vpop.permute.xlu1 %3382 }
 0x3bb   :  { %v3227_v60 = vadd.f32 %v8621_v42, %v2714_v11  ;;  %v3228_v37 = vadd.f32 %v8624_v6, %v2715_v52  ;;  %v3229_v19 = vadd.f32 %v8627_v39, %v2716_v22  ;;  %v3230_v63 = vadd.f32 %v8639_v48, %v2717_v34  ;;  %v2724_v42 = vld [vmem:[%s8945_s1 + $0x558] sm:$0xff]  ;;  %v2729_v11 = vld [vmem:[%s8945_s1 + $0x580] sm:$0xff]  ;;  %v2730_v52 = vld [vmem:[%s8945_s1 + $0x588] sm:$0xff] }
 0x3bc   :  { %v3231_v57 = vadd.f32 %v8642_v33, %v2718_v41  ;;  %v3232_v5 = vadd.f32 %v8645_v8, %v2719_v16  ;;  %v3233_v6 = vadd.f32 %v8648_v56, %v2720_v29  ;;  %v2725_v33 = vld [vmem:[%s8945_s1 + $0x560] sm:$0xff]  ;;  %v2726_v8 = vld [vmem:[%s8945_s1 + $0x568] sm:$0xff]  ;;  %v3234_v2 = vadd.f32 %v3045_v1, %v2721_v24  ;;  %v2731_v22 = vld [vmem:[%s8945_s1 + $0x590] sm:$0xff] }
 0x3bd   :  { %v3551_v39 = vadd.f32 %v3373_v54, %v3227_v60  ;;  %v3552_v48 = vadd.f32 %v3373_v54, %v3228_v37  ;;  %v3553_v4 = vadd.f32 %v3373_v54, %v3229_v19  ;;  %v3554_v53 = vadd.f32 %v3373_v54, %v3230_v63  ;;  %v2734_v34 = vld [vmem:[%s8945_s1 + $0x5a8] sm:$0xff]  ;;  %v2735_v27 = vld [vmem:[%s8945_s1 + $0x5b0] sm:$0xff]  ;;  %v9436_v60 = vld [vmem:[#allocation162_spill] sm:$0xff] }
 0x3be   :  { %v3555_v56 = vadd.f32 %v3373_v54, %v3231_v57  ;;  %v3556_v12 = vadd.f32 %v3373_v54, %v3232_v5  ;;  %v3557_v13 = vadd.f32 %v3373_v54, %v3233_v6  ;;  %v3235_v49 = vadd.f32 %v3046_v10, %v2722_v15  ;;  %v9432_v41 = vld [vmem:[#allocation111_spill] sm:$0xff]  ;;  %v2736_v5 = vld [vmem:[%s8945_s1 + $0x5b8] sm:$0xff] }
 0x3bf   :  { %3740 = vst [vmem:[%s8946_s6 + $0x508] sm:$0xff] %v3551_v39  ;;  %3741 = vst [vmem:[%s8946_s6 + $0x510] sm:$0xff] %v3552_v48  ;;  %v3236_v32 = vadd.f32 %v3047_v9, %v2723_v18  ;;  %v3237_v14 = vadd.f32 %v3048_v31, %v2724_v42  ;;  %v3238_v1 = vadd.f32 %v3049_v61, %v2725_v33  ;;  %v9435_v29 = vld [vmem:[#allocation115_spill] sm:$0xff]  ;;  %v3388_v33 = vpop.permute.xlu0 %3387 }
 0x3c0   :  { %3742 = vst [vmem:[%s8946_s6 + $0x518] sm:$0xff] %v3553_v4  ;;  %3743 = vst [vmem:[%s8946_s6 + $0x520] sm:$0xff] %v3554_v53  ;;  %v3239_v20 = vadd.f32 %v3050_v3, %v2726_v8  ;;  %v3240_v54 = vadd.f32 %v3051_v58, %v2727_v43  ;;  %v3558_v59 = vadd.f32 %v3378_v38, %v3234_v2  ;;  %v9431_v3 = vld [vmem:[#allocation110_spill] sm:$0xff]  ;;  %v2732_v58 = vld [vmem:[%s8945_s1 + $0x598] sm:$0xff] }
 0x3c1   :  { %3744 = vst [vmem:[%s8946_s6 + $0x528] sm:$0xff] %v3555_v56  ;;  %3745 = vst [vmem:[%s8946_s6 + $0x530] sm:$0xff] %v3556_v12  ;;  %v3559_v10 = vadd.f32 %v3378_v38, %v3235_v49  ;;  %v3560_v55 = vadd.f32 %v3378_v38, %v3236_v32  ;;  %v3561_v9 = vadd.f32 %v3378_v38, %v3237_v14 }
 0x3c2   :  { %3746 = vst.msk [vmem:[%s8946_s6 + $0x538] sm:$0xff] %vm1585_vm1, %v3557_v13  ;;  %v3059_v31 = vmul.f32 %v2875_v26, %v9430_v44  ;;  %v3562_v62 = vadd.f32 %v3378_v38, %v3238_v1  ;;  %v3563_v61 = vadd.f32 %v3378_v38, %v3239_v20  ;;  %v3564_v7 = vadd.f32 %v3378_v38, %v3240_v54 }
 0x3c3   :  { %3747 = vst [vmem:[%s8946_s6 + $0x540] sm:$0xff] %v3558_v59  ;;  %v3060_v36 = vmul.f32 %v2875_v26, %v9431_v3  ;;  %3748 = vst [vmem:[%s8946_s6 + $0x548] sm:$0xff] %v3559_v10  ;;  %v3061_v16 = vmul.f32 %v2875_v26, %v9432_v41  ;;  %v3062_v35 = vmul.f32 %v2875_v26, %v9433_v0 }
 0x3c4   :  { %3749 = vst [vmem:[%s8946_s6 + $0x550] sm:$0xff] %v3560_v55  ;;  %3750 = vst [vmem:[%s8946_s6 + $0x558] sm:$0xff] %v3561_v9  ;;  %v3063_v50 = vmul.f32 %v2875_v26, %v9434_v17  ;;  %v3064_v24 = vmul.f32 %v2875_v26, %v9435_v29  ;;  %v3065_v37 = vmul.f32 %v2875_v26, %v9436_v60 }
 0x3c5   :  { %3751 = vst [vmem:[%s8946_s6 + $0x560] sm:$0xff] %v3562_v62  ;;  %3752 = vst [vmem:[%s8946_s6 + $0x568] sm:$0xff] %v3563_v61  ;;  %v3241_v19 = vadd.f32 %v8732_v23, %v2728_v21  ;;  %v3242_v63 = vadd.f32 %v8748_v45, %v2729_v11  ;;  %v3243_v57 = vadd.f32 %v8751_v47, %v2730_v52  ;;  %v2737_v23 = vld [vmem:[%s8945_s1 + $0x5c0] sm:$0xff]  ;;  %v2738_v45 = vld [vmem:[%s8945_s1 + $0x5c8] sm:$0xff] }
 0x3c6   :  { %3753 = vst.msk [vmem:[%s8946_s6 + $0x570] sm:$0xff] %vm1585_vm1, %v3564_v7  ;;  %v3244_v15 = vadd.f32 %v8754_v46, %v2731_v22  ;;  %v3245_v18 = vadd.f32 %v8757_v40, %v2732_v58  ;;  %v3246_v42 = vadd.f32 %v8766_v28, %v2733_v30  ;;  %v3247_v6 = vadd.f32 %v8769_v51, %v2734_v34  ;;  %v2739_v47 = vld [vmem:[%s8945_s1 + $0x5d0] sm:$0xff]  ;;  %v2740_v40 = vld [vmem:[%s8945_s1 + $0x5d8] sm:$0xff]  ;;  %v2741_v28 = vld [vmem:[%s8945_s1 + $0x5e0] sm:$0xff] }
 0x3c7   :  { %v3565_v39 = vadd.f32 %v3383_v25, %v3241_v19  ;;  %v3566_v46 = vadd.f32 %v3383_v25, %v3242_v63  ;;  %v3567_v48 = vadd.f32 %v3383_v25, %v3243_v57  ;;  %v3248_v51 = vadd.f32 %v3059_v31, %v2735_v27 }
 0x3c8   :  { %v3568_v8 = vadd.f32 %v3383_v25, %v3244_v15  ;;  %v3569_v43 = vadd.f32 %v3383_v25, %v3245_v18  ;;  %v3570_v2 = vadd.f32 %v3383_v25, %v3246_v42  ;;  %v3571_v38 = vadd.f32 %v3383_v25, %v3247_v6 }
 0x3c9   :  { %3754 = vst [vmem:[%s8946_s6 + $0x578] sm:$0xff] %v3565_v39  ;;  %3755 = vst [vmem:[%s8946_s6 + $0x580] sm:$0xff] %v3566_v46  ;;  %v3249_v26 = vadd.f32 %v3060_v36, %v2736_v5  ;;  %v3250_v4 = vadd.f32 %v3061_v16, %v2737_v23  ;;  %v3251_v53 = vadd.f32 %v3062_v35, %v2738_v45 }
 0x3ca   :  { %3756 = vst [vmem:[%s8946_s6 + $0x588] sm:$0xff] %v3567_v48  ;;  %v3252_v56 = vadd.f32 %v3063_v50, %v2739_v47  ;;  %3757 = vst [vmem:[%s8946_s6 + $0x590] sm:$0xff] %v3568_v8  ;;  %v3253_v12 = vadd.f32 %v3064_v24, %v2740_v40  ;;  %v3254_v13 = vadd.f32 %v3065_v37, %v2741_v28 }
 0x3cb   :  { %3758 = vst [vmem:[%s8946_s6 + $0x598] sm:$0xff] %v3569_v43  ;;  %3759 = vst [vmem:[%s8946_s6 + $0x5a0] sm:$0xff] %v3570_v2  ;;  %v3572_v49 = vadd.f32 %v3388_v33, %v3248_v51  ;;  %v3573_v32 = vadd.f32 %v3388_v33, %v3249_v26  ;;  %v3574_v14 = vadd.f32 %v3388_v33, %v3250_v4 }
 0x3cc   :  { %3760 = vst.msk [vmem:[%s8946_s6 + $0x5a8] sm:$0xff] %vm1585_vm1, %v3571_v38  ;;  %v3575_v1 = vadd.f32 %v3388_v33, %v3251_v53  ;;  %v3576_v20 = vadd.f32 %v3388_v33, %v3252_v56  ;;  %v3577_v54 = vadd.f32 %v3388_v33, %v3253_v12  ;;  %v3578_v59 = vadd.f32 %v3388_v33, %v3254_v13 }
 0x3cd   :  { %3761 = vst [vmem:[%s8946_s6 + $0x5b0] sm:$0xff] %v3572_v49  ;;  %3762 = vst [vmem:[%s8946_s6 + $0x5b8] sm:$0xff] %v3573_v32 }
 0x3ce   :  { %3763 = vst [vmem:[%s8946_s6 + $0x5c0] sm:$0xff] %v3574_v14  ;;  %3764 = vst [vmem:[%s8946_s6 + $0x5c8] sm:$0xff] %v3575_v1 }
 0x3cf   :  { %3765 = vst [vmem:[%s8946_s6 + $0x5d0] sm:$0xff] %v3576_v20  ;;  %3766 = vst [vmem:[%s8946_s6 + $0x5d8] sm:$0xff] %v3577_v54 }
 0x3d0   :  { %3767 = vst.msk [vmem:[%s8946_s6 + $0x5e0] sm:$0xff] %vm1585_vm1, %v3578_v59 }

</bundles_post_ra>
